<compile_context>
chip_gen: v7x
topology: tpu7x:2x2x1
jax: 0.10.0
libtpu: 0.0.40
codegen_flags: <defaults>
</compile_context>

<pallas_src>
import functools
import math

import jax
import jax.numpy as jnp
from jax.experimental import pallas as pl
from jax.experimental.pallas import tpu as pltpu

BN_EPS = 1e-5
L2_EPS = 1e-12              # F.normalize default eps
L2_EPS_SQ = L2_EPS * L2_EPS
NUM_CLUSTERS = 64
VLAD_DIM = 256
ALPHA = 100.0

CONV_TS_TARGET = 2048       # conv spatial-tile target (lanes of the NCHW slab)
FUSE_ROWS_TARGET = 2048     # fused BN/upsample/concat pixel-row tile target
VLAD_TP_TARGET = 1024       # NetVLAD pixel tile target


def _vmem_limit_bytes():
    """Generation-aware scoped-VMEM budget (leave headroom under physical VMEM)."""
    try:
        phys = pltpu.get_tpu_info().vmem_capacity_bytes
        return int(min(max(phys - (16 << 20), 32 << 20), 96 << 20))
    except Exception:
        return 48 << 20


VMEM_LIMIT = _vmem_limit_bytes()


def _divisor_tile(total, mult, target):
    """Largest multiple of `mult` dividing `total` that is <= target; else `total`."""
    best = None
    t = mult
    limit = min(total, target)
    while t <= limit:
        if total % t == 0:
            best = t
        t += mult
    return best if best is not None else total


# ----------------------------- Pallas kernels -----------------------------

def _conv_stats_kernel(x_ref, w_ref, b_ref, y_ref, st_ref):
    """1x1 conv on an NCHW slab + per-tile BN partial statistics.

    x_ref: (Cin, TS) slab of the (N, Cin, H*W) view (NCHW, no XLA transpose)
    w_ref: (Cin, Cout)   b_ref: (1, Cout)
    y_ref: (TS, Cout) pixel-major conv output (bf16/f32)
    st_ref: (2, Cout) per-tile [sum, sumsq] partials (f32), reduced later in XLA.
    """
    y = jax.lax.dot_general(x_ref[...], w_ref[...], (((0,), (0,)), ((), ())),
                            preferred_element_type=jnp.float32) + b_ref[...]
    y_ref[...] = y.astype(y_ref.dtype)
    st_ref[0:1, :] = jnp.sum(y, axis=0, keepdims=True)
    st_ref[1:2, :] = jnp.sum(y * y, axis=0, keepdims=True)


def _conv_stats_dual_kernel(x_ref, w_ref, b_ref, bcol_ref, y_ref, ycm_ref, st_ref):
    """Same as above, plus a channel-major (Cout, TS) f32 copy written straight into
    the NCHW s2_processed output (second matmul on the idle MXU, no output transpose)."""
    x = x_ref[...]
    w = w_ref[...]
    y = jax.lax.dot_general(x, w, (((0,), (0,)), ((), ())),
                            preferred_element_type=jnp.float32) + b_ref[...]
    y_ref[...] = y.astype(y_ref.dtype)

    ycm = jax.lax.dot_general(w, x, (((0,), (0,)), ((), ())),
                              preferred_element_type=jnp.float32) + bcol_ref[...]
    ycm_ref[...] = ycm.astype(ycm_ref.dtype)

    st_ref[0:1, :] = jnp.sum(y, axis=0, keepdims=True)
    st_ref[1:2, :] = jnp.sum(y * y, axis=0, keepdims=True)


def _fuse_kernel(y1_ref, y2_ref, u_ref, aff_ref, o_ref, *, cb):
    """Fused BN-apply (x2) + ReLU + 2x nearest upsample + channel concat.

    y1_ref: (TP1, cb) bf16     y2_ref: (TP1//4, cb) bf16
    u_ref:  (TP1, TP1//4) bf16 0/1 expansion matrix (2x2 nearest upsample)
    aff_ref: (4, cb) f32 rows = [scale1, shift1, scale2, shift2]
    o_ref:  (TP1, 2*cb) bf16 fused feature slab
    """
    sc1 = aff_ref[0:1, :]
    sh1 = aff_ref[1:2, :]
    sc2 = aff_ref[2:3, :]
    sh2 = aff_ref[3:4, :]
    z1 = jnp.maximum(y1_ref[...].astype(jnp.float32) * sc1 + sh1, 0.0)
    z2 = jnp.maximum(y2_ref[...].astype(jnp.float32) * sc2 + sh2, 0.0)
    # 2x nearest-neighbour upsample (H and W) as a 0/1 matmul: each output row picks
    # exactly one z2 row -> exact replication, runs on the otherwise-idle MXU.
    z2_up = jnp.dot(u_ref[...], z2.astype(jnp.bfloat16),
                    preferred_element_type=jnp.float32)
    o_ref[:, :cb] = z1.astype(o_ref.dtype)
    o_ref[:, cb:] = z2_up.astype(o_ref.dtype)


def _netvlad_kernel(x_ref, wt_ref, b_ref, c_ref, o_ref, term1_ref, asum_ref):
    """Pixel-tiled NetVLAD for one batch item.

    x_ref: (TP, C) bf16   wt_ref: (C, K) = (2*alpha*centroids)^T   b_ref: (1, K)
    c_ref: (K, C) centroids   o_ref: (K, C) output (written on last pixel tile)
    term1_ref: (K, C) f32 scratch accumulator   asum_ref: (K, 1) f32 scratch.
    """
    p = pl.program_id(1)

    @pl.when(p == 0)
    def _():
        term1_ref[...] = jnp.zeros_like(term1_ref)
        asum_ref[...] = jnp.zeros_like(asum_ref)

    x = x_ref[...].astype(jnp.float32)
    # descriptor-wise L2 normalization: x * rsqrt(max(x.x, eps^2))
    xn = x * jax.lax.rsqrt(
        jnp.maximum(jnp.sum(x * x, axis=-1, keepdims=True), L2_EPS_SQ))

    logits = jnp.dot(xn, wt_ref[...], preferred_element_type=jnp.float32) + b_ref[...]
    m = jnp.max(logits, axis=-1, keepdims=True)
    e = jnp.exp(logits - m)
    a = e * pl.reciprocal(jnp.sum(e, axis=-1, keepdims=True), approx=True)   # (TP, K)

    asum_ref[...] += jnp.sum(a, axis=0)[:, None]                             # (K, 1)
    term1_ref[...] += jax.lax.dot_general(a, xn, (((0,), (0,)), ((), ())),
                                          preferred_element_type=jnp.float32)  # (K, C)

    @pl.when(p == pl.num_programs(1) - 1)
    def _():
        vlad = term1_ref[...] - c_ref[...] * asum_ref[...]
        vlad = vlad * jax.lax.rsqrt(
            jnp.maximum(jnp.sum(vlad * vlad, axis=-1, keepdims=True), L2_EPS_SQ))
        vlad = vlad * jax.lax.rsqrt(jnp.maximum(jnp.sum(vlad * vlad), L2_EPS_SQ))
        o_ref[...] = vlad.astype(o_ref.dtype)


# --------------------------- pallas_call wrappers ---------------------------

def conv1x1_stats(x_nchw, w, b, *, out_dtype, target_ts=CONV_TS_TARGET):
    """1x1 conv over an NCHW input viewed as (N, Cin, H*W).

    Returns pixel-major conv output (N, H*W, Cout) and per-tile BN partial stats
    (N, nsp, 2, Cout).  Both grid axes are "parallel" (megacore-friendly)."""
    n, cin, hw = x_nchw.shape
    cout = w.shape[1]
    ts = _divisor_tile(hw, 128, target_ts)
    nsp = hw // ts
    return pl.pallas_call(
        _conv_stats_kernel,
        out_shape=(jax.ShapeDtypeStruct((n, hw, cout), out_dtype),
                   jax.ShapeDtypeStruct((n, nsp, 2, cout), jnp.float32)),
        grid=(n, nsp),
        in_specs=[pl.BlockSpec((None, cin, ts), lambda bi, j: (bi, 0, j)),
                  pl.BlockSpec((cin, cout), lambda bi, j: (0, 0)),
                  pl.BlockSpec((1, cout), lambda bi, j: (0, 0))],
        out_specs=(pl.BlockSpec((None, ts, cout), lambda bi, j: (bi, j, 0)),
                   pl.BlockSpec((None, None, 2, cout), lambda bi, j: (bi, j, 0, 0))),
        compiler_params=pltpu.CompilerParams(
            dimension_semantics=("parallel", "parallel"),
            vmem_limit_bytes=VMEM_LIMIT),
        cost_estimate=pl.CostEstimate(
            flops=2 * n * hw * cin * cout,
            transcendentals=0,
            bytes_accessed=4 * n * hw * cin + 4 * cin * cout
            + n * hw * cout * jnp.dtype(out_dtype).itemsize + 4 * n * nsp * 2 * cout),
    )(x_nchw, w, b)


def conv1x1_stats_dual(x_nchw, w, b, *, pm_dtype, target_ts=CONV_TS_TARGET):
    """Like conv1x1_stats, plus a channel-major f32 copy (N, Cout, H*W) == s2_processed."""
    n, cin, hw = x_nchw.shape
    cout = w.shape[1]
    ts = _divisor_tile(hw, 128, target_ts)
    nsp = hw // ts
    bcol = jnp.transpose(b)                                   # (Cout, 1), tiny, XLA-side
    return pl.pallas_call(
        _conv_stats_dual_kernel,
        out_shape=(jax.ShapeDtypeStruct((n, hw, cout), pm_dtype),
                   jax.ShapeDtypeStruct((n, cout, hw), jnp.float32),
                   jax.ShapeDtypeStruct((n, nsp, 2, cout), jnp.float32)),
        grid=(n, nsp),
        in_specs=[pl.BlockSpec((None, cin, ts), lambda bi, j: (bi, 0, j)),
                  pl.BlockSpec((cin, cout), lambda bi, j: (0, 0)),
                  pl.BlockSpec((1, cout), lambda bi, j: (0, 0)),
                  pl.BlockSpec((cout, 1), lambda bi, j: (0, 0))],
        out_specs=(pl.BlockSpec((None, ts, cout), lambda bi, j: (bi, j, 0)),
                   pl.BlockSpec((None, cout, ts), lambda bi, j: (bi, 0, j)),
                   pl.BlockSpec((None, None, 2, cout), lambda bi, j: (bi, j, 0, 0))),
        compiler_params=pltpu.CompilerParams(
            dimension_semantics=("parallel", "parallel"),
            vmem_limit_bytes=VMEM_LIMIT),
        cost_estimate=pl.CostEstimate(
            flops=4 * n * hw * cin * cout,
            transcendentals=0,
            bytes_accessed=4 * n * hw * cin + 4 * cin * cout + 4 * n * cout * hw
            + n * hw * cout * jnp.dtype(pm_dtype).itemsize + 4 * n * nsp * 2 * cout),
    )(x_nchw, w, b, bcol)


def fuse_bn_upsample_concat(y1, y2, affine, *, img_w1, target_rows=FUSE_ROWS_TARGET):
    """Single fused pass: BN-apply + ReLU on both branches, x2 nearest upsample of the
    s2 branch, and channel concat -> (M1, 256) bf16 lane-dense slab."""
    m1, cb = y1.shape
    w1sp = img_w1
    w2sp = w1sp // 2
    # Tile must cover whole pairs of H1 rows (so the per-tile upsample map is static)
    # and keep the (8,128) sublane rule for both branches; fallback = whole slab.
    tile_mult = (2 * w1sp) * 32 // math.gcd(2 * w1sp, 32)
    tp1 = _divisor_tile(m1, tile_mult, target_rows)
    tp2 = tp1 // 4

    # 0/1 expansion matrix implementing the 2x2 nearest-neighbour upsample.
    r1 = jnp.arange(tp1, dtype=jnp.int32)
    tgt = (r1 // w1sp // 2) * w2sp + (r1 % w1sp) // 2
    u = (tgt[:, None] == jnp.arange(tp2, dtype=jnp.int32)[None, :]).astype(jnp.bfloat16)

    kernel = functools.partial(_fuse_kernel, cb=cb)
    return pl.pallas_call(
        kernel,
        out_shape=jax.ShapeDtypeStruct((m1, 2 * cb), jnp.bfloat16),
        grid=(m1 // tp1,),
        in_specs=[pl.BlockSpec((tp1, cb), lambda i: (i, 0)),
                  pl.BlockSpec((tp2, cb), lambda i: (i, 0)),
                  pl.BlockSpec((tp1, tp2), lambda i: (0, 0)),
                  pl.BlockSpec((4, cb), lambda i: (0, 0))],
        out_specs=pl.BlockSpec((tp1, 2 * cb), lambda i: (i, 0)),
        compiler_params=pltpu.CompilerParams(
            dimension_semantics=("parallel",),
            vmem_limit_bytes=VMEM_LIMIT),
        cost_estimate=pl.CostEstimate(
            flops=2 * m1 * tp2 * cb + 6 * m1 * cb,
            transcendentals=0,
            bytes_accessed=2 * (m1 * cb + (m1 // 4) * cb + m1 * 2 * cb) + 4 * 4 * cb),
    )(y1, y2, u, affine)


def netvlad(x_npc, conv_wt, conv_b, centroids, *, target_tp=VLAD_TP_TARGET):
    """Pixel-tiled NetVLAD: grid (N, P//TP); residual aggregation accumulated in VMEM."""
    n, p, c = x_npc.shape
    k = centroids.shape[0]
    tp = _divisor_tile(p, 8, target_tp)
    out = pl.pallas_call(
        _netvlad_kernel,
        out_shape=jax.ShapeDtypeStruct((n, k, c), jnp.float32),
        grid=(n, p // tp),
        in_specs=[pl.BlockSpec((None, tp, c), lambda bi, j: (bi, j, 0)),
                  pl.BlockSpec((c, k), lambda bi, j: (0, 0)),
                  pl.BlockSpec((1, k), lambda bi, j: (0, 0)),
                  pl.BlockSpec((k, c), lambda bi, j: (0, 0))],
        out_specs=pl.BlockSpec((None, k, c), lambda bi, j: (bi, 0, 0)),
        scratch_shapes=[pltpu.VMEM((k, c), jnp.float32),
                        pltpu.VMEM((k, 1), jnp.float32)],
        compiler_params=pltpu.CompilerParams(
            dimension_semantics=("parallel", "arbitrary"),
            vmem_limit_bytes=VMEM_LIMIT),
        cost_estimate=pl.CostEstimate(
            flops=4 * n * p * c * k,
            transcendentals=n * p * k,
            bytes_accessed=2 * n * p * c + 4 * (c * k + k + k * c + n * k * c)),
    )(x_npc, conv_wt, conv_b, centroids)
    return out.reshape(n, k * c)          # matches torch .view(N, -1) (row-major K,C)


# ------------------------------ BN stat folding ------------------------------

def bn_scale_shift(stats, m, gamma, beta):
    """Fold training-mode BN (batch stats, biased var) into per-channel scale/shift.

    stats: (N, nsp, 2, C) per-tile partials.  Variance uses E[x^2]-E[x]^2 in f32;
    acceptable for conv-scale activations (see review note on cancellation)."""
    s = jnp.sum(stats, axis=(0, 1))                    # (2, C)
    mean = s[0:1] / m
    var = jnp.maximum(s[1:2] / m - mean * mean, 0.0)
    scale = gamma * jax.lax.rsqrt(var + BN_EPS)
    shift = beta - mean * scale
    return scale, shift


# ------------------------------- CBAM (glue) -------------------------------
# TODO(synk): CBAM source was not provided upstream; standard CBAM (channel MLP with
# reduction 16, bias-free, + 7x7 bias-free spatial conv, sigmoid gates) is implemented
# here in plain JAX glue rather than guessed at in-kernel.

def cbam(x, ca_w1, ca_w2, sa_w):
    # x: (N, H, W, C) bf16; gate math in f32.
    xf = x.astype(jnp.float32)
    avg = jnp.mean(xf, axis=(1, 2))                    # (N, C)
    mx = jnp.max(xf, axis=(1, 2))                      # (N, C)

    def mlp(v):
        return jnp.maximum(v @ ca_w1, 0.0) @ ca_w2

    ca = jax.nn.sigmoid(mlp(avg) + mlp(mx))            # (N, C) f32
    x = x * ca[:, None, None, :].astype(x.dtype)

    xf = x.astype(jnp.float32)
    sa_in = jnp.concatenate([jnp.mean(xf, axis=-1, keepdims=True),
                             jnp.max(xf, axis=-1, keepdims=True)], axis=-1)  # (N,H,W,2)
    sa = jax.lax.conv_general_dilated(sa_in, sa_w, window_strides=(1, 1),
                                      padding=((3, 3), (3, 3)),
                                      dimension_numbers=("NHWC", "HWIO", "NHWC"))
    return x * jax.nn.sigmoid(sa).astype(x.dtype)


# ------------------------------ full forward ------------------------------

def mf_subnet1_forward(s1, s2, params):
    # s1: (N, 128, H1, W1) NCHW ; s2: (N, 256, H2, W2) NCHW with H1=2*H2, W1=2*W2
    n, c1, h1, w1 = s1.shape
    _, c2, h2, w2 = s2.shape
    hw1, hw2 = h1 * w1, h2 * w2
    m1, m2 = n * hw1, n * hw2

    # --- s1 path: NCHW-direct 1x1 conv (+ per-tile BN stats); pixel-major bf16 output
    y1, st1 = conv1x1_stats(s1.reshape(n, c1, hw1), params["w1"], params["b1"],
                            out_dtype=jnp.bfloat16)

    # --- s2 path: same conv; also emits the channel-major f32 copy == s2_processed
    y2, y2_cm, st2 = conv1x1_stats_dual(s2.reshape(n, c2, hw2), params["w2"],
                                        params["b2"], pm_dtype=jnp.bfloat16)
    s2_processed = y2_cm.reshape(n, 128, h2, w2)

    # --- fold training-mode BN into per-channel scale/shift.
    # BN of the x2 nearest-upsampled tensor has identical batch stats to BN of the
    # pre-upsample tensor (exact 4x replication, biased variance), so st2 is used as-is.
    sc1, sh1 = bn_scale_shift(st1, m1, params["bn_g"], params["bn_b"])
    sc2, sh2 = bn_scale_shift(st2, m2, params["bn_g"], params["bn_b"])
    affine = jnp.concatenate([sc1, sh1, sc2, sh2], axis=0)          # (4, 128) f32

    # --- fused BN-apply + ReLU + 2x nearest upsample + channel concat (one pass)
    fused = fuse_bn_upsample_concat(y1.reshape(m1, 128), y2.reshape(m2, 128),
                                    affine, img_w1=w1)              # (m1, 256) bf16

    # --- CBAM attention (plain JAX glue) then NetVLAD (Pallas, pixel-tiled)
    feat = cbam(fused.reshape(n, h1, w1, 256),
                params["ca_w1"], params["ca_w2"], params["sa_w"])
    m3 = netvlad(feat.reshape(n, hw1, 256),
                 params["vlad_wt"], params["vlad_b"], params["centroids"])
    return m3, s2_processed


# ------------------------------- parameters -------------------------------

def init_params(key):
    ks = jax.random.split(key, 10)
    p = {}
    # conv1x1_s1: 128 -> 128 (weights stored as (Cin, Cout) for the matmul kernels)
    p["w1"] = 0.05 * jax.random.normal(ks[0], (128, 128), jnp.float32)
    p["b1"] = 0.05 * jax.random.normal(ks[1], (1, 128), jnp.float32)
    # conv1x1_s2: 256 -> 128
    p["w2"] = 0.05 * jax.random.normal(ks[2], (256, 128), jnp.float32)
    p["b2"] = 0.05 * jax.random.normal(ks[3], (1, 128), jnp.float32)
    # shared BatchNorm2d(128) affine params
    p["bn_g"] = 1.0 + 0.1 * jax.random.normal(ks[4], (1, 128), jnp.float32)
    p["bn_b"] = 0.1 * jax.random.normal(ks[5], (1, 128), jnp.float32)
    # NetVLAD(dim=256, num_clusters=64, alpha=100): conv params derived from centroids
    # (bias = -alpha*||c|| exactly as in the provided PyTorch source).
    cent = jax.random.uniform(ks[6], (NUM_CLUSTERS, VLAD_DIM), jnp.float32)
    p["centroids"] = cent
    p["vlad_wt"] = (2.0 * ALPHA * cent).T                              # (C, K) pixel-major
    p["vlad_b"] = (-ALPHA * jnp.linalg.norm(cent, axis=1))[None, :]    # (1, K)
    # CBAM(256), reduction 16
    p["ca_w1"] = 0.05 * jax.random.normal(ks[7], (256, 16), jnp.float32)
    p["ca_w2"] = 0.05 * jax.random.normal(ks[8], (16, 256), jnp.float32)
    p["sa_w"] = 0.05 * jax.random.normal(ks[9], (7, 7, 2, 1), jnp.float32)
    return p


if __name__ == "__main__":
    key = jax.random.PRNGKey(0)
    k_s1, k_s2, k_p = jax.random.split(key, 3)

    n, h2, w2 = 2, 4, 4
    h1, w1 = 2 * h2, 2 * w2
    s1 = jax.random.normal(k_s1, (n, 128, h1, w1), jnp.float32)
    s2 = jax.random.normal(k_s2, (n, 256, h2, w2), jnp.float32)
    params = init_params(k_p)

    fwd = jax.jit(functools.partial(mf_subnet1_forward, params=params))
    m3, s2_processed = fwd(s1, s2)
    jax.block_until_ready((m3, s2_processed))

    assert m3.shape == (n, NUM_CLUSTERS * VLAD_DIM)
    assert s2_processed.shape == (n, 128, h2, w2)
    assert bool(jnp.all(jnp.isfinite(m3))) and bool(jnp.all(jnp.isfinite(s2_processed)))
    print("KERNEL_OK")
</pallas_src>

<mosaic_0001>
module attributes {stable_mosaic.version = 11 : i64} {
  func.func @_conv_stats_dual_kernel(%arg0: i32, %arg1: i32, %arg2: memref<1x256x16xf32, #tpu.memory_space<vmem>>, %arg3: memref<256x128xf32, #tpu.memory_space<vmem>>, %arg4: memref<1x128xf32, #tpu.memory_space<vmem>>, %arg5: memref<128x1xf32, #tpu.memory_space<vmem>>, %arg6: memref<1x16x128xbf16, #tpu.memory_space<vmem>>, %arg7: memref<1x128x16xf32, #tpu.memory_space<vmem>>, %arg8: memref<1x1x2x128xf32, #tpu.memory_space<vmem>>) attributes {dimension_semantics = [#tpu.dimension_semantics<parallel>, #tpu.dimension_semantics<parallel>], iteration_bounds = array<i64: 2, 1>, scalar_prefetch = 0 : i64, scratch_operands = 0 : i64, tpu.core_type = #tpu.core_type<tc>, window_params = [{transform_indices = @transform_0, window_bounds = array<i64: 1, 256, 16>}, {pipeline_mode = #tpu.pipeline_mode<synchronous>, transform_indices = @transform_1, window_bounds = array<i64: 256, 128>}, {pipeline_mode = #tpu.pipeline_mode<synchronous>, transform_indices = @transform_2, window_bounds = array<i64: 1, 128>}, {pipeline_mode = #tpu.pipeline_mode<synchronous>, transform_indices = @transform_3, window_bounds = array<i64: 128, 1>}, {transform_indices = @transform_4, window_bounds = array<i64: 1, 16, 128>}, {transform_indices = @transform_5, window_bounds = array<i64: 1, 128, 16>}, {transform_indices = @transform_6, window_bounds = array<i64: 1, 1, 2, 128>}]} {
    %c0 = arith.constant 0 : index
    %c0_0 = arith.constant 0 : index
    %c0_1 = arith.constant 0 : index
    %0 = vector.load %arg2[%c0, %c0_0, %c0_1] : memref<1x256x16xf32, #tpu.memory_space<vmem>>, vector<1x256x16xf32>
    %1 = vector.shape_cast %0 : vector<1x256x16xf32> to vector<256x16xf32>
    %c0_2 = arith.constant 0 : index
    %c0_3 = arith.constant 0 : index
    %2 = vector.load %arg3[%c0_2, %c0_3] : memref<256x128xf32, #tpu.memory_space<vmem>>, vector<256x128xf32>
    %cst = arith.constant dense<0.000000e+00> : vector<16x128xf32>
    %3 = tpu.matmul %1, %2, %cst {dimension_numbers = #tpu.dot_dimension_numbers<[0], [0], [1], [1], [0, 1, 1, 1], [], []>} : vector<256x16xf32>, vector<256x128xf32>, vector<16x128xf32> -> vector<16x128xf32>
    %c0_4 = arith.constant 0 : index
    %c0_5 = arith.constant 0 : index
    %4 = vector.load %arg4[%c0_4, %c0_5] : memref<1x128xf32, #tpu.memory_space<vmem>>, vector<1x128xf32>
    %5 = vector.broadcast %4 : vector<1x128xf32> to vector<16x128xf32>
    %6 = arith.addf %3, %5 : vector<16x128xf32>
    %7 = arith.truncf %6 : vector<16x128xf32> to vector<16x128xbf16>
    %c0_6 = arith.constant 0 : index
    %c0_7 = arith.constant 0 : index
    %c0_8 = arith.constant 0 : index
    %8 = vector.load %arg6[%c0_6, %c0_7, %c0_8] : memref<1x16x128xbf16, #tpu.memory_space<vmem>>, vector<1x16x128xbf16>
    %9 = vector.shape_cast %8 : vector<1x16x128xbf16> to vector<16x128xbf16>
    %10 = vector.shape_cast %7 : vector<16x128xbf16> to vector<1x16x128xbf16>
    tpu.vector_store %arg6[%c0_6, %c0_7, %c0_8], %10 {strides = array<i32>} : memref<1x16x128xbf16, #tpu.memory_space<vmem>>, vector<1x16x128xbf16>,
    %cst_9 = arith.constant dense<0.000000e+00> : vector<128x16xf32>
    %11 = tpu.matmul %2, %1, %cst_9 {dimension_numbers = #tpu.dot_dimension_numbers<[0], [0], [1], [1], [0, 1, 1, 1], [], []>} : vector<256x128xf32>, vector<256x16xf32>, vector<128x16xf32> -> vector<128x16xf32>
    %c0_10 = arith.constant 0 : index
    %c0_11 = arith.constant 0 : index
    %12 = vector.load %arg5[%c0_10, %c0_11] : memref<128x1xf32, #tpu.memory_space<vmem>>, vector<128x1xf32>
    %13 = vector.broadcast %12 : vector<128x1xf32> to vector<128x16xf32>
    %14 = arith.addf %11, %13 : vector<128x16xf32>
    %c0_12 = arith.constant 0 : index
    %c0_13 = arith.constant 0 : index
    %c0_14 = arith.constant 0 : index
    %15 = vector.load %arg7[%c0_12, %c0_13, %c0_14] : memref<1x128x16xf32, #tpu.memory_space<vmem>>, vector<1x128x16xf32>
    %16 = vector.shape_cast %15 : vector<1x128x16xf32> to vector<128x16xf32>
    %17 = vector.shape_cast %14 : vector<128x16xf32> to vector<1x128x16xf32>
    tpu.vector_store %arg7[%c0_12, %c0_13, %c0_14], %17 {strides = array<i32>} : memref<1x128x16xf32, #tpu.memory_space<vmem>>, vector<1x128x16xf32>,
    %cst_15 = arith.constant dense<0.000000e+00> : vector<128xf32>
    %18 = vector.multi_reduction <add>, %6, %cst_15 [0] : vector<16x128xf32> to vector<128xf32>
    %19 = vector.shape_cast %18 : vector<128xf32> to vector<1x128xf32>
    %c0_16 = arith.constant 0 : index
    %c0_17 = arith.constant 0 : index
    %c0_18 = arith.constant 0 : index
    %c0_19 = arith.constant 0 : index
    %20 = vector.load %arg8[%c0_16, %c0_17, %c0_18, %c0_19] : memref<1x1x2x128xf32, #tpu.memory_space<vmem>>, vector<1x1x1x128xf32>
    %21 = vector.shape_cast %20 : vector<1x1x1x128xf32> to vector<1x128xf32>
    %22 = vector.shape_cast %19 : vector<1x128xf32> to vector<1x1x1x128xf32>
    tpu.vector_store %arg8[%c0_16, %c0_17, %c0_18, %c0_19], %22 {strides = array<i32>} : memref<1x1x2x128xf32, #tpu.memory_space<vmem>>, vector<1x1x1x128xf32>,
    %23 = arith.mulf %6, %6 : vector<16x128xf32>
    %cst_20 = arith.constant dense<0.000000e+00> : vector<128xf32>
    %24 = vector.multi_reduction <add>, %23, %cst_20 [0] : vector<16x128xf32> to vector<128xf32>
    %25 = vector.shape_cast %24 : vector<128xf32> to vector<1x128xf32>
    %c0_21 = arith.constant 0 : index
    %c0_22 = arith.constant 0 : index
    %c1 = arith.constant 1 : index
    %c0_23 = arith.constant 0 : index
    %26 = vector.load %arg8[%c0_21, %c0_22, %c1, %c0_23] : memref<1x1x2x128xf32, #tpu.memory_space<vmem>>, vector<1x1x1x128xf32>
    %27 = vector.shape_cast %26 : vector<1x1x1x128xf32> to vector<1x128xf32>
    %28 = vector.shape_cast %25 : vector<1x128xf32> to vector<1x1x1x128xf32>
    tpu.vector_store %arg8[%c0_21, %c0_22, %c1, %c0_23], %28 {strides = array<i32>} : memref<1x1x2x128xf32, #tpu.memory_space<vmem>>, vector<1x1x1x128xf32>,
    return
  }
  func.func @transform_0(%arg0: i32, %arg1: i32) -> (i32, i32, i32) {
    %c0_i32 = arith.constant 0 : i32
    %c0_i32_0 = arith.constant 0 : i32
    return %arg0, %c0_i32, %arg1 : i32, i32, i32
  }
  func.func @transform_1(%arg0: i32, %arg1: i32) -> (i32, i32) {
    %c0_i32 = arith.constant 0 : i32
    %c0_i32_0 = arith.constant 0 : i32
    %c0_i32_1 = arith.constant 0 : i32
    return %c0_i32, %c0_i32_0 : i32, i32
  }
  func.func @transform_2(%arg0: i32, %arg1: i32) -> (i32, i32) {
    %c0_i32 = arith.constant 0 : i32
    %c0_i32_0 = arith.constant 0 : i32
    %c0_i32_1 = arith.constant 0 : i32
    return %c0_i32, %c0_i32_0 : i32, i32
  }
  func.func @transform_3(%arg0: i32, %arg1: i32) -> (i32, i32) {
    %c0_i32 = arith.constant 0 : i32
    %c0_i32_0 = arith.constant 0 : i32
    %c0_i32_1 = arith.constant 0 : i32
    return %c0_i32, %c0_i32_0 : i32, i32
  }
  func.func @transform_4(%arg0: i32, %arg1: i32) -> (i32, i32, i32) {
    %c0_i32 = arith.constant 0 : i32
    %c0_i32_0 = arith.constant 0 : i32
    return %arg0, %arg1, %c0_i32 : i32, i32, i32
  }
  func.func @transform_5(%arg0: i32, %arg1: i32) -> (i32, i32, i32) {
    %c0_i32 = arith.constant 0 : i32
    %c0_i32_0 = arith.constant 0 : i32
    return %arg0, %c0_i32, %arg1 : i32, i32, i32
  }
  func.func @transform_6(%arg0: i32, %arg1: i32) -> (i32, i32, i32, i32) {
    %c0_i32 = arith.constant 0 : i32
    %c0_i32_0 = arith.constant 0 : i32
    %c0_i32_1 = arith.constant 0 : i32
    return %arg0, %arg1, %c0_i32, %c0_i32_0 : i32, i32, i32, i32
  }
}

module attributes {stable_mosaic.version = 11 : i64} {
  func.func @_conv_stats_kernel(%arg0: i32, %arg1: i32, %arg2: memref<1x128x64xf32, #tpu.memory_space<vmem>>, %arg3: memref<128x128xf32, #tpu.memory_space<vmem>>, %arg4: memref<1x128xf32, #tpu.memory_space<vmem>>, %arg5: memref<1x64x128xbf16, #tpu.memory_space<vmem>>, %arg6: memref<1x1x2x128xf32, #tpu.memory_space<vmem>>) attributes {dimension_semantics = [#tpu.dimension_semantics<parallel>, #tpu.dimension_semantics<parallel>], iteration_bounds = array<i64: 2, 1>, scalar_prefetch = 0 : i64, scratch_operands = 0 : i64, tpu.core_type = #tpu.core_type<tc>, window_params = [{transform_indices = @transform_0, window_bounds = array<i64: 1, 128, 64>}, {pipeline_mode = #tpu.pipeline_mode<synchronous>, transform_indices = @transform_1, window_bounds = array<i64: 128, 128>}, {pipeline_mode = #tpu.pipeline_mode<synchronous>, transform_indices = @transform_2, window_bounds = array<i64: 1, 128>}, {transform_indices = @transform_3, window_bounds = array<i64: 1, 64, 128>}, {transform_indices = @transform_4, window_bounds = array<i64: 1, 1, 2, 128>}]} {
    %c0 = arith.constant 0 : index
    %c0_0 = arith.constant 0 : index
    %c0_1 = arith.constant 0 : index
    %0 = vector.load %arg2[%c0, %c0_0, %c0_1] : memref<1x128x64xf32, #tpu.memory_space<vmem>>, vector<1x128x64xf32>
    %1 = vector.shape_cast %0 : vector<1x128x64xf32> to vector<128x64xf32>
    %c0_2 = arith.constant 0 : index
    %c0_3 = arith.constant 0 : index
    %2 = vector.load %arg3[%c0_2, %c0_3] : memref<128x128xf32, #tpu.memory_space<vmem>>, vector<128x128xf32>
    %cst = arith.constant dense<0.000000e+00> : vector<64x128xf32>
    %3 = tpu.matmul %1, %2, %cst {dimension_numbers = #tpu.dot_dimension_numbers<[0], [0], [1], [1], [0, 1, 1, 1], [], []>} : vector<128x64xf32>, vector<128x128xf32>, vector<64x128xf32> -> vector<64x128xf32>
    %c0_4 = arith.constant 0 : index
    %c0_5 = arith.constant 0 : index
    %4 = vector.load %arg4[%c0_4, %c0_5] : memref<1x128xf32, #tpu.memory_space<vmem>>, vector<1x128xf32>
    %5 = vector.broadcast %4 : vector<1x128xf32> to vector<64x128xf32>
    %6 = arith.addf %3, %5 : vector<64x128xf32>
    %7 = arith.truncf %6 : vector<64x128xf32> to vector<64x128xbf16>
    %c0_6 = arith.constant 0 : index
    %c0_7 = arith.constant 0 : index
    %c0_8 = arith.constant 0 : index
    %8 = vector.load %arg5[%c0_6, %c0_7, %c0_8] : memref<1x64x128xbf16, #tpu.memory_space<vmem>>, vector<1x64x128xbf16>
    %9 = vector.shape_cast %8 : vector<1x64x128xbf16> to vector<64x128xbf16>
    %10 = vector.shape_cast %7 : vector<64x128xbf16> to vector<1x64x128xbf16>
    tpu.vector_store %arg5[%c0_6, %c0_7, %c0_8], %10 {strides = array<i32>} : memref<1x64x128xbf16, #tpu.memory_space<vmem>>, vector<1x64x128xbf16>,
    %cst_9 = arith.constant dense<0.000000e+00> : vector<128xf32>
    %11 = vector.multi_reduction <add>, %6, %cst_9 [0] : vector<64x128xf32> to vector<128xf32>
    %12 = vector.shape_cast %11 : vector<128xf32> to vector<1x128xf32>
    %c0_10 = arith.constant 0 : index
    %c0_11 = arith.constant 0 : index
    %c0_12 = arith.constant 0 : index
    %c0_13 = arith.constant 0 : index
    %13 = vector.load %arg6[%c0_10, %c0_11, %c0_12, %c0_13] : memref<1x1x2x128xf32, #tpu.memory_space<vmem>>, vector<1x1x1x128xf32>
    %14 = vector.shape_cast %13 : vector<1x1x1x128xf32> to vector<1x128xf32>
    %15 = vector.shape_cast %12 : vector<1x128xf32> to vector<1x1x1x128xf32>
    tpu.vector_store %arg6[%c0_10, %c0_11, %c0_12, %c0_13], %15 {strides = array<i32>} : memref<1x1x2x128xf32, #tpu.memory_space<vmem>>, vector<1x1x1x128xf32>,
    %16 = arith.mulf %6, %6 : vector<64x128xf32>
    %cst_14 = arith.constant dense<0.000000e+00> : vector<128xf32>
    %17 = vector.multi_reduction <add>, %16, %cst_14 [0] : vector<64x128xf32> to vector<128xf32>
    %18 = vector.shape_cast %17 : vector<128xf32> to vector<1x128xf32>
    %c0_15 = arith.constant 0 : index
    %c0_16 = arith.constant 0 : index
    %c1 = arith.constant 1 : index
    %c0_17 = arith.constant 0 : index
    %19 = vector.load %arg6[%c0_15, %c0_16, %c1, %c0_17] : memref<1x1x2x128xf32, #tpu.memory_space<vmem>>, vector<1x1x1x128xf32>
    %20 = vector.shape_cast %19 : vector<1x1x1x128xf32> to vector<1x128xf32>
    %21 = vector.shape_cast %18 : vector<1x128xf32> to vector<1x1x1x128xf32>
    tpu.vector_store %arg6[%c0_15, %c0_16, %c1, %c0_17], %21 {strides = array<i32>} : memref<1x1x2x128xf32, #tpu.memory_space<vmem>>, vector<1x1x1x128xf32>,
    return
  }
  func.func @transform_0(%arg0: i32, %arg1: i32) -> (i32, i32, i32) {
    %c0_i32 = arith.constant 0 : i32
    %c0_i32_0 = arith.constant 0 : i32
    return %arg0, %c0_i32, %arg1 : i32, i32, i32
  }
  func.func @transform_1(%arg0: i32, %arg1: i32) -> (i32, i32) {
    %c0_i32 = arith.constant 0 : i32
    %c0_i32_0 = arith.constant 0 : i32
    %c0_i32_1 = arith.constant 0 : i32
    return %c0_i32, %c0_i32_0 : i32, i32
  }
  func.func @transform_2(%arg0: i32, %arg1: i32) -> (i32, i32) {
    %c0_i32 = arith.constant 0 : i32
    %c0_i32_0 = arith.constant 0 : i32
    %c0_i32_1 = arith.constant 0 : i32
    return %c0_i32, %c0_i32_0 : i32, i32
  }
  func.func @transform_3(%arg0: i32, %arg1: i32) -> (i32, i32, i32) {
    %c0_i32 = arith.constant 0 : i32
    %c0_i32_0 = arith.constant 0 : i32
    return %arg0, %arg1, %c0_i32 : i32, i32, i32
  }
  func.func @transform_4(%arg0: i32, %arg1: i32) -> (i32, i32, i32, i32) {
    %c0_i32 = arith.constant 0 : i32
    %c0_i32_0 = arith.constant 0 : i32
    %c0_i32_1 = arith.constant 0 : i32
    return %arg0, %arg1, %c0_i32, %c0_i32_0 : i32, i32, i32, i32
  }
}

module attributes {stable_mosaic.version = 11 : i64} {
  func.func @_fuse_kernel(%arg0: i32, %arg1: memref<128x128xbf16, #tpu.memory_space<vmem>>, %arg2: memref<32x128xbf16, #tpu.memory_space<vmem>>, %arg3: memref<128x32xbf16, #tpu.memory_space<vmem>>, %arg4: memref<4x128xf32, #tpu.memory_space<vmem>>, %arg5: memref<128x256xbf16, #tpu.memory_space<vmem>>) attributes {dimension_semantics = [#tpu.dimension_semantics<parallel>], iteration_bounds = array<i64: 1>, scalar_prefetch = 0 : i64, scratch_operands = 0 : i64, tpu.core_type = #tpu.core_type<tc>, window_params = [{transform_indices = @transform_0, window_bounds = array<i64: 128, 128>}, {transform_indices = @transform_1, window_bounds = array<i64: 32, 128>}, {pipeline_mode = #tpu.pipeline_mode<synchronous>, transform_indices = @transform_2, window_bounds = array<i64: 128, 32>}, {pipeline_mode = #tpu.pipeline_mode<synchronous>, transform_indices = @transform_3, window_bounds = array<i64: 4, 128>}, {transform_indices = @transform_4, window_bounds = array<i64: 128, 256>}]} {
    %c0 = arith.constant 0 : index
    %c0_0 = arith.constant 0 : index
    %0 = vector.load %arg4[%c0, %c0_0] : memref<4x128xf32, #tpu.memory_space<vmem>>, vector<1x128xf32>
    %c1 = arith.constant 1 : index
    %c0_1 = arith.constant 0 : index
    %1 = vector.load %arg4[%c1, %c0_1] : memref<4x128xf32, #tpu.memory_space<vmem>>, vector<1x128xf32>
    %c2 = arith.constant 2 : index
    %c0_2 = arith.constant 0 : index
    %2 = vector.load %arg4[%c2, %c0_2] : memref<4x128xf32, #tpu.memory_space<vmem>>, vector<1x128xf32>
    %c3 = arith.constant 3 : index
    %c0_3 = arith.constant 0 : index
    %3 = vector.load %arg4[%c3, %c0_3] : memref<4x128xf32, #tpu.memory_space<vmem>>, vector<1x128xf32>
    %c0_4 = arith.constant 0 : index
    %c0_5 = arith.constant 0 : index
    %4 = vector.load %arg1[%c0_4, %c0_5] : memref<128x128xbf16, #tpu.memory_space<vmem>>, vector<128x128xbf16>
    %5 = arith.extf %4 : vector<128x128xbf16> to vector<128x128xf32>
    %6 = vector.broadcast %0 : vector<1x128xf32> to vector<128x128xf32>
    %7 = arith.mulf %5, %6 : vector<128x128xf32>
    %8 = vector.broadcast %1 : vector<1x128xf32> to vector<128x128xf32>
    %9 = arith.addf %7, %8 : vector<128x128xf32>
    %cst = arith.constant 0.000000e+00 : f32
    %10 = vector.broadcast %cst : f32 to vector<128x128xf32>
    %11 = arith.maximumf %9, %10 : vector<128x128xf32>
    %c0_6 = arith.constant 0 : index
    %c0_7 = arith.constant 0 : index
    %12 = vector.load %arg2[%c0_6, %c0_7] : memref<32x128xbf16, #tpu.memory_space<vmem>>, vector<32x128xbf16>
    %13 = arith.extf %12 : vector<32x128xbf16> to vector<32x128xf32>
    %14 = vector.broadcast %2 : vector<1x128xf32> to vector<32x128xf32>
    %15 = arith.mulf %13, %14 : vector<32x128xf32>
    %16 = vector.broadcast %3 : vector<1x128xf32> to vector<32x128xf32>
    %17 = arith.addf %15, %16 : vector<32x128xf32>
    %cst_8 = arith.constant 0.000000e+00 : f32
    %18 = vector.broadcast %cst_8 : f32 to vector<32x128xf32>
    %19 = arith.maximumf %17, %18 : vector<32x128xf32>
    %c0_9 = arith.constant 0 : index
    %c0_10 = arith.constant 0 : index
    %20 = vector.load %arg3[%c0_9, %c0_10] : memref<128x32xbf16, #tpu.memory_space<vmem>>, vector<128x32xbf16>
    %21 = arith.truncf %19 : vector<32x128xf32> to vector<32x128xbf16>
    %cst_11 = arith.constant dense<0.000000e+00> : vector<128x128xf32>
    %22 = tpu.matmul %20, %21, %cst_11 {dimension_numbers = #tpu.dot_dimension_numbers<[1], [0], [0], [1], [0, 0, 1, 1], [], []>} : vector<128x32xbf16>, vector<32x128xbf16>, vector<128x128xf32> -> vector<128x128xf32>
    %23 = arith.truncf %11 : vector<128x128xf32> to vector<128x128xbf16>
    %c0_12 = arith.constant 0 : index
    %c0_13 = arith.constant 0 : index
    %24 = vector.load %arg5[%c0_12, %c0_13] : memref<128x256xbf16, #tpu.memory_space<vmem>>, vector<128x128xbf16>
    tpu.vector_store %arg5[%c0_12, %c0_13], %23 {strides = array<i32>} : memref<128x256xbf16, #tpu.memory_space<vmem>>, vector<128x128xbf16>,
    %25 = arith.truncf %22 : vector<128x128xf32> to vector<128x128xbf16>
    %c0_14 = arith.constant 0 : index
    %c128 = arith.constant 128 : index
    %26 = vector.load %arg5[%c0_14, %c128] : memref<128x256xbf16, #tpu.memory_space<vmem>>, vector<128x128xbf16>
    tpu.vector_store %arg5[%c0_14, %c128], %25 {strides = array<i32>} : memref<128x256xbf16, #tpu.memory_space<vmem>>, vector<128x128xbf16>,
    return
  }
  func.func @transform_0(%arg0: i32) -> (i32, i32) {
    %c0_i32 = arith.constant 0 : i32
    %c0_i32_0 = arith.constant 0 : i32
    return %arg0, %c0_i32 : i32, i32
  }
  func.func @transform_1(%arg0: i32) -> (i32, i32) {
    %c0_i32 = arith.constant 0 : i32
    %c0_i32_0 = arith.constant 0 : i32
    return %arg0, %c0_i32 : i32, i32
  }
  func.func @transform_2(%arg0: i32) -> (i32, i32) {
    %c0_i32 = arith.constant 0 : i32
    %c0_i32_0 = arith.constant 0 : i32
    %c0_i32_1 = arith.constant 0 : i32
    return %c0_i32, %c0_i32_0 : i32, i32
  }
  func.func @transform_3(%arg0: i32) -> (i32, i32) {
    %c0_i32 = arith.constant 0 : i32
    %c0_i32_0 = arith.constant 0 : i32
    %c0_i32_1 = arith.constant 0 : i32
    return %c0_i32, %c0_i32_0 : i32, i32
  }
  func.func @transform_4(%arg0: i32) -> (i32, i32) {
    %c0_i32 = arith.constant 0 : i32
    %c0_i32_0 = arith.constant 0 : i32
    return %arg0, %c0_i32 : i32, i32
  }
}

module attributes {stable_mosaic.version = 11 : i64} {
  func.func @_netvlad_kernel(%arg0: i32, %arg1: i32, %arg2: memref<1x64x256xbf16, #tpu.memory_space<vmem>>, %arg3: memref<256x64xf32, #tpu.memory_space<vmem>>, %arg4: memref<1x64xf32, #tpu.memory_space<vmem>>, %arg5: memref<64x256xf32, #tpu.memory_space<vmem>>, %arg6: memref<1x64x256xf32, #tpu.memory_space<vmem>>, %arg7: memref<64x256xf32, #tpu.memory_space<vmem>>, %arg8: memref<64x1xf32, #tpu.memory_space<vmem>>) attributes {dimension_semantics = [#tpu.dimension_semantics<parallel>, #tpu.dimension_semantics<arbitrary>], iteration_bounds = array<i64: 2, 1>, scalar_prefetch = 0 : i64, scratch_operands = 2 : i64, tpu.core_type = #tpu.core_type<tc>, window_params = [{transform_indices = @transform_0, window_bounds = array<i64: 1, 64, 256>}, {pipeline_mode = #tpu.pipeline_mode<synchronous>, transform_indices = @transform_1, window_bounds = array<i64: 256, 64>}, {pipeline_mode = #tpu.pipeline_mode<synchronous>, transform_indices = @transform_2, window_bounds = array<i64: 1, 64>}, {pipeline_mode = #tpu.pipeline_mode<synchronous>, transform_indices = @transform_3, window_bounds = array<i64: 64, 256>}, {transform_indices = @transform_4, window_bounds = array<i64: 1, 64, 256>}]} {
    %c0_i32 = arith.constant 0 : i32
    %0 = arith.cmpi eq, %arg1, %c0_i32 : i32
    %1 = arith.extui %0 : i1 to i32
    %c0_i32_0 = arith.constant 0 : i32
    %2 = arith.cmpi ne, %1, %c0_i32_0 : i32
    scf.if %2 {
      %cst_23 = arith.constant 0.000000e+00 : f32
      %41 = vector.broadcast %cst_23 : f32 to vector<64x256xf32>
      %c0_24 = arith.constant 0 : index
      %c0_25 = arith.constant 0 : index
      %42 = vector.load %arg7[%c0_24, %c0_25] : memref<64x256xf32, #tpu.memory_space<vmem>>, vector<64x256xf32>
      tpu.vector_store %arg7[%c0_24, %c0_25], %41 {strides = array<i32>} : memref<64x256xf32, #tpu.memory_space<vmem>>, vector<64x256xf32>,
      %cst_26 = arith.constant 0.000000e+00 : f32
      %43 = vector.broadcast %cst_26 : f32 to vector<64x1xf32>
      %c0_27 = arith.constant 0 : index
      %c0_28 = arith.constant 0 : index
      %44 = vector.load %arg8[%c0_27, %c0_28] : memref<64x1xf32, #tpu.memory_space<vmem>>, vector<64x1xf32>
      tpu.vector_store %arg8[%c0_27, %c0_28], %43 {strides = array<i32>} : memref<64x1xf32, #tpu.memory_space<vmem>>, vector<64x1xf32>,
    } else {
    }
    %c0 = arith.constant 0 : index
    %c0_1 = arith.constant 0 : index
    %c0_2 = arith.constant 0 : index
    %3 = vector.load %arg2[%c0, %c0_1, %c0_2] : memref<1x64x256xbf16, #tpu.memory_space<vmem>>, vector<1x64x256xbf16>
    %4 = vector.shape_cast %3 : vector<1x64x256xbf16> to vector<64x256xbf16>
    %5 = arith.extf %4 : vector<64x256xbf16> to vector<64x256xf32>
    %6 = arith.mulf %5, %5 : vector<64x256xf32>
    %cst = arith.constant dense<0.000000e+00> : vector<64xf32>
    %7 = vector.multi_reduction <add>, %6, %cst [1] : vector<64x256xf32> to vector<64xf32>
    %8 = vector.shape_cast %7 : vector<64xf32> to vector<64x1xf32>
    %cst_3 = arith.constant 1.000000e-24 : f32
    %9 = vector.broadcast %cst_3 : f32 to vector<64x1xf32>
    %10 = arith.maximumf %8, %9 : vector<64x1xf32>
    %11 = math.rsqrt %10 : vector<64x1xf32>
    %12 = vector.broadcast %11 : vector<64x1xf32> to vector<64x256xf32>
    %13 = arith.mulf %5, %12 : vector<64x256xf32>
    %c0_4 = arith.constant 0 : index
    %c0_5 = arith.constant 0 : index
    %14 = vector.load %arg3[%c0_4, %c0_5] : memref<256x64xf32, #tpu.memory_space<vmem>>, vector<256x64xf32>
    %cst_6 = arith.constant dense<0.000000e+00> : vector<64x64xf32>
    %15 = tpu.matmul %13, %14, %cst_6 {dimension_numbers = #tpu.dot_dimension_numbers<[1], [0], [0], [1], [0, 0, 1, 1], [], []>} : vector<64x256xf32>, vector<256x64xf32>, vector<64x64xf32> -> vector<64x64xf32>
    %c0_7 = arith.constant 0 : index
    %c0_8 = arith.constant 0 : index
    %16 = vector.load %arg4[%c0_7, %c0_8] : memref<1x64xf32, #tpu.memory_space<vmem>>, vector<1x64xf32>
    %17 = vector.broadcast %16 : vector<1x64xf32> to vector<64x64xf32>
    %18 = arith.addf %15, %17 : vector<64x64xf32>
    %cst_9 = arith.constant dense<0xFF800000> : vector<64xf32>
    %19 = vector.multi_reduction <maximumf>, %18, %cst_9 [1] : vector<64x64xf32> to vector<64xf32>
    %20 = vector.shape_cast %19 : vector<64xf32> to vector<64x1xf32>
    %21 = vector.broadcast %20 : vector<64x1xf32> to vector<64x64xf32>
    %22 = arith.subf %18, %21 : vector<64x64xf32>
    %23 = math.exp %22 : vector<64x64xf32>
    %cst_10 = arith.constant dense<0.000000e+00> : vector<64xf32>
    %24 = vector.multi_reduction <add>, %23, %cst_10 [1] : vector<64x64xf32> to vector<64xf32>
    %25 = vector.shape_cast %24 : vector<64xf32> to vector<64x1xf32>
    %26 = tpu.reciprocal %25 {approx = true} : vector<64x1xf32> -> vector<64x1xf32>
    %27 = vector.broadcast %26 : vector<64x1xf32> to vector<64x64xf32>
    %28 = arith.mulf %23, %27 : vector<64x64xf32>
    %c0_11 = arith.constant 0 : index
    %c0_12 = arith.constant 0 : index
    %29 = vector.load %arg8[%c0_11, %c0_12] : memref<64x1xf32, #tpu.memory_space<vmem>>, vector<64x1xf32>
    %cst_13 = arith.constant dense<0.000000e+00> : vector<64xf32>
    %30 = vector.multi_reduction <add>, %28, %cst_13 [0] : vector<64x64xf32> to vector<64xf32>
    %31 = vector.shape_cast %30 : vector<64xf32> to vector<64x1xf32>
    %32 = arith.addf %29, %31 : vector<64x1xf32>
    %c0_14 = arith.constant 0 : index
    %c0_15 = arith.constant 0 : index
    %33 = vector.load %arg8[%c0_14, %c0_15] : memref<64x1xf32, #tpu.memory_space<vmem>>, vector<64x1xf32>
    tpu.vector_store %arg8[%c0_14, %c0_15], %32 {strides = array<i32>} : memref<64x1xf32, #tpu.memory_space<vmem>>, vector<64x1xf32>,
    %c0_16 = arith.constant 0 : index
    %c0_17 = arith.constant 0 : index
    %34 = vector.load %arg7[%c0_16, %c0_17] : memref<64x256xf32, #tpu.memory_space<vmem>>, vector<64x256xf32>
    %cst_18 = arith.constant dense<0.000000e+00> : vector<64x256xf32>
    %35 = tpu.matmul %28, %13, %cst_18 {dimension_numbers = #tpu.dot_dimension_numbers<[0], [0], [1], [1], [0, 1, 1, 1], [], []>} : vector<64x64xf32>, vector<64x256xf32>, vector<64x256xf32> -> vector<64x256xf32>
    %36 = arith.addf %34, %35 : vector<64x256xf32>
    %c0_19 = arith.constant 0 : index
    %c0_20 = arith.constant 0 : index
    %37 = vector.load %arg7[%c0_19, %c0_20] : memref<64x256xf32, #tpu.memory_space<vmem>>, vector<64x256xf32>
    tpu.vector_store %arg7[%c0_19, %c0_20], %36 {strides = array<i32>} : memref<64x256xf32, #tpu.memory_space<vmem>>, vector<64x256xf32>,
    %c0_i32_21 = arith.constant 0 : i32
    %38 = arith.cmpi eq, %arg1, %c0_i32_21 : i32
    %39 = arith.extui %38 : i1 to i32
    %c0_i32_22 = arith.constant 0 : i32
    %40 = arith.cmpi ne, %39, %c0_i32_22 : i32
    scf.if %40 {
      %c0_23 = arith.constant 0 : index
      %c0_24 = arith.constant 0 : index
      %41 = vector.load %arg7[%c0_23, %c0_24] : memref<64x256xf32, #tpu.memory_space<vmem>>, vector<64x256xf32>
      %c0_25 = arith.constant 0 : index
      %c0_26 = arith.constant 0 : index
      %42 = vector.load %arg5[%c0_25, %c0_26] : memref<64x256xf32, #tpu.memory_space<vmem>>, vector<64x256xf32>
      %c0_27 = arith.constant 0 : index
      %c0_28 = arith.constant 0 : index
      %43 = vector.load %arg8[%c0_27, %c0_28] : memref<64x1xf32, #tpu.memory_space<vmem>>, vector<64x1xf32>
      %44 = vector.broadcast %43 : vector<64x1xf32> to vector<64x256xf32>
      %45 = arith.mulf %42, %44 : vector<64x256xf32>
      %46 = arith.subf %41, %45 : vector<64x256xf32>
      %47 = arith.mulf %46, %46 : vector<64x256xf32>
      %cst_29 = arith.constant dense<0.000000e+00> : vector<64xf32>
      %48 = vector.multi_reduction <add>, %47, %cst_29 [1] : vector<64x256xf32> to vector<64xf32>
      %49 = vector.shape_cast %48 : vector<64xf32> to vector<64x1xf32>
      %cst_30 = arith.constant 1.000000e-24 : f32
      %50 = vector.broadcast %cst_30 : f32 to vector<64x1xf32>
      %51 = arith.maximumf %49, %50 : vector<64x1xf32>
      %52 = math.rsqrt %51 : vector<64x1xf32>
      %53 = vector.broadcast %52 : vector<64x1xf32> to vector<64x256xf32>
      %54 = arith.mulf %46, %53 : vector<64x256xf32>
      %55 = arith.mulf %54, %54 : vector<64x256xf32>
      %56 = vector.shape_cast %55 : vector<64x256xf32> to vector<1x64x256xf32>
      %cst_31 = arith.constant dense<0.000000e+00> : vector<1xf32>
      %57 = vector.multi_reduction <add>, %56, %cst_31 [1, 2] : vector<1x64x256xf32> to vector<1xf32>
      %58 = vector.shape_cast %57 : vector<1xf32> to vector<1x1x1xf32>
      %59 = vector.extract %58[0, 0, 0] : f32 from vector<1x1x1xf32>
      %cst_32 = arith.constant 1.000000e-24 : f32
      %60 = arith.maximumf %59, %cst_32 : f32
      %61 = math.rsqrt %60 : f32
      %62 = vector.broadcast %61 : f32 to vector<64x256xf32>
      %63 = arith.mulf %54, %62 : vector<64x256xf32>
      %c0_33 = arith.constant 0 : index
      %c0_34 = arith.constant 0 : index
      %c0_35 = arith.constant 0 : index
      %64 = vector.load %arg6[%c0_33, %c0_34, %c0_35] : memref<1x64x256xf32, #tpu.memory_space<vmem>>, vector<1x64x256xf32>
      %65 = vector.shape_cast %64 : vector<1x64x256xf32> to vector<64x256xf32>
      %66 = vector.shape_cast %63 : vector<64x256xf32> to vector<1x64x256xf32>
      tpu.vector_store %arg6[%c0_33, %c0_34, %c0_35], %66 {strides = array<i32>} : memref<1x64x256xf32, #tpu.memory_space<vmem>>, vector<1x64x256xf32>,
    } else {
    }
    return
  }
  func.func @transform_0(%arg0: i32, %arg1: i32) -> (i32, i32, i32) {
    %c0_i32 = arith.constant 0 : i32
    %c0_i32_0 = arith.constant 0 : i32
    return %arg0, %arg1, %c0_i32 : i32, i32, i32
  }
  func.func @transform_1(%arg0: i32, %arg1: i32) -> (i32, i32) {
    %c0_i32 = arith.constant 0 : i32
    %c0_i32_0 = arith.constant 0 : i32
    %c0_i32_1 = arith.constant 0 : i32
    return %c0_i32, %c0_i32_0 : i32, i32
  }
  func.func @transform_2(%arg0: i32, %arg1: i32) -> (i32, i32) {
    %c0_i32 = arith.constant 0 : i32
    %c0_i32_0 = arith.constant 0 : i32
    %c0_i32_1 = arith.constant 0 : i32
    return %c0_i32, %c0_i32_0 : i32, i32
  }
  func.func @transform_3(%arg0: i32, %arg1: i32) -> (i32, i32) {
    %c0_i32 = arith.constant 0 : i32
    %c0_i32_0 = arith.constant 0 : i32
    %c0_i32_1 = arith.constant 0 : i32
    return %c0_i32, %c0_i32_0 : i32, i32
  }
  func.func @transform_4(%arg0: i32, %arg1: i32) -> (i32, i32, i32) {
    %c0_i32 = arith.constant 0 : i32
    %c0_i32_0 = arith.constant 0 : i32
    %c0_i32_1 = arith.constant 0 : i32
    return %arg0, %c0_i32, %c0_i32_0 : i32, i32, i32
  }
}

</mosaic_0001>

<bundles_post_ra>
// kernel: mf_subnet1_forward.4
= control target key start
LH: loop header
LB: loop body
LE: loop exit
PB: predicated region body
PF: predicated region fallthrough
CT: control target
= control target key end

     0   :  { %s874_s15 = smov 0   ;;  %s876_s16 = smov 0   ;;  %s990_s0 = inlined_call_operand.vmem [shape: f32[2,128,64], index: 0, kind: input, shape index: {}]   ;;  %s991_s1 = inlined_call_operand.vmem [shape: f32[128,128], index: 1, kind: input, shape index: {}]   ;;  %s992_s2 = inlined_call_operand.vmem [shape: f32[1,128], index: 2, kind: input, shape index: {}]   ;;  %s993_s3 = inlined_call_operand.vmem [shape: bf16[2,64,128], index: 3, kind: output, shape index: {0}]   ;;  %s994_s4 = inlined_call_operand.vmem [shape: f32[2,1,2,128], index: 4, kind: output, shape index: {1}]  }
   0x1   :  { %s878_s17 = smov 0  }
   0x2 LB: > { %s27_s18 = sadd.s32 1, %s843_s16  ;;  %p635_p0 = scmp.ge.s32.totalorder %s847_s17, 1  ;;  %s847_s17 = sphi %s878_s17, %s15_s17   ;;  %s843_s16 = sphi %s876_s16, %s996_s16   ;;  %s839_s15 = sphi %s874_s15, %s995_s15  }
   0x3   : > { %p29_p1 = scmp.ge.s32.totalorder %s27_s18, 2  ;;  %p186_p2 = scmp.lt.s32.totalorder %s847_s17, 3 }
   0x5   : > { %s998_s18 = smov (%p29_p1, %s27_s18), 0  ;;  %p187_p3 = pnand %p635_p0, %p186_p2 }
   0x6   : > { %p226_p4 = scmp.lt.s32.totalorder (!%p187_p3), %s839_s15, 1  ;;  %v267_v0 = vld [vmem:[%s991_s1] sm:$0xff] (!%p187_p3)  ;;  %v268_v1 = vld [vmem:[%s991_s1 + $0x8] sm:$0xff] (!%p187_p3)  ;;  %v269_v2 = vld [vmem:[%s991_s1 + $0x10] sm:$0xff] (!%p187_p3) }
   0x7   : > { %190 = sbr.rel (%p187_p3) target bundleno = 409 (0x199), region = 32  ;;  %v753_v3 = vpack.c.bf16 (!%p187_p3), %v268_v1, %v267_v0  ;;  %v270_v4 = vld [vmem:[%s991_s1 + $0x18] sm:$0xff] (!%p187_p3)  ;;  %v271_v6 = vld [vmem:[%s991_s1 + $0x20] sm:$0xff] (!%p187_p3)  ;;  %v272_v7 = vld [vmem:[%s991_s1 + $0x28] sm:$0xff] (!%p187_p3) }
   0x8   : > { %v757_v5 = vpack.c.bf16 (!%p187_p3), %v270_v4, %v269_v2  ;;  %v761_v8 = vpack.c.bf16 (!%p187_p3), %v272_v7, %v271_v6  ;;  %v273_v10 = vld [vmem:[%s991_s1 + $0x30] sm:$0xff] (!%p187_p3)  ;;  %v274_v11 = vld [vmem:[%s991_s1 + $0x38] sm:$0xff] (!%p187_p3)  ;;  %v275_v14 = vld [vmem:[%s991_s1 + $0x40] sm:$0xff] (!%p187_p3) }
   0x9   : > { %754 = vmatprep.subr.bf16.mxu0 (!%p187_p3), %v753_v3  ;;  %785 = vmatprep.subr.bf16.mxu1 (!%p187_p3), %v753_v3  ;;  %v765_v13 = vpack.c.bf16 (!%p187_p3), %v274_v11, %v273_v10  ;;  %v276_v15 = vld [vmem:[%s991_s1 + $0x48] sm:$0xff] (!%p187_p3)  ;;  %v277_v18 = vld [vmem:[%s991_s1 + $0x50] sm:$0xff] (!%p187_p3)  ;;  %v278_v19 = vld [vmem:[%s991_s1 + $0x58] sm:$0xff] (!%p187_p3) }
   0xa   : > { %756 = vmatpush3.bf16.msra.mxu0 (!%p187_p3), %v753_v3  ;;  %793 = vmatpush3.bf16.msra.mxu1 (!%p187_p3), %v753_v3  ;;  %v769_v17 = vpack.c.bf16 (!%p187_p3), %v276_v15, %v275_v14  ;;  %v773_v21 = vpack.c.bf16 (!%p187_p3), %v278_v19, %v277_v18  ;;  %v279_v22 = vld [vmem:[%s991_s1 + $0x60] sm:$0xff] (!%p187_p3)  ;;  %v280_v23 = vld [vmem:[%s991_s1 + $0x68] sm:$0xff] (!%p187_p3)  ;;  %v281_v26 = vld [vmem:[%s991_s1 + $0x70] sm:$0xff] (!%p187_p3) }
   0xb   : > { %758 = vmatprep.subr.bf16.mxu0 (!%p187_p3), %v757_v5  ;;  %786 = vmatprep.subr.bf16.mxu1 (!%p187_p3), %v757_v5  ;;  %v777_v25 = vpack.c.bf16 (!%p187_p3), %v280_v23, %v279_v22  ;;  %v282_v27 = vld [vmem:[%s991_s1 + $0x78] sm:$0xff] (!%p187_p3)  ;;  %v641_v48 = vld [vmem:[%s992_s2] ss:$0 sm:$0xff] (!%p187_p3) }
   0xc   : > { %v781_v29 = vpack.c.bf16 (!%p187_p3), %v282_v27, %v281_v26 }
   0xe   : > { %s1000_s15 = smov (!%p226_p4, %s839_s15), 1  ;;  %760 = vmatpush3.bf16.msra.mxu0 %v757_v5  ;;  %794 = vmatpush3.bf16.msra.mxu1 %v757_v5 }
   0xf   : > { %s652_s5 = sshll.u32 %s1000_s15, 7  ;;  %762 = vmatprep.subr.bf16.mxu0 %v761_v8  ;;  %787 = vmatprep.subr.bf16.mxu1 %v761_v8  ;;  %s653_s9 = sshll.u32 %s1000_s15, 5 }
  0x10   : > { %s916_s8 = scalar_lea.vmem %s990_s0, %s652_s5  ;;  %s971_s12 = scalar_lea.vmem %s993_s3, %s653_s9 }
  0x11   : > { %v251_v9 = vld [vmem:[%s916_s8] sm:$0xff]  ;;  %v252_v12 = vld [vmem:[%s916_s8 + $0x8] sm:$0xff]  ;;  %v253_v16 = vld [vmem:[%s916_s8 + $0x10] sm:$0xff]  ;;  %s640_s13 = sshll.u32 %s1000_s15, 1 }
  0x12   : > { %290 = vxpose.xlu0.b32.start [1/16] (narrow) %v251_v9, 64  ;;  %764 = vmatpush3.bf16.msra.mxu0 %v761_v8  ;;  %v254_v20 = vld [vmem:[%s916_s8 + $0x18] sm:$0xff]  ;;  %v255_v24 = vld [vmem:[%s916_s8 + $0x20] sm:$0xff]  ;;  %v256_v28 = vld [vmem:[%s916_s8 + $0x28] sm:$0xff]  ;;  %s250_s20 = scalar_lea.vmem %s994_s4, %s640_s13 }
  0x13   : > { %795 = vmatpush3.bf16.msra.mxu1 %v761_v8  ;;  %766 = vmatprep.subr.bf16.mxu0 %v765_v13  ;;  %v257_v30 = vld [vmem:[%s916_s8 + $0x30] sm:$0xff]  ;;  %v258_v31 = vld [vmem:[%s916_s8 + $0x38] sm:$0xff]  ;;  %v259_v32 = vld [vmem:[%s916_s8 + $0x40] sm:$0xff] }
  0x14   : > { %788 = vmatprep.subr.bf16.mxu1 %v765_v13  ;;  %v260_v33 = vld [vmem:[%s916_s8 + $0x48] sm:$0xff]  ;;  %v261_v34 = vld [vmem:[%s916_s8 + $0x50] sm:$0xff]  ;;  %v262_v35 = vld [vmem:[%s916_s8 + $0x58] sm:$0xff] }
  0x15   : > { %v263_v36 = vld [vmem:[%s916_s8 + $0x60] sm:$0xff]  ;;  %v264_v37 = vld [vmem:[%s916_s8 + $0x68] sm:$0xff]  ;;  %v265_v38 = vld [vmem:[%s916_s8 + $0x70] sm:$0xff] }
  0x16   : > { %291 = vxpose.xlu0.b32.cont [2/16] (narrow) %v252_v12, 64  ;;  %768 = vmatpush3.bf16.msra.mxu0 %v765_v13  ;;  %v266_v39 = vld [vmem:[%s916_s8 + $0x78] sm:$0xff] }
  0x17   : > { %796 = vmatpush3.bf16.msra.mxu1 %v765_v13  ;;  %770 = vmatprep.subr.bf16.mxu0 %v769_v17 }
  0x18   : > { %789 = vmatprep.subr.bf16.mxu1 %v769_v17 }
  0x1a   : > { %292 = vxpose.xlu0.b32.cont [3/16] (narrow) %v253_v16, 64  ;;  %772 = vmatpush3.bf16.msra.mxu0 %v769_v17 }
  0x1b   : > { %797 = vmatpush3.bf16.msra.mxu1 %v769_v17  ;;  %774 = vmatprep.subr.bf16.mxu0 %v773_v21 }
  0x1c   : > { %790 = vmatprep.subr.bf16.mxu1 %v773_v21 }
  0x1e   : > { %293 = vxpose.xlu0.b32.cont [4/16] (narrow) %v254_v20, 64  ;;  %776 = vmatpush3.bf16.msra.mxu0 %v773_v21 }
  0x1f   : > { %798 = vmatpush3.bf16.msra.mxu1 %v773_v21  ;;  %778 = vmatprep.subr.bf16.mxu0 %v777_v25 }
  0x20   : > { %791 = vmatprep.subr.bf16.mxu1 %v777_v25 }
  0x22   : > { %294 = vxpose.xlu0.b32.cont [5/16] (narrow) %v255_v24, 64  ;;  %780 = vmatpush3.bf16.msra.mxu0 %v777_v25 }
  0x23   : > { %799 = vmatpush3.bf16.msra.mxu1 %v777_v25  ;;  %782 = vmatprep.subr.bf16.mxu0 %v781_v29 }
  0x24   : > { %792 = vmatprep.subr.bf16.mxu1 %v781_v29 }
  0x26   : > { %295 = vxpose.xlu0.b32.cont [6/16] (narrow) %v256_v28, 64  ;;  %784 = vmatpush3.bf16.msra.mxu0 %v781_v29 }
  0x27   : > { %800 = vmatpush3.bf16.msra.mxu1 %v781_v29 }
  0x2a   : > { %296 = vxpose.xlu0.b32.cont [7/16] (narrow) %v257_v30, 64 }
  0x2e   : > { %297 = vxpose.xlu0.b32.cont [8/16] (narrow) %v258_v31, 64 }
  0x32   : > { %298 = vxpose.xlu0.b32.cont [9/16] (narrow) %v259_v32, 64 }
  0x36   : > { %299 = vxpose.xlu0.b32.cont [10/16] (narrow) %v260_v33, 64 }
  0x3a   : > { %300 = vxpose.xlu0.b32.cont [11/16] (narrow) %v261_v34, 64 }
  0x3e   : > { %301 = vxpose.xlu0.b32.cont [12/16] (narrow) %v262_v35, 64 }
  0x42   : > { %302 = vxpose.xlu0.b32.cont [13/16] (narrow) %v263_v36, 64 }
  0x46   : > { %303 = vxpose.xlu0.b32.cont [14/16] (narrow) %v264_v37, 64 }
  0x4a   : > { %304 = vxpose.xlu0.b32.cont [15/16] (narrow) %v265_v38, 64 }
  0x4e   : > { %305 = vxpose.xlu0.b32.end [16/16] (narrow) %v266_v39, 64 }
  0x92   : > { %v306_v40 = vpop.trf.xlu0 }
  0x93   : > { %741 = vmatprep.mubr.f32.mxu0 %v306_v40 }
  0x96   : > { %v307_v41 = vpop.trf.xlu0 }
  0x97   : > { %742 = vmatmul.mubr.f32.vlgmr.msra.gmra.mrb[0].mxu0 %v307_v41 }
  0x9a   : > { %v308_v42 = vpop.trf.xlu0 }
  0x9b   : > { %744 = vmatprep.mubr.f32.mxu0 %v308_v42 }
  0x9e   : > { %v309_v43 = vpop.trf.xlu0 }
  0x9f   : > { %745 = vmatmul.mubr.f32.gmra.mrb[2].mxu0 %v309_v43 }
  0xa2   : > { %v310_v44 = vpop.trf.xlu0 }
  0xa3   : > { %747 = vmatprep.mubr.f32.mxu1 %v310_v44 }
  0xa6   : > { %v311_v45 = vpop.trf.xlu0 }
  0xa7   : > { %748 = vmatmul.mubr.f32.vlgmr.msra.gmra.mrb[0].mxu1 %v311_v45 }
  0xaa   : > { %v312_v46 = vpop.trf.xlu0 }
  0xab   : > { %750 = vmatprep.mubr.f32.mxu1 %v312_v46 }
  0xae   : > { %v313_v47 = vpop.trf.xlu0 }
  0xaf   : > { %751 = vmatmul.mubr.f32.gmra.mrb[2].mxu1 %v313_v47 }
 0x16a   : > { %v743_v49 = vpop.f32.mrb[0].mxu0 }
 0x16b   : > { %v394_v50 = vadd.f32 %v743_v49, %v641_v48  ;;  %v388_v51 = vpop.f32.mrb[1].mxu0 }
 0x16c   : > { %v389_v52 = vadd.f32 %v641_v48, %v388_v51 }
 0x16d   : > { %v482_v53 = vmul.f32 %v394_v50, %v394_v50 }
 0x16e   : > { %v665_v54 = vpack.c.bf16 %v394_v50, %v389_v52  ;;  %v467_v55 = vadd.f32 %v394_v50, %v389_v52  ;;  %v481_v56 = vmul.f32 %v389_v52, %v389_v52 }
 0x170   : > { %666 = vst [vmem:[%s971_s12] sm:$0xff] %v665_v54   ;;  %v489_v57 = vadd.f32 %v482_v53, %v481_v56 }
 0x172   : > { %v746_v58 = vpop.f32.mrb[2].mxu0 }
 0x173   : > { %v404_v59 = vadd.f32 %v746_v58, %v641_v48  ;;  %v398_v60 = vpop.f32.mrb[3].mxu0 }
 0x174   : > { %v399_v61 = vadd.f32 %v641_v48, %v398_v60 }
 0x175   : > { %v484_v1 = vmul.f32 %v404_v59, %v404_v59 }
 0x176   : > { %v670_v62 = vpack.c.bf16 %v404_v59, %v399_v61  ;;  %v468_v63 = vadd.f32 %v467_v55, %v399_v61  ;;  %v483_v0 = vmul.f32 %v399_v61, %v399_v61 }
 0x178   : > { %682 = vst [vmem:[%s971_s12 + $0x8] sm:$0xff] %v670_v62   ;;  %v490_v2 = vadd.f32 %v489_v57, %v483_v0  ;;  %v469_v3 = vadd.f32 %v468_v63, %v404_v59 }
 0x17a   : > { %v749_v4 = vpop.f32.mrb[0].mxu1  ;;  %v491_v5 = vadd.f32 %v490_v2, %v484_v1 }
 0x17b   : > { %v414_v6 = vadd.f32 %v749_v4, %v641_v48  ;;  %v408_v7 = vpop.f32.mrb[1].mxu1 }
 0x17c   : > { %v409_v8 = vadd.f32 %v641_v48, %v408_v7 }
 0x17d   : > { %v486_v12 = vmul.f32 %v414_v6, %v414_v6 }
 0x17e   : > { %v675_v9 = vpack.c.bf16 %v414_v6, %v409_v8  ;;  %v470_v10 = vadd.f32 %v469_v3, %v409_v8  ;;  %v485_v11 = vmul.f32 %v409_v8, %v409_v8 }
 0x180   : > { %683 = vst [vmem:[%s971_s12 + $0x10] sm:$0xff] %v675_v9   ;;  %v492_v13 = vadd.f32 %v491_v5, %v485_v11  ;;  %v471_v14 = vadd.f32 %v470_v10, %v414_v6 }
 0x182   : > { %v752_v15 = vpop.f32.mrb[2].mxu1  ;;  %v493_v16 = vadd.f32 %v492_v13, %v486_v12 }
 0x183   : > { %v424_v17 = vadd.f32 %v752_v15, %v641_v48  ;;  %v418_v18 = vpop.f32.mrb[3].mxu1 }
 0x184   : > { %v419_v19 = vadd.f32 %v641_v48, %v418_v18 }
 0x185   : > { %v488_v23 = vmul.f32 %v424_v17, %v424_v17 }
 0x186   : > { %v680_v20 = vpack.c.bf16 %v424_v17, %v419_v19  ;;  %v472_v21 = vadd.f32 %v471_v14, %v419_v19  ;;  %v487_v22 = vmul.f32 %v419_v19, %v419_v19 }
 0x188   : > { %684 = vst [vmem:[%s971_s12 + $0x18] sm:$0xff] %v680_v20   ;;  %v473_v24 = vadd.f32 %v472_v21, %v424_v17  ;;  %v494_v25 = vadd.f32 %v493_v16, %v487_v22 }
 0x18a   : > { %v474_v26 = vrot.slane %v473_v24, 4  ;;  %v495_v27 = vadd.f32 %v494_v25, %v488_v23 }
 0x18c   : > { %v475_v28 = vadd.f32 %v474_v26, %v473_v24  ;;  %v496_v29 = vrot.slane %v495_v27, 4 }
 0x18e   : > { %v476_v30 = vrot.slane %v475_v28, 2  ;;  %v497_v31 = vadd.f32 %v496_v29, %v495_v27 }
 0x190   : > { %v477_v32 = vadd.f32 %v476_v30, %v475_v28  ;;  %v498_v33 = vrot.slane %v497_v31, 2 }
 0x192   : > { %v478_v34 = vrot.slane %v477_v32, 1  ;;  %v499_v35 = vadd.f32 %v498_v33, %v497_v31 }
 0x194   : > { %v479_v36 = vadd.f32 %v478_v34, %v477_v32  ;;  %v500_v37 = vrot.slane %v499_v35, 1 }
 0x196   : > { %480 = vst [vmem:[%s250_s20] sm:$0x1] %v479_v36  ;;  %v501_v38 = vadd.f32 %v500_v37, %v499_v35 }
 0x198   : > { %502 = vst [vmem:[%s250_s20 + $0x1] sm:$0x1] %v501_v38 }
 0x199 PF: > { %s15_s17 = sadd.s32 1, %s847_s17   ;;  %s995_s15 = smov %s843_s16 }
 0x19a   : > { %p12_p5 = scmp.ge.s32.totalorder %s15_s17, 4   ;;  %s996_s16 = smov %s998_s18 }
 0x19c   :  { %14 = sbr.rel (!%p12_p5) target bundleno = 2 (0x2), region = 74 }

// kernel: mf_subnet1_forward.5
= control target key start
LH: loop header
LB: loop body
LE: loop exit
PB: predicated region body
PF: predicated region fallthrough
CT: control target
= control target key end

     0   :  { %s1526_s21 = smov 0   ;;  %s1528_s22 = smov 0   ;;  %s2007_s0 = inlined_call_operand.vmem [shape: f32[2,256,16], index: 0, kind: input, shape index: {}]   ;;  %s2008_s1 = inlined_call_operand.vmem [shape: f32[256,128], index: 1, kind: input, shape index: {}]   ;;  %s2009_s2 = inlined_call_operand.vmem [shape: f32[1,128], index: 2, kind: input, shape index: {}]   ;;  %s2010_s3 = inlined_call_operand.vmem [shape: f32[128,1], index: 3, kind: input, shape index: {}]   ;;  %s2011_s4 = inlined_call_operand.vmem [shape: bf16[2,16,128], index: 4, kind: output, shape index: {0}]   ;;  %s2012_s5 = inlined_call_operand.vmem [shape: f32[2,128,16], index: 5, kind: output, shape index: {1}]   ;;  %s2013_s6 = inlined_call_operand.vmem [shape: f32[2,1,2,128], index: 6, kind: output, shape index: {2}]  }
   0x1   :  { %s1530_s23 = smov 0  }
   0x2 LB: > { %s29_s24 = sadd.s32 1, %s1484_s22  ;;  %p1064_p0 = scmp.ge.s32.totalorder %s1488_s23, 1  ;;  %s1488_s23 = sphi %s1530_s23, %s17_s23   ;;  %s1484_s22 = sphi %s1528_s22, %s2015_s22   ;;  %s1480_s21 = sphi %s1526_s21, %s2014_s21  }
   0x3   : > { %p31_p1 = scmp.ge.s32.totalorder %s29_s24, 2  ;;  %p240_p2 = scmp.lt.s32.totalorder %s1488_s23, 3 }
   0x5   : > { %s2017_s24 = smov (%p31_p1, %s29_s24), 0  ;;  %p241_p3 = pnand %p1064_p0, %p240_p2 }
   0x6   : > { %v357_v0 = vld [vmem:[%s2008_s1] sm:$0xff] (!%p241_p3)  ;;  %v358_v2 = vld [vmem:[%s2008_s1 + $0x8] sm:$0xff] (!%p241_p3)  ;;  %p292_p4 = scmp.lt.s32.totalorder (!%p241_p3), %s1480_s21, 1  ;;  %v375_v6 = vld [vmem:[%s2008_s1 + $0x90] sm:$0xff] (!%p241_p3)  ;;  %vm850_vm0 = vcmask (!%p241_p3), 130048  }
   0x7   : > { %244 = sbr.rel (%p241_p3) target bundleno = 421 (0x1a5), region = 36  ;;  %v373_v1 = vld [vmem:[%s2008_s1 + $0x80] sm:$0xff] (!%p241_p3)  ;;  %v374_v4 = vld [vmem:[%s2008_s1 + $0x88] sm:$0xff] (!%p241_p3)  ;;  %v1207_v5 = vpack.c.bf16 (!%p241_p3), %v358_v2, %v357_v0  ;;  %v376_v7 = vld [vmem:[%s2008_s1 + $0x98] sm:$0xff] (!%p241_p3) }
   0x8   : > { %v1310_v3 = vpack.i.bf16 (!%p241_p3), %v357_v0, %v373_v1  ;;  %v1205_v8 = vpack.c.bf16 (!%p241_p3), %v374_v4, %v373_v1  ;;  %v1312_v9 = vpack.i.bf16 (!%p241_p3), %v358_v2, %v374_v4  ;;  %v1209_v10 = vpack.c.bf16 (!%p241_p3), %v376_v7, %v375_v6  ;;  %v359_v11 = vld [vmem:[%s2008_s1 + $0x10] sm:$0xff] (!%p241_p3)  ;;  %v360_v12 = vld [vmem:[%s2008_s1 + $0x18] sm:$0xff] (!%p241_p3)  ;;  %v1579_v14 = vld [vmem:[%s2008_s1 + $0xa0] sm:$0xff] (!%p241_p3) }
   0x9   : > { %v1211_v13 = vpack.c.bf16 (!%p241_p3), %v360_v12, %v359_v11  ;;  %v1584_v15 = vld [vmem:[%s2008_s1 + $0xa8] sm:$0xff] (!%p241_p3)  ;;  %v1314_v21 = vpack.i.bf16 (!%p241_p3), %v359_v11, %v375_v6  ;;  %v361_v23 = vld [vmem:[%s2008_s1 + $0x20] sm:$0xff] (!%p241_p3)  ;;  %v1608_v29 = vld [vmem:[%s2008_s1 + $0xb0] sm:$0xff] (!%p241_p3)  ;;  %v1316_v35 = vpack.i.bf16 (!%p241_p3), %v360_v12, %v376_v7 }
   0xa   : > { %1311 = vxpose.xlu0.b32.start [1/16] (!%p241_p3), %v1310_v3, 128  ;;  %1206 = vmatprep.subr.bf16.mxu0 (!%p241_p3), %v1205_v8  ;;  %v1213_v19 = vpack.c.bf16 (!%p241_p3), %v1584_v15, %v1579_v14  ;;  %v1598_v24 = vld [vmem:[%s2008_s1 + $0x28] sm:$0xff] (!%p241_p3)  ;;  %v1613_v30 = vld [vmem:[%s2008_s1 + $0xb8] sm:$0xff] (!%p241_p3)  ;;  %v1629_v39 = vld [vmem:[%s2008_s1 + $0x30] sm:$0xff] (!%p241_p3)  ;;  %v1318_v48 = vpack.i.bf16 (!%p241_p3), %v361_v23, %v1579_v14 }
   0xb   : > { %1208 = vmatpush3.bf16.msra.mxu0 (!%p241_p3), %v1207_v5  ;;  %v1215_v28 = vpack.c.bf16 (!%p241_p3), %v1598_v24, %v361_v23  ;;  %v1217_v34 = vpack.c.bf16 (!%p241_p3), %v1613_v30, %v1608_v29  ;;  %v1639_v43 = vld [vmem:[%s2008_s1 + $0x38] sm:$0xff] (!%p241_p3)  ;;  %v1649_v46 = vld [vmem:[%s2008_s1 + $0xc0] sm:$0xff] (!%p241_p3)  ;;  %v1654_v47 = vld [vmem:[%s2008_s1 + $0xc8] sm:$0xff] (!%p241_p3)  ;;  %v1320_v62 = vpack.i.bf16 (!%p241_p3), %v1598_v24, %v1584_v15  ;;  %v1322_v12 = vpack.i.bf16 (!%p241_p3), %v1629_v39, %v1608_v29 }
   0xc   : > { %1210 = vmatprep.subr.bf16.mxu0 (!%p241_p3), %v1209_v10  ;;  %v1219_v45 = vpack.c.bf16 (!%p241_p3), %v1639_v43, %v1629_v39  ;;  %v1221_v51 = vpack.c.bf16 (!%p241_p3), %v1654_v47, %v1649_v46  ;;  %v1677_v56 = vld [vmem:[%s2008_s1 + $0x40] sm:$0xff] (!%p241_p3)  ;;  %v1686_v58 = vld [vmem:[%s2008_s1 + $0x48] sm:$0xff] (!%p241_p3)  ;;  %v1693_v60 = vld [vmem:[%s2008_s1 + $0xd0] sm:$0xff] (!%p241_p3) }
   0xd   : > { %v1223_v59 = vpack.c.bf16 (!%p241_p3), %v1686_v58, %v1677_v56  ;;  %v1698_v61 = vld [vmem:[%s2008_s1 + $0xd8] sm:$0xff] (!%p241_p3)  ;;  %v1725_v6 = vld [vmem:[%s2008_s1 + $0x50] sm:$0xff] (!%p241_p3)  ;;  %v1742_v10 = vld [vmem:[%s2008_s1 + $0xe0] sm:$0xff] (!%p241_p3) }
   0xe   : > { %s2019_s21 = smov (!%p292_p4, %s1480_s21), 1  ;;  %1313 = vxpose.xlu0.b32.cont [2/16] %v1312_v9, 128  ;;  %v1225_v1 = vpack.c.bf16 %v1698_v61, %v1693_v60  ;;  %v1734_v8 = vld [vmem:[%s2008_s1 + $0x58] sm:$0xff]  ;;  %v1747_v11 = vld [vmem:[%s2008_s1 + $0xe8] sm:$0xff]  ;;  %v1792_v24 = vld [vmem:[%s2008_s1 + $0xf0] sm:$0xff] }
   0xf   : > { %s1077_s13 = sshll.u32 %s2019_s21, 8  ;;  %1212 = vmatpush3.bf16.msra.mxu0 %v1211_v13  ;;  %v1227_v9 = vpack.c.bf16 %v1734_v8, %v1725_v6  ;;  %v1229_v15 = vpack.c.bf16 %v1747_v11, %v1742_v10  ;;  %s1078_s29 = sshll.u32 %s2019_s21, 3 }
  0x10   : > { %s1574_s20 = scalar_lea.vmem %s2007_s0, %s1077_s13  ;;  %1214 = vmatprep.subr.bf16.mxu0 %v1213_v19  ;;  %s308_s8 = scalar_lea.vmem %s2011_s4, %s1078_s29 }
  0x11   : > { %v325_v16 = vld [vmem:[%s1574_s20] sm:$0xff]  ;;  %v326_v18 = vld [vmem:[%s1574_s20 + $0x8] sm:$0xff]  ;;  %v327_v31 = vld [vmem:[%s1574_s20 + $0x10] sm:$0xff]  ;;  %s1079_s9 = sshll.u32 %s2019_s21, 7  ;;  %s1071_s12 = sshll.u32 %s2019_s21, 1 }
  0x12   : > { %v341_v17 = vld [vmem:[%s1574_s20 + $0x80] sm:$0xff]  ;;  %v342_v22 = vld [vmem:[%s1574_s20 + $0x88] sm:$0xff]  ;;  %v1602_v26 = vpack.c.bf16 %v326_v18, %v325_v16  ;;  %v343_v32 = vld [vmem:[%s1574_s20 + $0x90] sm:$0xff]  ;;  %1315 = vxpose.xlu0.b32.cont [3/16] %v1314_v21, 128  ;;  %s1957_s11 = scalar_lea.vmem %s2012_s5, %s1079_s9  ;;  %s324_s15 = scalar_lea.vmem %s2013_s6, %s1071_s12 }
  0x13   : > { %v1422_v20 = vpack.i.bf16 %v325_v16, %v341_v17  ;;  %v1600_v25 = vpack.c.bf16 %v342_v22, %v341_v17  ;;  %v1424_v27 = vpack.i.bf16 %v326_v18, %v342_v22  ;;  %v344_v33 = vld [vmem:[%s1574_s20 + $0x98] sm:$0xff]  ;;  %v1426_v40 = vpack.i.bf16 %v327_v31, %v343_v32  ;;  %v345_v41 = vld [vmem:[%s1574_s20 + $0xa0] sm:$0xff]  ;;  %v1634_v42 = vld [vmem:[%s1574_s20 + $0xa8] sm:$0xff]  ;;  %1216 = vmatpush3.bf16.msra.mxu0 %v1215_v28 }
  0x14   : > { %v328_v36 = vld [vmem:[%s1574_s20 + $0x18] sm:$0xff]  ;;  %v1621_v37 = vpack.c.bf16 %v344_v33, %v343_v32  ;;  %v1642_v44 = vpack.c.bf16 %v1634_v42, %v345_v41  ;;  %1218 = vmatprep.subr.bf16.mxu0 %v1217_v34  ;;  %v329_v49 = vld [vmem:[%s1574_s20 + $0x20] sm:$0xff]  ;;  %v1659_v50 = vld [vmem:[%s1574_s20 + $0x28] sm:$0xff]  ;;  %v1324_v28 = vpack.i.bf16 %v1639_v43, %v1613_v30 }
  0x15   : > { %1423 = vxpose.xlu1.b32.start [1/16] (narrow) %v1422_v20, 16  ;;  %1269 = vmatprep.subr.bf16.mxu1 %v1600_v25  ;;  %v1624_v38 = vpack.c.bf16 %v328_v36, %v327_v31  ;;  %v1665_v52 = vpack.c.bf16 %v1659_v50, %v329_v49  ;;  %v1668_v53 = vld [vmem:[%s1574_s20 + $0xb0] sm:$0xff]  ;;  %v1671_v54 = vld [vmem:[%s1574_s20 + $0xb8] sm:$0xff]  ;;  %v1428_v55 = vpack.i.bf16 %v328_v36, %v344_v33  ;;  %v1716_v3 = vld [vmem:[%s1574_s20 + $0xc0] sm:$0xff] }
  0x16   : > { %1277 = vmatpush3.bf16.msra.mxu1 %v1602_v26  ;;  %1317 = vxpose.xlu0.b32.cont [4/16] %v1316_v35, 128  ;;  %v1681_v57 = vpack.c.bf16 %v1671_v54, %v1668_v53  ;;  %v1704_v63 = vld [vmem:[%s1574_s20 + $0x30] sm:$0xff]  ;;  %v1707_v0 = vld [vmem:[%s1574_s20 + $0x38] sm:$0xff]  ;;  %v1719_v4 = vld [vmem:[%s1574_s20 + $0xc8] sm:$0xff]  ;;  %v1430_v5 = vpack.i.bf16 %v329_v49, %v345_v41  ;;  %v1432_v19 = vpack.i.bf16 %v1659_v50, %v1634_v42 }
  0x17   : > { %1270 = vmatprep.subr.bf16.mxu1 %v1621_v37  ;;  %1220 = vmatpush3.bf16.msra.mxu0 %v1219_v45  ;;  %v1713_v2 = vpack.c.bf16 %v1707_v0, %v1704_v63  ;;  %v1729_v7 = vpack.c.bf16 %v1719_v4, %v1716_v3  ;;  %v1752_v13 = vld [vmem:[%s1574_s20 + $0x40] sm:$0xff]  ;;  %v1755_v14 = vld [vmem:[%s1574_s20 + $0x48] sm:$0xff]  ;;  %v1764_v17 = vld [vmem:[%s1574_s20 + $0xd0] sm:$0xff]  ;;  %v1434_v30 = vpack.i.bf16 %v1704_v63, %v1668_v53 }
  0x18   : > { %1222 = vmatprep.subr.bf16.mxu0 %v1221_v51  ;;  %v1761_v16 = vpack.c.bf16 %v1755_v14, %v1752_v13  ;;  %v1767_v18 = vld [vmem:[%s1574_s20 + $0xd8] sm:$0xff]  ;;  %v1775_v20 = vld [vmem:[%s2008_s1 + $0x60] sm:$0xff]  ;;  %v1784_v22 = vld [vmem:[%s2008_s1 + $0x68] sm:$0xff]  ;;  %v1326_v42 = vpack.i.bf16 %v1677_v56, %v1649_v46  ;;  %v1436_v51 = vpack.i.bf16 %v1707_v0, %v1671_v54  ;;  %v1328_v46 = vpack.i.bf16 %v1686_v58, %v1654_v47 }
  0x19   : > { %1425 = vxpose.xlu1.b32.cont [2/16] (narrow) %v1424_v27, 16  ;;  %v1779_v21 = vpack.c.bf16 %v1767_v18, %v1764_v17  ;;  %v1231_v23 = vpack.c.bf16 %v1784_v22, %v1775_v20  ;;  %v1797_v27 = vld [vmem:[%s2008_s1 + $0xf8] sm:$0xff]  ;;  %v335_v29 = vld [vmem:[%s1574_s20 + $0x50] sm:$0xff]  ;;  %v353_v34 = vld [vmem:[%s1574_s20 + $0xe0] sm:$0xff]  ;;  %v1438_v54 = vpack.i.bf16 %v1752_v13, %v1716_v3  ;;  %v1332_v47 = vpack.i.bf16 %v1734_v8, %v1698_v61 }
  0x1a   : > { %1278 = vmatpush3.bf16.msra.mxu1 %v1624_v38  ;;  %1319 = vxpose.xlu0.b32.cont [5/16] %v1318_v48, 128  ;;  %v336_v31 = vld [vmem:[%s1574_s20 + $0x58] sm:$0xff]  ;;  %v1233_v32 = vpack.c.bf16 %v1797_v27, %v1792_v24  ;;  %v354_v35 = vld [vmem:[%s1574_s20 + $0xe8] sm:$0xff]  ;;  %v371_v36 = vld [vmem:[%s2008_s1 + $0x70] sm:$0xff]  ;;  %v1442_v58 = vpack.i.bf16 %v335_v29, %v1764_v17  ;;  %v1334_v63 = vpack.i.bf16 %v1775_v20, %v1742_v10 }
  0x1b   : > { %1271 = vmatprep.subr.bf16.mxu1 %v1642_v44  ;;  %1224 = vmatpush3.bf16.msra.mxu0 %v1223_v59  ;;  %v1805_v33 = vpack.c.bf16 %v336_v31, %v335_v29  ;;  %v1815_v39 = vpack.c.bf16 %v354_v35, %v353_v34  ;;  %v337_v43 = vld [vmem:[%s1574_s20 + $0x60] sm:$0xff]  ;;  %v338_v45 = vld [vmem:[%s1574_s20 + $0x68] sm:$0xff]  ;;  %v355_v49 = vld [vmem:[%s1574_s20 + $0xf0] sm:$0xff]  ;;  %v1336_v0 = vpack.i.bf16 %v1784_v22, %v1747_v11 }
  0x1c   : > { %1226 = vmatprep.subr.bf16.mxu0 %v1225_v1  ;;  %v1825_v48 = vpack.c.bf16 %v338_v45, %v337_v43  ;;  %v356_v50 = vld [vmem:[%s1574_s20 + $0xf8] sm:$0xff]  ;;  %v1446_v1 = vpack.i.bf16 %v337_v43, %v353_v34  ;;  %v1338_v3 = vpack.i.bf16 %v371_v36, %v1792_v24  ;;  %v1448_v61 = vpack.i.bf16 %v338_v45, %v354_v35  ;;  %v546_v8 = vld [vmem:[%s2010_s3 + $0x8] sm:$0xff]  ;;  %v547_v10 = vld [vmem:[%s2010_s3 + $0x10] sm:$0xff] }
  0x1d   : > { %1427 = vxpose.xlu1.b32.cont [3/16] (narrow) %v1426_v40, 16  ;;  %v372_v40 = vld [vmem:[%s2008_s1 + $0x78] sm:$0xff]  ;;  %v1832_v53 = vpack.c.bf16 %v356_v50, %v355_v49  ;;  %v545_v11 = vld [vmem:[%s2010_s3] sm:$0xff]  ;;  %v550_v13 = vld [vmem:[%s2010_s3 + $0x28] sm:$0xff] }
  0x1e   : > { %1279 = vmatpush3.bf16.msra.mxu1 %v1665_v52  ;;  %1321 = vxpose.xlu0.b32.cont [6/16] %v1320_v62, 128  ;;  %v1235_v41 = vpack.c.bf16 %v372_v40, %v371_v36  ;;  %v340_v56 = vld [vmem:[%s1574_s20 + $0x78] sm:$0xff]  ;;  %v1330_v62 = vpack.i.bf16 %v1725_v6, %v1693_v60  ;;  %v1444_v60 = vpack.i.bf16 %v336_v31, %v1767_v18  ;;  %v551_v17 = vld [vmem:[%s2010_s3 + $0x30] sm:$0xff]  ;;  %v554_v18 = vld [vmem:[%s2010_s3 + $0x48] sm:$0xff] }
  0x1f   : > { %1272 = vmatprep.subr.bf16.mxu1 %v1681_v57  ;;  %1228 = vmatpush3.bf16.msra.mxu0 %v1227_v9  ;;  %v1452_v6 = vpack.i.bf16 %v340_v56, %v356_v50  ;;  %v1490_v9 = vmov 0   ;;  %v556_v20 = vld [vmem:[%s2010_s3 + $0x58] sm:$0xff]  ;;  %v555_v22 = vld [vmem:[%s2010_s3 + $0x50] sm:$0xff]  ;;  %v557_v24 = vld [vmem:[%s2010_s3 + $0x60] sm:$0xff] }
  0x20   : > { %1230 = vmatprep.subr.bf16.mxu0 %v1229_v15  ;;  %v552_v15 = vld [vmem:[%s2010_s3 + $0x38] sm:$0xff] }
  0x21   : > { %1429 = vxpose.xlu1.b32.cont [4/16] (narrow) %v1428_v55, 16  ;;  %v339_v55 = vld [vmem:[%s1574_s20 + $0x70] sm:$0xff] }
  0x22   : > { %1280 = vmatpush3.bf16.msra.mxu1 %v1713_v2  ;;  %1323 = vxpose.xlu0.b32.cont [7/16] %v1322_v12, 128  ;;  %v1840_v59 = vpack.c.bf16 %v340_v56, %v339_v55  ;;  %v548_v12 = vld [vmem:[%s2010_s3 + $0x18] sm:$0xff] }
  0x23   : > { %1273 = vmatprep.subr.bf16.mxu1 %v1729_v7  ;;  %1232 = vmatpush3.bf16.msra.mxu0 %v1231_v23  ;;  %v558_v23 = vld [vmem:[%s2010_s3 + $0x68] sm:$0xff] }
  0x24   : > { %1234 = vmatprep.subr.bf16.mxu0 %v1233_v32 }
  0x25   : > { %1431 = vxpose.xlu1.b32.cont [5/16] (narrow) %v1430_v5, 16  ;;  %v1450_v5 = vpack.i.bf16 %v339_v55, %v355_v49 }
  0x26   : > { %1281 = vmatpush3.bf16.msra.mxu1 %v1761_v16  ;;  %1325 = vxpose.xlu0.b32.cont [8/16] %v1324_v28, 128  ;;  %v559_v28 = vld [vmem:[%s2010_s3 + $0x70] sm:$0xff] }
  0x27   : > { %1274 = vmatprep.subr.bf16.mxu1 %v1779_v21  ;;  %1236 = vmatpush3.bf16.msra.mxu0 %v1235_v41 }
  0x28   : > { %1238 = vmatprep.subr.bf16.mxu0 %v1600_v25  ;;  %v1440_v25 = vpack.i.bf16 %v1755_v14, %v1719_v4  ;;  %v1340_v4 = vpack.i.bf16 %v372_v40, %v1797_v27  ;;  %v549_v14 = vld [vmem:[%s2010_s3 + $0x20] sm:$0xff]  ;;  %v560_v27 = vld [vmem:[%s2010_s3 + $0x78] sm:$0xff] }
  0x29   : > { %1433 = vxpose.xlu1.b32.cont [6/16] (narrow) %v1432_v19, 16  ;;  %v553_v19 = vld [vmem:[%s2010_s3 + $0x40] sm:$0xff] }
  0x2a   : > { %1282 = vmatpush3.bf16.msra.mxu1 %v1805_v33  ;;  %1327 = vxpose.xlu0.b32.cont [9/16] %v1326_v42, 128 }
  0x2b   : > { %1275 = vmatprep.subr.bf16.mxu1 %v1815_v39 }
  0x2d   : > { %1435 = vxpose.xlu1.b32.cont [7/16] (narrow) %v1434_v30, 16 }
  0x2e   : > { %1283 = vmatpush3.bf16.msra.mxu1 %v1825_v48  ;;  %1329 = vxpose.xlu0.b32.cont [10/16] %v1328_v46, 128 }
  0x2f   : > { %1276 = vmatprep.subr.bf16.mxu1 %v1832_v53 }
  0x31   : > { %1437 = vxpose.xlu1.b32.cont [8/16] (narrow) %v1436_v51, 16 }
  0x32   : > { %1284 = vmatpush3.bf16.msra.mxu1 %v1840_v59  ;;  %1331 = vxpose.xlu0.b32.cont [11/16] %v1330_v62, 128 }
  0x35   : > { %1439 = vxpose.xlu1.b32.cont [9/16] (narrow) %v1438_v54, 16 }
  0x36   : > { %1333 = vxpose.xlu0.b32.cont [12/16] %v1332_v47, 128 }
  0x39   : > { %1441 = vxpose.xlu1.b32.cont [10/16] (narrow) %v1440_v25, 16 }
  0x3a   : > { %1335 = vxpose.xlu0.b32.cont [13/16] %v1334_v63, 128 }
  0x3d   : > { %1443 = vxpose.xlu1.b32.cont [11/16] (narrow) %v1442_v58, 16 }
  0x3e   : > { %1337 = vxpose.xlu0.b32.cont [14/16] %v1336_v0, 128 }
  0x41   : > { %1445 = vxpose.xlu1.b32.cont [12/16] (narrow) %v1444_v60, 16 }
  0x42   : > { %1339 = vxpose.xlu0.b32.cont [15/16] %v1338_v3, 128 }
  0x45   : > { %1447 = vxpose.xlu1.b32.cont [13/16] (narrow) %v1446_v1, 16 }
  0x46   : > { %1341 = vxpose.xlu0.b32.end [16/16] %v1340_v4, 128 }
  0x49   : > { %1449 = vxpose.xlu1.b32.cont [14/16] (narrow) %v1448_v61, 16 }
  0x4d   : > { %1451 = vxpose.xlu1.b32.cont [15/16] (narrow) %v1450_v5, 16 }
  0x51   : > { %1453 = vxpose.xlu1.b32.end [16/16] (narrow) %v1452_v6, 16 }
  0x6f   : > { %1465 = vset.pattern.permute.xlu1 %v1490_v9  ;;  %1464 = vset.pattern.permute.xlu0 %v1490_v9 }
  0x70   : > { %568 = vperm.xlu1 %1465, %v546_v8   ;;  %563 = vperm.xlu0 %1464, %v545_v11  }
  0x74   : > { %573 = vperm.xlu1 %1465, %v547_v10   ;;  %588 = vperm.xlu0 %1464, %v550_v13  }
  0x78   : > { %578 = vperm.xlu1 %1465, %v548_v12   ;;  %598 = vperm.xlu0 %1464, %v552_v15  }
  0x7c   : > { %583 = vperm.xlu1 %1465, %v549_v14   ;;  %608 = vperm.xlu0 %1464, %v554_v18  }
  0x80   : > { %593 = vperm.xlu1 %1465, %v551_v17   ;;  %618 = vperm.xlu0 %1464, %v556_v20  }
  0x84   : > { %603 = vperm.xlu1 %1465, %v553_v19   ;;  %628 = vperm.xlu0 %1464, %v558_v23   ;;  %v1072_v19 = vld [vmem:[%s2009_s2] ss:$0 sm:$0xff] }
  0x88   : > { %613 = vperm.xlu1 %1465, %v555_v22   ;;  %638 = vperm.xlu0 %1464, %v560_v27  }
  0x8a   : > { %v1909_v29 = vpop.trf.xlu0 }
  0x8b   : > { %v1343_v43 = vunpack.i.l.bf16 %v1909_v29 }
  0x8c   : > { %623 = vperm.xlu1 %1465, %v557_v24  }
  0x8e   : > { %v1911_v31 = vpop.trf.xlu0 }
  0x90   : > { %633 = vperm.xlu1 %1465, %v559_v28  }
  0x92   : > { %v1913_v30 = vpop.trf.xlu0 }
  0x93   : > { %v1353_v58 = vunpack.i.l.bf16 %v1913_v30  ;;  %v1356_v0 = vunpack.i.h.bf16 %v1913_v30 }
  0x95   : > { %v1454_v32 = vpop.trf.xlu1 }
  0x96   : > { %v1455_v34 = vunpack.i.l.bf16 %v1454_v32  ;;  %v1458_v35 = vunpack.i.h.bf16 %v1454_v32  ;;  %v1916_v42 = vpop.trf.xlu0 }
  0x97   : > { %v1358_v1 = vunpack.i.l.bf16 %v1916_v42  ;;  %v1361_v5 = vunpack.i.h.bf16 %v1916_v42 }
  0x98   : > { %524 = vmatprep.mubr.f32.mxu0 %v1455_v34 }
  0x99   : > { %v1459_v36 = vpop.trf.xlu1  ;;  %525 = vmatmul.mubr.f32.vlgmr.msra.gmra.mrb[0].mxu0 %v1458_v35 }
  0x9a   : > { %1240 = vmatpush3.bf16.msra.mxu0 %v1602_v26  ;;  %v1460_v40 = vunpack.i.l.bf16 %v1459_v36  ;;  %v1463_v41 = vunpack.i.h.bf16 %v1459_v36  ;;  %v1362_v45 = vpop.trf.xlu0 }
  0x9b   : > { %1242 = vmatprep.subr.bf16.mxu0 %v1621_v37  ;;  %v1363_v49 = vunpack.i.l.bf16 %v1362_v45  ;;  %v1366_v50 = vunpack.i.h.bf16 %v1362_v45 }
  0x9c   : > { %529 = vmatprep.mubr.f32.mxu0 %v1460_v40 }
  0x9d   : > { %530 = vmatmul.mubr.f32.gmra.mrb[2].mxu0 %v1463_v41  ;;  %789 = vmatprep.mubr.f32.mxu1 %v1363_v49 }
  0x9e   : > { %1244 = vmatpush3.bf16.msra.mxu0 %v1624_v38  ;;  %769 = vmatprep.mubr.f32.mxu0 %v1343_v43  ;;  %v1367_v26 = vpop.trf.xlu0 }
  0x9f   : > { %1246 = vmatprep.subr.bf16.mxu0 %v1642_v44  ;;  %790 = vmatmul.mubr.f32.vlgmr.msra.gmra.mrb[0].mxu1 %v1366_v50  ;;  %v1368_v37 = vunpack.i.l.bf16 %v1367_v26  ;;  %v1371_v51 = vunpack.i.h.bf16 %v1367_v26 }
  0xa1   : > { %794 = vmatprep.mubr.f32.mxu1 %v1368_v37 }
  0xa2   : > { %1248 = vmatpush3.bf16.msra.mxu0 %v1665_v52  ;;  %v1372_v46 = vpop.trf.xlu0 }
  0xa3   : > { %1250 = vmatprep.subr.bf16.mxu0 %v1681_v57  ;;  %795 = vmatmul.mubr.f32.gmra.mrb[2].mxu1 %v1371_v51  ;;  %v1373_v38 = vunpack.i.l.bf16 %v1372_v46  ;;  %v1376_v44 = vunpack.i.h.bf16 %v1372_v46 }
  0xa5   : > { %799 = vmatprep.mubr.f32.mxu1 %v1373_v38 }
  0xa6   : > { %1252 = vmatpush3.bf16.msra.mxu0 %v1713_v2  ;;  %v1377_v52 = vpop.trf.xlu0 }
  0xa7   : > { %1254 = vmatprep.subr.bf16.mxu0 %v1729_v7  ;;  %800 = vmatmul.mubr.f32.gmra.mrb[4].mxu1 %v1376_v44  ;;  %v1378_v55 = vunpack.i.l.bf16 %v1377_v52  ;;  %v1381_v57 = vunpack.i.h.bf16 %v1377_v52 }
  0xa9   : > { %804 = vmatprep.mubr.f32.mxu1 %v1378_v55 }
  0xaa   : > { %1256 = vmatpush3.bf16.msra.mxu0 %v1761_v16  ;;  %v1382_v2 = vpop.trf.xlu0 }
  0xab   : > { %1258 = vmatprep.subr.bf16.mxu0 %v1779_v21  ;;  %805 = vmatmul.mubr.f32.gmra.mrb[6].mxu1 %v1381_v57  ;;  %v1383_v56 = vunpack.i.l.bf16 %v1382_v2  ;;  %v1386_v7 = vunpack.i.h.bf16 %v1382_v2 }
  0xad   : > { %809 = vmatprep.mubr.f32.mxu1 %v1383_v56 }
  0xae   : > { %1260 = vmatpush3.bf16.msra.mxu0 %v1805_v33  ;;  %v1387_v16 = vpop.trf.xlu0  ;;  %v1346_v33 = vunpack.i.h.bf16 %v1909_v29 }
  0xaf   : > { %1262 = vmatprep.subr.bf16.mxu0 %v1815_v39  ;;  %810 = vmatmul.mubr.f32.gmra.mrb[8].mxu1 %v1386_v7  ;;  %v1388_v54 = vunpack.i.l.bf16 %v1387_v16  ;;  %v1391_v21 = vunpack.i.h.bf16 %v1387_v16  ;;  %v1348_v39 = vunpack.i.l.bf16 %v1911_v31 }
  0xb1   : > { %814 = vmatprep.mubr.f32.mxu1 %v1388_v54 }
  0xb2   : > { %1264 = vmatpush3.bf16.msra.mxu0 %v1825_v48  ;;  %v1392_v62 = vpop.trf.xlu0 }
  0xb3   : > { %1266 = vmatprep.subr.bf16.mxu0 %v1832_v53  ;;  %815 = vmatmul.mubr.f32.gmra.mrb[10].mxu1 %v1391_v21  ;;  %v1393_v25 = vunpack.i.l.bf16 %v1392_v62  ;;  %v1396_v47 = vunpack.i.h.bf16 %v1392_v62  ;;  %v1351_v53 = vunpack.i.h.bf16 %v1911_v31 }
  0xb5   : > { %819 = vmatprep.mubr.f32.mxu1 %v1393_v25 }
  0xb6   : > { %1268 = vmatpush3.bf16.msra.mxu0 %v1840_v59  ;;  %v1397_v48 = vpop.trf.xlu0 }
  0xb7   : > { %820 = vmatmul.mubr.f32.gmra.mrb[12].mxu1 %v1396_v47  ;;  %v1398_v63 = vunpack.i.l.bf16 %v1397_v48  ;;  %v1401_v59 = vunpack.i.h.bf16 %v1397_v48 }
  0xb9   : > { %770 = vmatmul.mubr.f32.vlgmr.msra.gmra.mrb[4].mxu0 %v1346_v33  ;;  %824 = vmatprep.mubr.f32.mxu1 %v1398_v63 }
  0xba   : > { %774 = vmatprep.mubr.f32.mxu0 %v1348_v39  ;;  %v1402_v60 = vpop.trf.xlu0 }
  0xbb   : > { %825 = vmatmul.mubr.f32.gmra.mrb[14].mxu1 %v1401_v59  ;;  %v1403_v3 = vunpack.i.l.bf16 %v1402_v60  ;;  %v1406_v61 = vunpack.i.h.bf16 %v1402_v60 }
  0xbd   : > { %775 = vmatmul.mubr.f32.gmra.mrb[6].mxu0 %v1351_v53  ;;  %829 = vmatprep.mubr.f32.mxu1 %v1403_v3 }
  0xbe   : > { %779 = vmatprep.mubr.f32.mxu0 %v1353_v58  ;;  %v1407_v4 = vpop.trf.xlu0 }
  0xbf   : > { %830 = vmatmul.mubr.f32.gmra.mrb[16].mxu1 %v1406_v61  ;;  %v1408_v6 = vunpack.i.l.bf16 %v1407_v4  ;;  %v1411_v8 = vunpack.i.h.bf16 %v1407_v4 }
  0xc1   : > { %780 = vmatmul.mubr.f32.gmra.mrb[8].mxu0 %v1356_v0  ;;  %834 = vmatprep.mubr.f32.mxu1 %v1408_v6 }
  0xc2   : > { %784 = vmatprep.mubr.f32.mxu0 %v1358_v1  ;;  %v1412_v9 = vpop.trf.xlu0 }
  0xc3   : > { %835 = vmatmul.mubr.f32.gmra.mrb[18].mxu1 %v1411_v8  ;;  %v1413_v10 = vunpack.i.l.bf16 %v1412_v9  ;;  %v1416_v11 = vunpack.i.h.bf16 %v1412_v9 }
  0xc5   : > { %785 = vmatmul.mubr.f32.gmra.mrb[10].mxu0 %v1361_v5  ;;  %839 = vmatprep.mubr.f32.mxu1 %v1413_v10 }
  0xc6   : > { %v1417_v12 = vpop.trf.xlu0 }
  0xc7   : > { %840 = vmatmul.mubr.f32.gmra.mrb[20].mxu1 %v1416_v11  ;;  %v1418_v13 = vunpack.i.l.bf16 %v1417_v12  ;;  %v1421_v14 = vunpack.i.h.bf16 %v1417_v12 }
  0xc9   : > { %844 = vmatprep.mubr.f32.mxu1 %v1418_v13 }
  0xcb   : > { %845 = vmatmul.mubr.f32.gmra.mrb[22].mxu1 %v1421_v14 }
  0xef   : > { %v1940_v15 = vpop.permute.xlu1 %568  ;;  %v564_v40 = vpop.permute.xlu0 %563 }
  0xf3   : > { %v1942_v18 = vpop.permute.xlu1 %573  ;;  %v589_v55 = vpop.permute.xlu0 %588 }
  0xf7   : > { %v1948_v29 = vpop.permute.xlu1 %578  ;;  %v599_v59 = vpop.permute.xlu0 %598 }
  0xfb   : > { %v584_v49 = vpop.permute.xlu1 %583  ;;  %v609_v10 = vpop.permute.xlu0 %608 }
  0xff   : > { %v594_v62 = vpop.permute.xlu1 %593 }
 0x103   : > { %v604_v61 = vpop.permute.xlu1 %603 }
 0x16c   : > { %v1119_v17 = vpop.f32.mrb[0].mxu0 }
 0x16d   : > { %v1120_v20 = vpop.f32.mrb[1].mxu0 }
 0x16e   : > { %v1121_v22 = vadd.f32 %v1120_v20, %v1119_v17 }
 0x170   : > { %v527_v23 = vadd.f32 %v1121_v22, %v1072_v19  ;;  %v1122_v24 = vpop.f32.mrb[2].mxu0 }
 0x171   : > { %v1123_v27 = vpop.f32.mrb[3].mxu0 }
 0x172   : > { %v1124_v28 = vadd.f32 %v1123_v27, %v1122_v24  ;;  %v875_v31 = vmul.f32 %v527_v23, %v527_v23  ;;  %v1169_v36 = vpop.f32.mrb[0].mxu1 }
 0x173   : > { %v1170_v41 = vpop.f32.mrb[1].mxu1 }
 0x174   : > { %v532_v32 = vadd.f32 %v1124_v28, %v1072_v19  ;;  %v1171_v45 = vadd.f32 %v1170_v41, %v1169_v36  ;;  %v619_v36 = vpop.permute.xlu0 %618 }
 0x176   : > { %v1085_v34 = vpack.c.bf16 %v532_v32, %v527_v23  ;;  %v867_v35 = vadd.f32 %v532_v32, %v527_v23  ;;  %v876_v30 = vmul.f32 %v532_v32, %v532_v32  ;;  %v792_v37 = vadd.f32 %v1171_v45, %v584_v49  ;;  %v1172_v51 = vpop.f32.mrb[2].mxu1  ;;  %v614_v23 = vpop.permute.xlu1 %613 }
 0x177   : > { %v1173_v46 = vpop.f32.mrb[3].mxu1 }
 0x178   : > { %1086 = vst [vmem:[%s308_s8] sm:$0xff] %v1085_v34   ;;  %v868_v42 = vrot.slane %v867_v35, 4  ;;  %v877_v43 = vadd.f32 %v876_v30, %v875_v31  ;;  %855 = vst.msk [vmem:[%s1957_s11 + $0x20] sm:$0xff] %vm850_vm0, %v792_v37  ;;  %v1174_v52 = vadd.f32 %v1173_v46, %v1172_v51 }
 0x17a   : > { %v869_v50 = vadd.f32 %v868_v42, %v867_v35  ;;  %v878_v26 = vrot.slane %v877_v43, 4  ;;  %v797_v56 = vadd.f32 %v1174_v52, %v589_v55  ;;  %v1175_v7 = vpop.f32.mrb[4].mxu1 }
 0x17b   : > { %v1176_v16 = vpop.f32.mrb[5].mxu1 }
 0x17c   : > { %v870_v38 = vrot.slane %v869_v50, 2  ;;  %v879_v44 = vadd.f32 %v878_v26, %v877_v43  ;;  %856 = vst.msk [vmem:[%s1957_s11 + $0x28] sm:$0xff] %vm850_vm0, %v797_v56  ;;  %v1177_v33 = vadd.f32 %v1176_v16, %v1175_v7 }
 0x17e   : > { %v871_v57 = vadd.f32 %v870_v38, %v869_v50  ;;  %v880_v2 = vrot.slane %v879_v44, 2  ;;  %v802_v47 = vadd.f32 %v1177_v33, %v594_v62  ;;  %v1178_v48 = vpop.f32.mrb[6].mxu1 }
 0x17f   : > { %v1179_v53 = vpop.f32.mrb[7].mxu1 }
 0x180   : > { %v872_v54 = vrot.slane %v871_v57, 1  ;;  %v881_v21 = vadd.f32 %v880_v2, %v879_v44  ;;  %857 = vst.msk [vmem:[%s1957_s11 + $0x30] sm:$0xff] %vm850_vm0, %v802_v47  ;;  %v1180_v63 = vadd.f32 %v1179_v53, %v1178_v48 }
 0x182   : > { %v873_v39 = vadd.f32 %v872_v54, %v871_v57  ;;  %v882_v25 = vrot.slane %v881_v21, 1  ;;  %v807_v60 = vadd.f32 %v1180_v63, %v599_v59  ;;  %v1181_v0 = vpop.f32.mrb[8].mxu1  ;;  %v629_v57 = vpop.permute.xlu0 %628 }
 0x183   : > { %v1182_v1 = vpop.f32.mrb[9].mxu1 }
 0x184   : > { %874 = vst [vmem:[%s324_s15] sm:$0x1] %v873_v39  ;;  %v883_v58 = vadd.f32 %v882_v25, %v881_v21  ;;  %858 = vst.msk [vmem:[%s1957_s11 + $0x38] sm:$0xff] %vm850_vm0, %v807_v60  ;;  %v1183_v3 = vadd.f32 %v1182_v1, %v1181_v0 }
 0x186   : > { %884 = vst [vmem:[%s324_s15 + $0x1] sm:$0x1] %v883_v58  ;;  %v812_v4 = vadd.f32 %v1183_v3, %v604_v61  ;;  %v1184_v5 = vpop.f32.mrb[10].mxu1  ;;  %v639_v39 = vpop.permute.xlu0 %638 }
 0x187   : > { %v1185_v6 = vpop.f32.mrb[11].mxu1 }
 0x188   : > { %859 = vst.msk [vmem:[%s1957_s11 + $0x40] sm:$0xff] %vm850_vm0, %v812_v4  ;;  %v1186_v9 = vadd.f32 %v1185_v6, %v1184_v5 }
 0x18a   : > { %v817_v12 = vadd.f32 %v1186_v9, %v609_v10  ;;  %v1187_v14 = vpop.f32.mrb[12].mxu1 }
 0x18b   : > { %v1188_v17 = vpop.f32.mrb[13].mxu1 }
 0x18c   : > { %v1157_v8 = vpop.f32.mrb[4].mxu0  ;;  %860 = vst.msk [vmem:[%s1957_s11 + $0x48] sm:$0xff] %vm850_vm0, %v817_v12  ;;  %v1189_v22 = vadd.f32 %v1188_v17, %v1187_v14 }
 0x18d   : > { %v1158_v11 = vpop.f32.mrb[5].mxu0 }
 0x18e   : > { %v1159_v13 = vadd.f32 %v1158_v11, %v1157_v8  ;;  %v822_v27 = vadd.f32 %v1189_v22, %v614_v23  ;;  %v1190_v31 = vpop.f32.mrb[14].mxu1 }
 0x18f   : > { %v1191_v32 = vpop.f32.mrb[15].mxu1 }
 0x190   : > { %v772_v19 = vadd.f32 %v1159_v13, %v564_v40  ;;  %v1160_v20 = vpop.f32.mrb[6].mxu0  ;;  %861 = vst.msk [vmem:[%s1957_s11 + $0x50] sm:$0xff] %vm850_vm0, %v822_v27  ;;  %v1192_v30 = vadd.f32 %v1191_v32, %v1190_v31 }
 0x191   : > { %v1161_v24 = vpop.f32.mrb[7].mxu0 }
 0x192   : > { %851 = vst.msk [vmem:[%s1957_s11] sm:$0xff] %vm850_vm0, %v772_v19  ;;  %v1162_v28 = vadd.f32 %v1161_v24, %v1160_v20  ;;  %v827_v41 = vadd.f32 %v1192_v30, %v619_v36  ;;  %v1193_v43 = vpop.f32.mrb[16].mxu1 }
 0x193   : > { %v1194_v45 = vpop.f32.mrb[17].mxu1 }
 0x194   : > { %v777_v34 = vadd.f32 %v1162_v28, %v1940_v15  ;;  %v1163_v35 = vpop.f32.mrb[8].mxu0  ;;  %862 = vst.msk [vmem:[%s1957_s11 + $0x58] sm:$0xff] %vm850_vm0, %v827_v41  ;;  %v1195_v26 = vadd.f32 %v1194_v45, %v1193_v43  ;;  %v624_v15 = vpop.permute.xlu1 %623 }
 0x195   : > { %v1164_v40 = vpop.f32.mrb[9].mxu0 }
 0x196   : > { %852 = vst.msk [vmem:[%s1957_s11 + $0x8] sm:$0xff] %vm850_vm0, %v777_v34  ;;  %v1165_v42 = vadd.f32 %v1164_v40, %v1163_v35  ;;  %v832_v51 = vadd.f32 %v1195_v26, %v624_v15  ;;  %v1196_v38 = vpop.f32.mrb[18].mxu1 }
 0x197   : > { %v1197_v44 = vpop.f32.mrb[19].mxu1 }
 0x198   : > { %v782_v49 = vadd.f32 %v1165_v42, %v1942_v18  ;;  %v1166_v50 = vpop.f32.mrb[10].mxu0  ;;  %863 = vst.msk [vmem:[%s1957_s11 + $0x60] sm:$0xff] %vm850_vm0, %v832_v51  ;;  %v1198_v55 = vadd.f32 %v1197_v44, %v1196_v38  ;;  %v634_v16 = vpop.permute.xlu1 %633 }
 0x199   : > { %v1167_v37 = vpop.f32.mrb[11].mxu0 }
 0x19a   : > { %853 = vst.msk [vmem:[%s1957_s11 + $0x10] sm:$0xff] %vm850_vm0, %v782_v49  ;;  %v1168_v46 = vadd.f32 %v1167_v37, %v1166_v50  ;;  %v837_v18 = vadd.f32 %v1198_v55, %v629_v57  ;;  %v1199_v2 = vpop.f32.mrb[20].mxu1 }
 0x19b   : > { %v1200_v56 = vpop.f32.mrb[21].mxu1 }
 0x19c   : > { %v787_v52 = vadd.f32 %v1168_v46, %v1948_v29  ;;  %864 = vst.msk [vmem:[%s1957_s11 + $0x68] sm:$0xff] %vm850_vm0, %v837_v18  ;;  %v1201_v7 = vadd.f32 %v1200_v56, %v1199_v2 }
 0x19e   : > { %854 = vst.msk [vmem:[%s1957_s11 + $0x18] sm:$0xff] %vm850_vm0, %v787_v52  ;;  %v842_v54 = vadd.f32 %v1201_v7, %v634_v16  ;;  %v1202_v21 = vpop.f32.mrb[22].mxu1 }
 0x19f   : > { %v1203_v33 = vpop.f32.mrb[23].mxu1 }
 0x1a0   : > { %865 = vst.msk [vmem:[%s1957_s11 + $0x70] sm:$0xff] %vm850_vm0, %v842_v54  ;;  %v1204_v62 = vadd.f32 %v1203_v33, %v1202_v21 }
 0x1a2   : > { %v847_v29 = vadd.f32 %v1204_v62, %v639_v39 }
 0x1a4   : > { %866 = vst.msk [vmem:[%s1957_s11 + $0x78] sm:$0xff] %vm850_vm0, %v847_v29 }
 0x1a5 PF: > { %s17_s23 = sadd.s32 1, %s1488_s23   ;;  %s2014_s21 = smov %s1484_s22 }
 0x1a6   : > { %p14_p5 = scmp.ge.s32.totalorder %s17_s23, 4   ;;  %s2015_s22 = smov %s2017_s24 }
 0x1a8   :  { %16 = sbr.rel (!%p14_p5) target bundleno = 2 (0x2), region = 90 }

// kernel: mf_subnet1_forward.6
= control target key start
LH: loop header
LB: loop body
LE: loop exit
PB: predicated region body
PF: predicated region fallthrough
CT: control target
= control target key end

     0   :  { %vm196_vm0 = vcmask 261120   ;;  %s851_s0 = inlined_call_operand.vmem [shape: bf16[128,128], index: 0, kind: input, shape index: {}]   ;;  %s852_s3 = inlined_call_operand.vmem [shape: f32[4,128], index: 3, kind: input, shape index: {}]   ;;  %s853_s2 = inlined_call_operand.vmem [shape: bf16[128,32], index: 2, kind: input, shape index: {}]   ;;  %s854_s1 = inlined_call_operand.vmem [shape: bf16[32,128], index: 1, kind: input, shape index: {}]   ;;  %s855_s4 = inlined_call_operand.vmem [shape: bf16[128,256], index: 4, kind: output, shape index: {}]  }
   0x1   :  { %v482_v0 = vld [vmem:[%s852_s3] ss:$0 sm:$0xff]  ;;  %v606_v2 = vld [vmem:[%s851_s0 + $0x8] sm:$0xff]   ;;  %v607_v7 = vld [vmem:[%s851_s0 + $0x10] sm:$0xff]  }
   0x2   :  { %v567_v1 = vld [vmem:[%s851_s0] sm:$0xff]   ;;  %v572_v5 = vunpack.c.l.bf16 %v606_v2  ;;  %v573_v6 = vunpack.c.h.bf16 %v606_v2  ;;  %v608_v8 = vld [vmem:[%s851_s0 + $0x18] sm:$0xff]   ;;  %v576_v10 = vunpack.c.l.bf16 %v607_v7  ;;  %v577_v11 = vunpack.c.h.bf16 %v607_v7  ;;  %v610_v14 = vld [vmem:[%s851_s0 + $0x28] sm:$0xff]  }
   0x3   :  { %v568_v3 = vunpack.c.l.bf16 %v567_v1  ;;  %v569_v4 = vunpack.c.h.bf16 %v567_v1  ;;  %v609_v9 = vld [vmem:[%s851_s0 + $0x20] sm:$0xff]   ;;  %v580_v12 = vunpack.c.l.bf16 %v608_v8  ;;  %v581_v13 = vunpack.c.h.bf16 %v608_v8  ;;  %v611_v15 = vld [vmem:[%s851_s0 + $0x30] sm:$0xff]   ;;  %v612_v16 = vld [vmem:[%s851_s0 + $0x38] sm:$0xff]  }
   0x4   :  { %v584_v17 = vunpack.c.l.bf16 %v609_v9  ;;  %v585_v18 = vunpack.c.h.bf16 %v609_v9  ;;  %v588_v19 = vunpack.c.l.bf16 %v610_v14  ;;  %v589_v20 = vunpack.c.h.bf16 %v610_v14  ;;  %v648_v25 = vld [vmem:[%s853_s2] sm:$0xff]  }
   0x5   :  { %v592_v21 = vunpack.c.l.bf16 %v611_v15  ;;  %v593_v22 = vunpack.c.h.bf16 %v611_v15  ;;  %v596_v23 = vunpack.c.l.bf16 %v612_v16  ;;  %v597_v24 = vunpack.c.h.bf16 %v612_v16  ;;  %v649_v30 = vld [vmem:[%s853_s2 + $0x20] sm:$0xff]   ;;  %628 = vmatprep.mubr.msk.bf16.mxu0 %vm196_vm0, %v648_v25 }
   0x6   :  { %v58_v26 = vmul.f32 %v568_v3, %v482_v0  ;;  %v59_v27 = vmul.f32 %v569_v4, %v482_v0  ;;  %v60_v28 = vmul.f32 %v572_v5, %v482_v0  ;;  %v61_v29 = vmul.f32 %v573_v6, %v482_v0  ;;  %v483_v31 = vld [vmem:[%s852_s3 + $0x1] ss:$0 sm:$0xff]  ;;  %636 = vmatprep.mubr.msk.bf16.mxu1 %vm196_vm0, %v649_v30  ;;  %v484_v9 = vld [vmem:[%s852_s3 + $0x2] ss:$0 sm:$0xff] }
   0x7   :  { %v62_v32 = vmul.f32 %v576_v10, %v482_v0  ;;  %v63_v33 = vmul.f32 %v577_v11, %v482_v0  ;;  %v64_v34 = vmul.f32 %v580_v12, %v482_v0  ;;  %v65_v35 = vmul.f32 %v581_v13, %v482_v0  ;;  %v599_v4 = vld [vmem:[%s854_s1] sm:$0xff]  }
   0x8   :  { %v66_v36 = vmul.f32 %v584_v17, %v482_v0  ;;  %v67_v37 = vmul.f32 %v585_v18, %v482_v0  ;;  %v68_v38 = vmul.f32 %v588_v19, %v482_v0  ;;  %v69_v39 = vmul.f32 %v589_v20, %v482_v0  ;;  %v485_v18 = vld [vmem:[%s852_s3 + $0x3] ss:$0 sm:$0xff] }
   0x9   :  { %v70_v40 = vmul.f32 %v592_v21, %v482_v0  ;;  %v71_v41 = vmul.f32 %v593_v22, %v482_v0  ;;  %v72_v42 = vmul.f32 %v596_v23, %v482_v0  ;;  %v73_v43 = vmul.f32 %v597_v24, %v482_v0 }
   0xa   :  { %v78_v44 = vadd.f32 %v483_v31, %v58_v26  ;;  %v79_v45 = vadd.f32 %v483_v31, %v59_v27  ;;  %v80_v46 = vadd.f32 %v483_v31, %v60_v28  ;;  %v81_v47 = vadd.f32 %v483_v31, %v61_v29  ;;  %v613_v27 = vld [vmem:[%s854_s1 + $0x8] sm:$0xff]  }
   0xb   :  { %v82_v48 = vadd.f32 %v483_v31, %v62_v32  ;;  %v83_v49 = vadd.f32 %v483_v31, %v63_v33  ;;  %v84_v50 = vadd.f32 %v483_v31, %v64_v34  ;;  %v85_v51 = vadd.f32 %v483_v31, %v65_v35 }
   0xc   :  { %v86_v52 = vadd.f32 %v483_v31, %v66_v36  ;;  %v87_v53 = vadd.f32 %v483_v31, %v67_v37  ;;  %v88_v54 = vadd.f32 %v483_v31, %v68_v38  ;;  %v89_v55 = vadd.f32 %v483_v31, %v69_v39 }
   0xd   :  { %v90_v56 = vadd.f32 %v483_v31, %v70_v40  ;;  %v91_v57 = vadd.f32 %v483_v31, %v71_v41  ;;  %v92_v58 = vadd.f32 %v483_v31, %v72_v42  ;;  %v93_v59 = vadd.f32 %v483_v31, %v73_v43 }
   0xe   :  { %v94_v60 = vmax.f32 %v78_v44, 0.0  ;;  %v95_v61 = vmax.f32 %v79_v45, 0.0  ;;  %v96_v62 = vmax.f32 %v80_v46, 0.0  ;;  %v97_v63 = vmax.f32 %v81_v47, 0.0 }
   0xf   :  { %v98_v0 = vmax.f32 %v82_v48, 0.0  ;;  %v99_v1 = vmax.f32 %v83_v49, 0.0  ;;  %v100_v2 = vmax.f32 %v84_v50, 0.0  ;;  %v101_v3 = vmax.f32 %v85_v51, 0.0  ;;  %v650_v50 = vld [vmem:[%s853_s2 + $0x8] sm:$0xff]  }
  0x10   :  { %v102_v5 = vmax.f32 %v86_v52, 0.0  ;;  %v103_v6 = vmax.f32 %v87_v53, 0.0  ;;  %v104_v7 = vmax.f32 %v88_v54, 0.0  ;;  %v105_v8 = vmax.f32 %v89_v55, 0.0  ;;  %v651_v51 = vld [vmem:[%s853_s2 + $0x28] sm:$0xff]   ;;  %v652_v52 = vld [vmem:[%s853_s2 + $0x10] sm:$0xff]  }
  0x11   :  { %v106_v10 = vmax.f32 %v90_v56, 0.0  ;;  %v107_v11 = vmax.f32 %v91_v57, 0.0  ;;  %v108_v12 = vmax.f32 %v92_v58, 0.0  ;;  %v109_v13 = vmax.f32 %v93_v59, 0.0  ;;  %v653_v53 = vld [vmem:[%s853_s2 + $0x30] sm:$0xff]   ;;  %v654_v54 = vld [vmem:[%s853_s2 + $0x18] sm:$0xff]  }
  0x12   :  { %v600_v14 = vunpack.c.l.bf16 %v599_v4  ;;  %v601_v15 = vunpack.c.h.bf16 %v599_v4  ;;  %v534_v16 = vpack.c.bf16 %v94_v60, %v94_v60  ;;  %v535_v17 = vpack.c.bf16 %v95_v61, %v95_v61  ;;  %v655_v55 = vld [vmem:[%s853_s2 + $0x38] sm:$0xff]  }
  0x13   :  { %v536_v19 = vpack.c.bf16 %v96_v62, %v96_v62  ;;  %v537_v20 = vpack.c.bf16 %v97_v63, %v97_v63  ;;  %v538_v21 = vpack.c.bf16 %v98_v0, %v98_v0  ;;  %v539_v22 = vpack.c.bf16 %v99_v1, %v99_v1 }
  0x14   :  { %v122_v23 = vmul.f32 %v600_v14, %v484_v9  ;;  %v123_v24 = vmul.f32 %v601_v15, %v484_v9  ;;  %v540_v25 = vpack.c.bf16 %v100_v2, %v100_v2  ;;  %v541_v26 = vpack.c.bf16 %v101_v3, %v101_v3  ;;  %382 = vst [vmem:[%s855_s4] sm:$0xf] %v534_v16 }
  0x15   :  { %383 = vst [vmem:[%s855_s4 + $0x8] sm:$0xf] %v535_v17  ;;  %v542_v28 = vpack.c.bf16 %v102_v5, %v102_v5  ;;  %v543_v29 = vpack.c.bf16 %v103_v6, %v103_v6  ;;  %v544_v30 = vpack.c.bf16 %v104_v7, %v104_v7  ;;  %v545_v31 = vpack.c.bf16 %v105_v8, %v105_v8 }
  0x16   :  { %384 = vst [vmem:[%s855_s4 + $0x10] sm:$0xf] %v536_v19  ;;  %385 = vst [vmem:[%s855_s4 + $0x18] sm:$0xf] %v537_v20  ;;  %v130_v32 = vadd.f32 %v485_v18, %v122_v23  ;;  %v131_v33 = vadd.f32 %v485_v18, %v123_v24  ;;  %v546_v34 = vpack.c.bf16 %v106_v10, %v106_v10  ;;  %v604_v38 = vunpack.c.l.bf16 %v613_v27 }
  0x17   :  { %386 = vst [vmem:[%s855_s4 + $0x20] sm:$0xf] %v538_v21  ;;  %387 = vst [vmem:[%s855_s4 + $0x28] sm:$0xf] %v539_v22  ;;  %v547_v35 = vpack.c.bf16 %v107_v11, %v107_v11  ;;  %v548_v36 = vpack.c.bf16 %v108_v12, %v108_v12  ;;  %v549_v37 = vpack.c.bf16 %v109_v13, %v109_v13  ;;  %v605_v39 = vunpack.c.h.bf16 %v613_v27 }
  0x18   :  { %388 = vst [vmem:[%s855_s4 + $0x30] sm:$0xf] %v540_v25  ;;  %389 = vst [vmem:[%s855_s4 + $0x38] sm:$0xf] %v541_v26  ;;  %v134_v40 = vmax.f32 %v130_v32, 0.0  ;;  %v135_v41 = vmax.f32 %v131_v33, 0.0  ;;  %v124_v42 = vmul.f32 %v604_v38, %v484_v9 }
  0x19   :  { %390 = vst [vmem:[%s855_s4 + $0x40] sm:$0xf] %v542_v28  ;;  %391 = vst [vmem:[%s855_s4 + $0x48] sm:$0xf] %v543_v29  ;;  %v125_v43 = vmul.f32 %v605_v39, %v484_v9 }
  0x1a   :  { %392 = vst [vmem:[%s855_s4 + $0x50] sm:$0xf] %v544_v30  ;;  %393 = vst [vmem:[%s855_s4 + $0x58] sm:$0xf] %v545_v31  ;;  %v154_v44 = vpack.c.bf16 %v135_v41, %v134_v40  ;;  %v132_v45 = vadd.f32 %v485_v18, %v124_v42 }
  0x1b   :  { %394 = vst [vmem:[%s855_s4 + $0x60] sm:$0xf] %v546_v34  ;;  %395 = vst [vmem:[%s855_s4 + $0x68] sm:$0xf] %v547_v35  ;;  %v133_v46 = vadd.f32 %v485_v18, %v125_v43 }
  0x1c   :  { %396 = vst [vmem:[%s855_s4 + $0x70] sm:$0xf] %v548_v36  ;;  %397 = vst [vmem:[%s855_s4 + $0x78] sm:$0xf] %v549_v37  ;;  %624 = vmatprep.subr.bf16.mxu0 %v154_v44  ;;  %644 = vmatprep.subr.bf16.mxu1 %v154_v44  ;;  %v136_v47 = vmax.f32 %v132_v45, 0.0 }
  0x1d   :  { %625 = vmatpush3.bf16.msra.mxu0 %v154_v44  ;;  %646 = vmatpush3.bf16.msra.mxu1 %v154_v44  ;;  %v137_v48 = vmax.f32 %v133_v46, 0.0 }
  0x1f   :  { %v155_v49 = vpack.c.bf16 %v137_v48, %v136_v47 }
  0x21   :  { %626 = vmatprep.subr.bf16.mxu0 %v155_v49  ;;  %645 = vmatprep.subr.bf16.mxu1 %v155_v49 }
  0x22   :  { %627 = vmatpush3.bf16.msra.mxu0 %v155_v49  ;;  %647 = vmatpush3.bf16.msra.mxu1 %v155_v49 }
  0x25   :  { %629 = vmatmul.mubr.msk.bf16.vlgmr.msra.gmra.mrb[0].mxu0 %vm196_vm0, %v650_v50  ;;  %637 = vmatmul.mubr.msk.bf16.vlgmr.msra.gmra.mrb[0].mxu1 %vm196_vm0, %v651_v51 }
  0x26   :  { %632 = vmatprep.mubr.msk.bf16.mxu0 %vm196_vm0, %v652_v52  ;;  %640 = vmatprep.mubr.msk.bf16.mxu1 %vm196_vm0, %v653_v53 }
  0x2d   :  { %633 = vmatmul.mubr.msk.bf16.gmra.mrb[4].mxu0 %vm196_vm0, %v654_v54  ;;  %641 = vmatmul.mubr.msk.bf16.gmra.mrb[4].mxu1 %vm196_vm0, %v655_v55 }
  0xf8   :  { %v630_v56 = vpop.f32.mrb[0].mxu0  ;;  %v638_v57 = vpop.f32.mrb[0].mxu1 }
  0xf9   :  { %v552_v58 = vpack.c.bf16 %v630_v56, %v630_v56  ;;  %v560_v59 = vpack.c.bf16 %v638_v57, %v638_v57  ;;  %v255_v60 = vpop.f32.mrb[1].mxu0  ;;  %v287_v61 = vpop.f32.mrb[1].mxu1 }
  0xfa   :  { %v550_v62 = vpack.c.bf16 %v255_v60, %v255_v60  ;;  %v558_v63 = vpack.c.bf16 %v287_v61, %v287_v61  ;;  %v631_v0 = vpop.f32.mrb[2].mxu0  ;;  %v639_v1 = vpop.f32.mrb[2].mxu1 }
  0xfb   :  { %464 = vst [vmem:[%s855_s4 + $0x14] sm:$0xf] %v552_v58  ;;  %472 = vst [vmem:[%s855_s4 + $0x54] sm:$0xf] %v560_v59  ;;  %v553_v2 = vpack.c.bf16 %v631_v0, %v631_v0  ;;  %v561_v3 = vpack.c.bf16 %v639_v1, %v639_v1  ;;  %v258_v4 = vpop.f32.mrb[3].mxu0  ;;  %v290_v5 = vpop.f32.mrb[3].mxu1 }
  0xfc   :  { %462 = vst [vmem:[%s855_s4 + $0x4] sm:$0xf] %v550_v62  ;;  %470 = vst [vmem:[%s855_s4 + $0x44] sm:$0xf] %v558_v63  ;;  %v551_v6 = vpack.c.bf16 %v258_v4, %v258_v4  ;;  %v559_v7 = vpack.c.bf16 %v290_v5, %v290_v5 }
  0xfd   :  { %465 = vst [vmem:[%s855_s4 + $0x1c] sm:$0xf] %v553_v2  ;;  %473 = vst [vmem:[%s855_s4 + $0x5c] sm:$0xf] %v561_v3 }
  0xfe   :  { %463 = vst [vmem:[%s855_s4 + $0xc] sm:$0xf] %v551_v6  ;;  %471 = vst [vmem:[%s855_s4 + $0x4c] sm:$0xf] %v559_v7 }
 0x100   :  { %v634_v8 = vpop.f32.mrb[4].mxu0  ;;  %v642_v9 = vpop.f32.mrb[4].mxu1 }
 0x101   :  { %v556_v10 = vpack.c.bf16 %v634_v8, %v634_v8  ;;  %v564_v11 = vpack.c.bf16 %v642_v9, %v642_v9  ;;  %v271_v12 = vpop.f32.mrb[5].mxu0  ;;  %v303_v13 = vpop.f32.mrb[5].mxu1 }
 0x102   :  { %v554_v14 = vpack.c.bf16 %v271_v12, %v271_v12  ;;  %v562_v15 = vpack.c.bf16 %v303_v13, %v303_v13  ;;  %v635_v16 = vpop.f32.mrb[6].mxu0  ;;  %v643_v17 = vpop.f32.mrb[6].mxu1 }
 0x103   :  { %468 = vst [vmem:[%s855_s4 + $0x34] sm:$0xf] %v556_v10  ;;  %476 = vst [vmem:[%s855_s4 + $0x74] sm:$0xf] %v564_v11  ;;  %v557_v18 = vpack.c.bf16 %v635_v16, %v635_v16  ;;  %v565_v19 = vpack.c.bf16 %v643_v17, %v643_v17  ;;  %v274_v20 = vpop.f32.mrb[7].mxu0  ;;  %v306_v21 = vpop.f32.mrb[7].mxu1 }
 0x104   :  { %466 = vst [vmem:[%s855_s4 + $0x24] sm:$0xf] %v554_v14  ;;  %474 = vst [vmem:[%s855_s4 + $0x64] sm:$0xf] %v562_v15  ;;  %v555_v22 = vpack.c.bf16 %v274_v20, %v274_v20  ;;  %v563_v23 = vpack.c.bf16 %v306_v21, %v306_v21 }
 0x105   :  { %469 = vst [vmem:[%s855_s4 + $0x3c] sm:$0xf] %v557_v18  ;;  %477 = vst [vmem:[%s855_s4 + $0x7c] sm:$0xf] %v565_v19 }
 0x106   :  { %467 = vst [vmem:[%s855_s4 + $0x2c] sm:$0xf] %v555_v22  ;;  %475 = vst [vmem:[%s855_s4 + $0x6c] sm:$0xf] %v563_v23 }

// kernel: mf_subnet1_forward.7
= control target key start
LH: loop header
LB: loop body
LE: loop exit
PB: predicated region body
PF: predicated region fallthrough
CT: control target
= control target key end

     0   :  { %s1494_s15 = smov 0   ;;  %s1496_s16 = smov 0   ;;  %s1974_s0 = inlined_call_operand.vmem [shape: bf16[2,64,256], index: 0, kind: input, shape index: {}]   ;;  %s1975_s1 = inlined_call_operand.vmem [shape: f32[256,64], index: 1, kind: input, shape index: {}]   ;;  %s1976_s2 = inlined_call_operand.vmem [shape: f32[1,64], index: 2, kind: input, shape index: {}]   ;;  %s1977_s3 = inlined_call_operand.vmem [shape: f32[64,256], index: 3, kind: input, shape index: {}]   ;;  %s1978_s4 = inlined_call_operand.vmem [shape: f32[2,64,256], index: 4, kind: output, shape index: {}]  }
   0x1   :  { %s1498_s17 = smov 0  }
   0x2 LB: > { %s26_s18 = sadd.s32 1, %s1460_s16  ;;  %p1221_p0 = scmp.ge.s32.totalorder %s1464_s17, 1  ;;  %s1464_s17 = sphi %s1498_s17, %s14_s17   ;;  %s1460_s16 = sphi %s1496_s16, %s1980_s16   ;;  %s1456_s15 = sphi %s1494_s15, %s1979_s15  }
   0x3   : > { %p28_p1 = scmp.ge.s32.totalorder %s26_s18, 2  ;;  %p182_p2 = scmp.lt.s32.totalorder %s1464_s17, 3 }
   0x5   : > { %s1982_s18 = smov (%p28_p1, %s26_s18), 0  ;;  %p183_p3 = pnand %p1221_p0, %p182_p2 }
   0x6   : > { %p214_p4 = scmp.lt.s32.totalorder (!%p183_p3), %s1456_s15, 1  ;;  %v370_v0 = vld [vmem:[%s1975_s1 + $0x80] sm:$0xff] (!%p183_p3)  ;;  %v371_v1 = vld [vmem:[%s1975_s1 + $0x88] sm:$0xff] (!%p183_p3)  ;;  %v372_v5 = vld [vmem:[%s1975_s1 + $0x90] sm:$0xff] (!%p183_p3)  ;;  %vm498_vm0 = vcmask (!%p183_p3), 523264   ;;  %vm249_vm1 = vcmask (!%p183_p3), 7168  }
   0x7   : > { %186 = sbr.rel (%p183_p3) target bundleno = 1531 (0x5fb), region = 36  ;;  %v354_v2 = vld [vmem:[%s1975_s1] sm:$0xff] (!%p183_p3)  ;;  %v1295_v3 = vpack.c.bf16 (!%p183_p3), %v371_v1, %v370_v0  ;;  %v355_v4 = vld [vmem:[%s1975_s1 + $0x8] sm:$0xff] (!%p183_p3)  ;;  %v373_v6 = vld [vmem:[%s1975_s1 + $0x98] sm:$0xff] (!%p183_p3)  ;;  %s1468_s8 = smov (!%p183_p3), 1e-24  }
   0x8   : > { %v1297_v7 = vpack.c.bf16 (!%p183_p3), %v355_v4, %v354_v2  ;;  %v1299_v8 = vpack.c.bf16 (!%p183_p3), %v373_v6, %v372_v5  ;;  %v356_v9 = vld [vmem:[%s1975_s1 + $0x10] sm:$0xff] (!%p183_p3)  ;;  %v357_v10 = vld [vmem:[%s1975_s1 + $0x18] sm:$0xff] (!%p183_p3)  ;;  %v374_v11 = vld [vmem:[%s1975_s1 + $0xa0] sm:$0xff] (!%p183_p3) }
   0x9   : > { %1296 = vmatprep.subr.bf16.mxu0 (!%p183_p3), %v1295_v3  ;;  %v375_v12 = vld [vmem:[%s1975_s1 + $0xa8] sm:$0xff] (!%p183_p3)  ;;  %v358_v13 = vld [vmem:[%s1975_s1 + $0x20] sm:$0xff] (!%p183_p3)  ;;  %v1301_v15 = vpack.c.bf16 (!%p183_p3), %v357_v10, %v356_v9  ;;  %v376_v16 = vld [vmem:[%s1975_s1 + $0xb0] sm:$0xff] (!%p183_p3) }
   0xa   : > { %v359_v14 = vld [vmem:[%s1975_s1 + $0x28] sm:$0xff] (!%p183_p3)  ;;  %1298 = vmatpush3.bf16.msra.mxu0 (!%p183_p3), %v1297_v7  ;;  %v377_v17 = vld [vmem:[%s1975_s1 + $0xb8] sm:$0xff] (!%p183_p3)  ;;  %v360_v18 = vld [vmem:[%s1975_s1 + $0x30] sm:$0xff] (!%p183_p3)  ;;  %v1303_v19 = vpack.c.bf16 (!%p183_p3), %v375_v12, %v374_v11 }
   0xb   : > { %1300 = vmatprep.subr.bf16.mxu0 (!%p183_p3), %v1299_v8  ;;  %v361_v20 = vld [vmem:[%s1975_s1 + $0x38] sm:$0xff] (!%p183_p3)  ;;  %v1305_v24 = vpack.c.bf16 (!%p183_p3), %v359_v14, %v358_v13  ;;  %v1307_v25 = vpack.c.bf16 (!%p183_p3), %v377_v17, %v376_v16  ;;  %v378_v8 = vld [vmem:[%s1975_s1 + $0xc0] sm:$0xff] (!%p183_p3)  ;;  %v379_v9 = vld [vmem:[%s1975_s1 + $0xc8] sm:$0xff] (!%p183_p3) }
   0xc   : > { %v1309_v26 = vpack.c.bf16 (!%p183_p3), %v361_v20, %v360_v18  ;;  %v1311_v10 = vpack.c.bf16 (!%p183_p3), %v379_v9, %v378_v8  ;;  %v362_v11 = vld [vmem:[%s1975_s1 + $0x40] sm:$0xff] (!%p183_p3)  ;;  %v363_v12 = vld [vmem:[%s1975_s1 + $0x48] sm:$0xff] (!%p183_p3)  ;;  %v380_v14 = vld [vmem:[%s1975_s1 + $0xd0] sm:$0xff] (!%p183_p3) }
   0xd   : > { %v1313_v13 = vpack.c.bf16 (!%p183_p3), %v363_v12, %v362_v11  ;;  %v364_v17 = vld [vmem:[%s1975_s1 + $0x50] sm:$0xff] (!%p183_p3)  ;;  %v365_v18 = vld [vmem:[%s1975_s1 + $0x58] sm:$0xff] (!%p183_p3)  ;;  %v382_v20 = vld [vmem:[%s1975_s1 + $0xe0] sm:$0xff] (!%p183_p3) }
   0xe   : > { %s1984_s15 = smov (!%p214_p4, %s1456_s15), 1  ;;  %1302 = vmatpush3.bf16.msra.mxu0 %v1301_v15  ;;  %v381_v15 = vld [vmem:[%s1975_s1 + $0xd8] sm:$0xff] }
   0xf   : > { %s1237_s21 = sshll.u32 %s1984_s15, 6  ;;  %1304 = vmatprep.subr.bf16.mxu0 %v1303_v19  ;;  %v1315_v16 = vpack.c.bf16 %v381_v15, %v380_v14  ;;  %v1317_v19 = vpack.c.bf16 %v365_v18, %v364_v17  ;;  %s1238_s10 = sshll.u32 %s1984_s15, 7 }
  0x10   : > { %s1563_s30 = scalar_lea.vmem %s1974_s0, %s1237_s21  ;;  %s1939_s14 = scalar_lea.vmem %s1978_s4, %s1238_s10 }
  0x11   : > { %v258_v21 = vld [vmem:[%s1563_s30] sm:$0xff]  ;;  %v260_v22 = vld [vmem:[%s1563_s30 + $0x10] sm:$0xff]  ;;  %v259_v23 = vld [vmem:[%s1563_s30 + $0x8] sm:$0xff] }
  0x12   : > { %v1571_v27 = vunpack.c.l.bf16 %v258_v21  ;;  %v1573_v28 = vunpack.c.h.bf16 %v258_v21  ;;  %v1575_v29 = vunpack.c.l.bf16 %v260_v22  ;;  %v1577_v30 = vunpack.c.h.bf16 %v260_v22  ;;  %v261_v31 = vld [vmem:[%s1563_s30 + $0x18] sm:$0xff]  ;;  %v263_v36 = vld [vmem:[%s1563_s30 + $0x28] sm:$0xff]  ;;  %v262_v41 = vld [vmem:[%s1563_s30 + $0x20] sm:$0xff]  ;;  %1306 = vmatpush3.bf16.msra.mxu0 %v1305_v24 }
  0x13   : > { %v1580_v32 = vunpack.c.l.bf16 %v259_v23  ;;  %v1582_v33 = vunpack.c.h.bf16 %v259_v23  ;;  %v1584_v34 = vunpack.c.l.bf16 %v261_v31  ;;  %v1586_v35 = vunpack.c.h.bf16 %v261_v31  ;;  %v265_v46 = vld [vmem:[%s1563_s30 + $0x38] sm:$0xff]  ;;  %v264_v51 = vld [vmem:[%s1563_s30 + $0x30] sm:$0xff]  ;;  %1308 = vmatprep.subr.bf16.mxu0 %v1307_v25  ;;  %v383_v21 = vld [vmem:[%s1975_s1 + $0xe8] sm:$0xff] }
  0x14   : > { %v282_v37 = vmul.f32 %v1571_v27, %v1571_v27  ;;  %v283_v38 = vmul.f32 %v1573_v28, %v1573_v28  ;;  %v286_v39 = vmul.f32 %v1575_v29, %v1575_v29  ;;  %v287_v40 = vmul.f32 %v1577_v30, %v1577_v30  ;;  %v366_v23 = vld [vmem:[%s1975_s1 + $0x60] sm:$0xff]  ;;  %v367_v24 = vld [vmem:[%s1975_s1 + $0x68] sm:$0xff]  ;;  %v385_v31 = vld [vmem:[%s1975_s1 + $0xf8] sm:$0xff] }
  0x15   : > { %v284_v42 = vmul.f32 %v1580_v32, %v1580_v32  ;;  %v285_v43 = vmul.f32 %v1582_v33, %v1582_v33  ;;  %v288_v44 = vmul.f32 %v1584_v34, %v1584_v34  ;;  %v289_v45 = vmul.f32 %v1586_v35, %v1586_v35 }
  0x16   : > { %v298_v47 = vadd.f32 %v283_v38, %v282_v37  ;;  %v304_v48 = vadd.f32 %v287_v40, %v286_v39  ;;  %v1607_v49 = vunpack.c.l.bf16 %v263_v36  ;;  %v1609_v50 = vunpack.c.h.bf16 %v263_v36  ;;  %1310 = vmatpush3.bf16.msra.mxu0 %v1309_v26  ;;  %v384_v26 = vld [vmem:[%s1975_s1 + $0xf0] sm:$0xff]  ;;  %v369_v38 = vld [vmem:[%s1975_s1 + $0x78] sm:$0xff] }
  0x17   : > { %v301_v52 = vadd.f32 %v285_v43, %v284_v42  ;;  %v307_v53 = vadd.f32 %v289_v45, %v288_v44  ;;  %v1612_v54 = vunpack.c.l.bf16 %v262_v41  ;;  %v1614_v55 = vunpack.c.h.bf16 %v262_v41  ;;  %1312 = vmatprep.subr.bf16.mxu0 %v1311_v10  ;;  %v368_v36 = vld [vmem:[%s1975_s1 + $0x70] sm:$0xff] }
  0x18   : > { %299 = vadd.xlane.f32.xlu0 %v298_v47  ;;  %305 = vadd.xlane.f32.xlu1 %v304_v48  ;;  %v292_v56 = vmul.f32 %v1607_v49, %v1607_v49  ;;  %v293_v57 = vmul.f32 %v1609_v50, %v1609_v50  ;;  %v1620_v58 = vunpack.c.l.bf16 %v265_v46  ;;  %v1622_v59 = vunpack.c.h.bf16 %v265_v46 }
  0x19   : > { %v290_v60 = vmul.f32 %v1612_v54, %v1612_v54  ;;  %v291_v61 = vmul.f32 %v1614_v55, %v1614_v55  ;;  %v1628_v62 = vunpack.c.l.bf16 %v264_v51  ;;  %v1630_v63 = vunpack.c.h.bf16 %v264_v51 }
  0x1a   : > { %v313_v0 = vadd.f32 %v293_v57, %v292_v56  ;;  %v296_v1 = vmul.f32 %v1620_v58, %v1620_v58  ;;  %v297_v2 = vmul.f32 %v1622_v59, %v1622_v59  ;;  %1314 = vmatpush3.bf16.msra.mxu0 %v1313_v13  ;;  %v1319_v22 = vpack.c.bf16 %v383_v21, %v382_v20 }
  0x1b   : > { %v310_v3 = vadd.f32 %v291_v61, %v290_v60  ;;  %v294_v4 = vmul.f32 %v1628_v62, %v1628_v62  ;;  %v295_v5 = vmul.f32 %v1630_v63, %v1630_v63  ;;  %1316 = vmatprep.subr.bf16.mxu0 %v1315_v16  ;;  %v1321_v25 = vpack.c.bf16 %v367_v24, %v366_v23 }
  0x1c   : > { %302 = vadd.xlane.f32.xlu0 %v301_v52  ;;  %308 = vadd.xlane.f32.xlu1 %v307_v53  ;;  %v319_v6 = vadd.f32 %v297_v2, %v296_v1  ;;  %v1323_v37 = vpack.c.bf16 %v385_v31, %v384_v26  ;;  %v1325_v39 = vpack.c.bf16 %v369_v38, %v368_v36 }
  0x1d   : > { %v316_v7 = vadd.f32 %v295_v5, %v294_v4 }
  0x1e   : > { %1318 = vmatpush3.bf16.msra.mxu0 %v1317_v19 }
  0x1f   : > { %1320 = vmatprep.subr.bf16.mxu0 %v1319_v22 }
  0x20   : > { %314 = vadd.xlane.f32.xlu1 %v313_v0  ;;  %311 = vadd.xlane.f32.xlu0 %v310_v3 }
  0x22   : > { %1322 = vmatpush3.bf16.msra.mxu0 %v1321_v25 }
  0x23   : > { %1324 = vmatprep.subr.bf16.mxu0 %v1323_v37 }
  0x24   : > { %320 = vadd.xlane.f32.xlu1 %v319_v6  ;;  %317 = vadd.xlane.f32.xlu0 %v316_v7 }
  0x26   : > { %1326 = vmatpush3.bf16.msra.mxu0 %v1325_v39 }
  0xa5   : > { %v300_v40 = vpop.xlane.xlu0 %299  ;;  %v306_v41 = vpop.xlane.xlu1 %305 }
  0xa6   : > { %v322_v42 = vmax.f32 %v300_v40, 1e-24  ;;  %v324_v43 = vmax.f32 %v306_v41, 1e-24 }
  0xa8   : > { %1376 = vrsqrt.f32 %v322_v42 }
  0xa9   : > { %1378 = vrsqrt.f32 %v324_v43  ;;  %v303_v44 = vpop.xlane.xlu0 %302  ;;  %v309_v45 = vpop.xlane.xlu1 %308 }
  0xaa   : > { %v323_v46 = vmax.f32 %v303_v44, 1e-24  ;;  %v325_v47 = vmax.f32 %v309_v45, 1e-24 }
  0xac   : > { %1380 = vrsqrt.f32 %v323_v46 }
  0xad   : > { %1382 = vrsqrt.f32 %v325_v47  ;;  %v315_v48 = vpop.xlane.xlu1 %314  ;;  %v312_v51 = vpop.xlane.xlu0 %311 }
  0xae   : > { %v327_v52 = vmax.f32 %v315_v48, 1e-24  ;;  %v326_v53 = vmax.f32 %v312_v51, 1e-24 }
  0xb0   : > { %1384 = vrsqrt.f32 %v327_v52 }
  0xb1   : > { %1386 = vrsqrt.f32 %v326_v53  ;;  %v321_v56 = vpop.xlane.xlu1 %320  ;;  %v318_v57 = vpop.xlane.xlu0 %317 }
  0xb2   : > { %v1377_v60 = vpop.eup %1376  ;;  %v329_v61 = vmax.f32 %v321_v56, 1e-24  ;;  %v328_v0 = vmax.f32 %v318_v57, 1e-24 }
  0xb3   : > { %v1379_v1 = vpop.eup %1378  ;;  %v339_v2 = vmul.f32 %v1377_v60, %v1573_v28  ;;  %v338_v3 = vmul.f32 %v1377_v60, %v1571_v27 }
  0xb4   : > { %1388 = vrsqrt.f32 %v329_v61  ;;  %v343_v5 = vmul.f32 %v1379_v1, %v1577_v30  ;;  %v342_v9 = vmul.f32 %v1379_v1, %v1575_v29 }
  0xb5   : > { %457 = vmatprep.mubr.f32.mxu0 %v339_v2  ;;  %1390 = vrsqrt.f32 %v328_v0 }
  0xb6   : > { %v1381_v4 = vpop.eup %1380  ;;  %458 = vmatmul.mubr.f32.vlgmr.msra.gmra.mrb[0].mxu0 %v338_v3 }
  0xb7   : > { %v1383_v6 = vpop.eup %1382  ;;  %v341_v7 = vmul.f32 %v1381_v4, %v1582_v33  ;;  %v340_v8 = vmul.f32 %v1381_v4, %v1580_v32 }
  0xb8   : > { %v345_v10 = vmul.f32 %v1383_v6, %v1586_v35  ;;  %v344_v28 = vmul.f32 %v1383_v6, %v1584_v34 }
  0xb9   : > { %462 = vmatprep.mubr.f32.mxu0 %v341_v7  ;;  %v1327_v27 = vpack.c.bf16 %v341_v7, %v339_v2  ;;  %v1329_v11 = vpack.c.bf16 %v340_v8, %v338_v3 }
  0xba   : > { %v1385_v12 = vpop.eup %1384  ;;  %463 = vmatmul.mubr.f32.gmra.mrb[2].mxu0 %v340_v8  ;;  %v1331_v13 = vpack.c.bf16 %v345_v10, %v343_v5  ;;  %v1333_v33 = vpack.c.bf16 %v344_v28, %v342_v9 }
  0xbb   : > { %v1387_v14 = vpop.eup %1386  ;;  %1328 = vmatprep.subr.bf16.mxu1 %v1327_v27  ;;  %467 = vmatprep.mubr.f32.mxu0 %v343_v5  ;;  %v349_v30 = vmul.f32 %v1385_v12, %v1609_v50  ;;  %v348_v35 = vmul.f32 %v1385_v12, %v1607_v49 }
  0xbc   : > { %1330 = vmatpush1.bf16.msra.mxu1 %v1329_v11  ;;  %v347_v32 = vmul.f32 %v1387_v14, %v1614_v55  ;;  %v346_v29 = vmul.f32 %v1387_v14, %v1612_v54 }
  0xbd   : > { %1332 = vmatprep.subr.bf16.mxu1 %v1331_v13 }
  0xbe   : > { %v1389_v34 = vpop.eup %1388  ;;  %468 = vmatmul.mubr.f32.gmra.mrb[4].mxu0 %v342_v9  ;;  %v1335_v15 = vpack.c.bf16 %v349_v30, %v347_v32  ;;  %v1337_v18 = vpack.c.bf16 %v348_v35, %v346_v29 }
  0xbf   : > { %v1391_v16 = vpop.eup %1390  ;;  %472 = vmatprep.mubr.f32.mxu0 %v345_v10  ;;  %v353_v17 = vmul.f32 %v1389_v34, %v1622_v59  ;;  %v352_v55 = vmul.f32 %v1389_v34, %v1620_v58  ;;  %v1226_v58 = vld [vmem:[%s1976_s2] ss:$0 sm:$0xff] }
  0xc0   : > { %1334 = vmatpush1.bf16.msra.mxu1 %v1333_v33  ;;  %v351_v50 = vmul.f32 %v1391_v16, %v1630_v63  ;;  %v350_v19 = vmul.f32 %v1391_v16, %v1628_v62 }
  0xc1   : > { %1336 = vmatprep.subr.bf16.mxu1 %v1335_v15 }
  0xc2   : > { %473 = vmatmul.mubr.f32.gmra.mrb[6].mxu0 %v344_v28  ;;  %v1339_v54 = vpack.c.bf16 %v353_v17, %v351_v50  ;;  %v1341_v49 = vpack.c.bf16 %v352_v55, %v350_v19 }
  0xc3   : > { %477 = vmatprep.mubr.f32.mxu0 %v347_v32 }
  0xc4   : > { %1338 = vmatpush1.bf16.msra.mxu1 %v1337_v18 }
  0xc5   : > { %1340 = vmatprep.subr.bf16.mxu1 %v1339_v54 }
  0xc6   : > { %478 = vmatmul.mubr.f32.gmra.mrb[8].mxu0 %v346_v29 }
  0xc7   : > { %482 = vmatprep.mubr.f32.mxu0 %v349_v30 }
  0xc8   : > { %1342 = vmatpush1.bf16.msra.mxu1 %v1341_v49 }
  0xca   : > { %483 = vmatmul.mubr.f32.gmra.mrb[10].mxu0 %v348_v35 }
  0xcb   : > { %487 = vmatprep.mubr.f32.mxu0 %v351_v50 }
  0xce   : > { %488 = vmatmul.mubr.f32.gmra.mrb[12].mxu0 %v350_v19 }
  0xcf   : > { %492 = vmatprep.mubr.f32.mxu0 %v353_v17 }
  0xd2   : > { %493 = vmatmul.mubr.f32.gmra.mrb[14].mxu0 %v352_v55 }
 0x189   : > { %v1271_v59 = vpop.f32.mrb[0].mxu0 }
 0x18a   : > { %v1272_v63 = vpop.f32.mrb[1].mxu0 }
 0x18b   : > { %v1273_v62 = vadd.f32 %v1272_v63, %v1271_v59 }
 0x18d   : > { %v1274_v20 = vpop.f32.mrb[2].mxu0  ;;  %v460_v21 = vadd.f32 %v1273_v62, %v1226_v58 }
 0x18e   : > { %v1275_v22 = vpop.f32.mrb[3].mxu0 }
 0x18f   : > { %v1276_v23 = vadd.f32 %v1275_v22, %v1274_v20  ;;  %v499_v24 = vsel %vm498_vm0, %v460_v21, -inf }
 0x190   : > { %500 = vmax.xlane.f32.xlu0 %v499_v24 }
 0x191   : > { %v1277_v25 = vpop.f32.mrb[4].mxu0  ;;  %v465_v26 = vadd.f32 %v1276_v23, %v1226_v58 }
 0x192   : > { %v1278_v31 = vpop.f32.mrb[5].mxu0 }
 0x193   : > { %v1279_v36 = vadd.f32 %v1278_v31, %v1277_v25  ;;  %v502_v37 = vsel %vm498_vm0, %v465_v26, -inf }
 0x194   : > { %503 = vmax.xlane.f32.xlu1 %v502_v37 }
 0x195   : > { %v1280_v38 = vpop.f32.mrb[6].mxu0  ;;  %v470_v39 = vadd.f32 %v1279_v36, %v1226_v58 }
 0x196   : > { %v1281_v40 = vpop.f32.mrb[7].mxu0 }
 0x197   : > { %v1282_v41 = vadd.f32 %v1281_v40, %v1280_v38  ;;  %v505_v42 = vsel %vm498_vm0, %v470_v39, -inf }
 0x198   : > { %506 = vmax.xlane.f32.xlu0 %v505_v42 }
 0x199   : > { %v1283_v43 = vpop.f32.mrb[8].mxu0  ;;  %v475_v44 = vadd.f32 %v1282_v41, %v1226_v58  ;;  %v1466_v41 = vmov 0.0  }
 0x19a   : > { %v1284_v45 = vpop.f32.mrb[9].mxu0  ;;  %800 = vmatprep.mubr.f32.mxu1 %v1466_v41  ;;  %250 = vst.msk [vmem:[#allocation3] sm:$0xff] %vm249_vm1, %v1466_v41  ;;  %251 = vst.msk [vmem:[#allocation3 + $0x8] sm:$0xff] %vm249_vm1, %v1466_v41 }
 0x19b   : > { %v1285_v46 = vadd.f32 %v1284_v45, %v1283_v43  ;;  %v508_v47 = vsel %vm498_vm0, %v475_v44, -inf  ;;  %252 = vst.msk [vmem:[#allocation3 + $0x10] sm:$0xff] %vm249_vm1, %v1466_v41  ;;  %253 = vst.msk [vmem:[#allocation3 + $0x18] sm:$0xff] %vm249_vm1, %v1466_v41 }
 0x19c   : > { %509 = vmax.xlane.f32.xlu1 %v508_v47  ;;  %254 = vst.msk [vmem:[#allocation3 + $0x20] sm:$0xff] %vm249_vm1, %v1466_v41  ;;  %255 = vst.msk [vmem:[#allocation3 + $0x28] sm:$0xff] %vm249_vm1, %v1466_v41 }
 0x19d   : > { %v1286_v48 = vpop.f32.mrb[10].mxu0  ;;  %v480_v51 = vadd.f32 %v1285_v46, %v1226_v58  ;;  %256 = vst.msk [vmem:[#allocation3 + $0x30] sm:$0xff] %vm249_vm1, %v1466_v41  ;;  %257 = vst.msk [vmem:[#allocation3 + $0x38] sm:$0xff] %vm249_vm1, %v1466_v41 }
 0x19e   : > { %v1287_v52 = vpop.f32.mrb[11].mxu0 }
 0x19f   : > { %v1288_v53 = vadd.f32 %v1287_v52, %v1286_v48  ;;  %v511_v56 = vsel %vm498_vm0, %v480_v51, -inf }
 0x1a0   : > { %512 = vmax.xlane.f32.xlu0 %v511_v56 }
 0x1a1   : > { %v1289_v57 = vpop.f32.mrb[12].mxu0  ;;  %v485_v60 = vadd.f32 %v1288_v53, %v1226_v58 }
 0x1a2   : > { %v1290_v61 = vpop.f32.mrb[13].mxu0 }
 0x1a3   : > { %v1291_v0 = vadd.f32 %v1290_v61, %v1289_v57  ;;  %v514_v1 = vsel %vm498_vm0, %v485_v60, -inf }
 0x1a4   : > { %515 = vmax.xlane.f32.xlu1 %v514_v1 }
 0x1a5   : > { %v1292_v2 = vpop.f32.mrb[14].mxu0  ;;  %v490_v3 = vadd.f32 %v1291_v0, %v1226_v58 }
 0x1a6   : > { %v1293_v4 = vpop.f32.mrb[15].mxu0 }
 0x1a7   : > { %v1294_v5 = vadd.f32 %v1293_v4, %v1292_v2  ;;  %v517_v6 = vsel %vm498_vm0, %v490_v3, -inf }
 0x1a8   : > { %518 = vmax.xlane.f32.xlu0 %v517_v6 }
 0x1a9   : > { %v495_v7 = vadd.f32 %v1294_v5, %v1226_v58 }
 0x1ab   : > { %v520_v8 = vsel %vm498_vm0, %v495_v7, -inf }
 0x1ac   : > { %521 = vmax.xlane.f32.xlu1 %v520_v8 }
 0x21d   : > { %v501_v9 = vpop.xlane.xlu0 %500 }
 0x21e   : > { %v523_v10 = vsub.f32 %v460_v21, %v501_v9 }
 0x220   : > { %v531_v28 = vmul.f32 1.442695, %v523_v10 }
 0x221   : > { %v504_v27 = vpop.xlane.xlu1 %503 }
 0x222   : > { %1392 = vpow2.f32 %v531_v28  ;;  %v524_v11 = vsub.f32 %v465_v26, %v504_v27 }
 0x224   : > { %v533_v12 = vmul.f32 1.442695, %v524_v11 }
 0x225   : > { %v507_v13 = vpop.xlane.xlu0 %506 }
 0x226   : > { %1394 = vpow2.f32 %v533_v12  ;;  %v525_v14 = vsub.f32 %v470_v39, %v507_v13 }
 0x228   : > { %v535_v30 = vmul.f32 1.442695, %v525_v14 }
 0x229   : > { %v510_v33 = vpop.xlane.xlu1 %509 }
 0x22a   : > { %1396 = vpow2.f32 %v535_v30  ;;  %v526_v32 = vsub.f32 %v475_v44, %v510_v33 }
 0x22c   : > { %v1393_v29 = vpop.eup %1392  ;;  %v537_v35 = vmul.f32 1.442695, %v526_v32 }
 0x22d   : > { %v513_v34 = vpop.xlane.xlu0 %512  ;;  %v547_v15 = vsel %vm498_vm0, %v1393_v29, 0.0 }
 0x22e   : > { %1398 = vpow2.f32 %v537_v35  ;;  %v527_v16 = vsub.f32 %v480_v51, %v513_v34  ;;  %548 = vadd.xlane.f32.xlu0 %v547_v15 }
 0x230   : > { %v1395_v17 = vpop.eup %1394  ;;  %v539_v18 = vmul.f32 1.442695, %v527_v16 }
 0x231   : > { %v516_v50 = vpop.xlane.xlu1 %515  ;;  %v550_v19 = vsel %vm498_vm0, %v1395_v17, 0.0 }
 0x232   : > { %1400 = vpow2.f32 %v539_v18  ;;  %v528_v55 = vsub.f32 %v485_v60, %v516_v50  ;;  %551 = vadd.xlane.f32.xlu1 %v550_v19 }
 0x234   : > { %v1397_v54 = vpop.eup %1396  ;;  %v541_v49 = vmul.f32 1.442695, %v528_v55 }
 0x235   : > { %v519_v59 = vpop.xlane.xlu0 %518  ;;  %v553_v63 = vsel %vm498_vm0, %v1397_v54, 0.0 }
 0x236   : > { %1402 = vpow2.f32 %v541_v49  ;;  %v529_v58 = vsub.f32 %v490_v3, %v519_v59  ;;  %554 = vadd.xlane.f32.xlu0 %v553_v63 }
 0x238   : > { %v1399_v62 = vpop.eup %1398  ;;  %v543_v20 = vmul.f32 1.442695, %v529_v58 }
 0x239   : > { %v522_v21 = vpop.xlane.xlu1 %521  ;;  %v556_v22 = vsel %vm498_vm0, %v1399_v62, 0.0 }
 0x23a   : > { %1404 = vpow2.f32 %v543_v20  ;;  %v530_v23 = vsub.f32 %v495_v7, %v522_v21  ;;  %557 = vadd.xlane.f32.xlu1 %v556_v22 }
 0x23c   : > { %v1401_v24 = vpop.eup %1400  ;;  %v545_v25 = vmul.f32 1.442695, %v530_v23  ;;  %v587_v23 = vld [vmem:[#allocation3] sm:$0xff] }
 0x23d   : > { %v559_v26 = vsel %vm498_vm0, %v1401_v24, 0.0 }
 0x23e   : > { %1406 = vpow2.f32 %v545_v25  ;;  %560 = vadd.xlane.f32.xlu0 %v559_v26 }
 0x240   : > { %v1403_v31 = vpop.eup %1402 }
 0x241   : > { %v562_v36 = vsel %vm498_vm0, %v1403_v31, 0.0 }
 0x242   : > { %563 = vadd.xlane.f32.xlu1 %v562_v36 }
 0x244   : > { %v1405_v37 = vpop.eup %1404 }
 0x245   : > { %v565_v38 = vsel %vm498_vm0, %v1405_v37, 0.0 }
 0x246   : > { %566 = vadd.xlane.f32.xlu0 %v565_v38  ;;  %v589_v38 = vld [vmem:[#allocation3 + $0x10] sm:$0xff] }
 0x248   : > { %v1722_v39 = vpop.eup %1406 }
 0x249   : > { %v568_v40 = vsel %vm498_vm0, %v1722_v39, 0.0 }
 0x24a   : > { %569 = vadd.xlane.f32.xlu1 %v568_v40 }
 0x2bb   : > { %v549_v42 = vpop.xlane.xlu0 %548 }
 0x2bc   : > { %1408 = vrcp.f32 %v549_v42 }
 0x2bf   : > { %v552_v43 = vpop.xlane.xlu1 %551 }
 0x2c0   : > { %1410 = vrcp.f32 %v552_v43  ;;  %v590_v43 = vld [vmem:[#allocation3 + $0x18] sm:$0xff] }
 0x2c3   : > { %v555_v44 = vpop.xlane.xlu0 %554 }
 0x2c4   : > { %1412 = vrcp.f32 %v555_v44 }
 0x2c6   : > { %v1409_v45 = vpop.eup %1408 }
 0x2c7   : > { %v558_v46 = vpop.xlane.xlu1 %557  ;;  %v579_v47 = vmul.f32 %v1409_v45, %v1393_v29 }
 0x2c8   : > { %1414 = vrcp.f32 %v558_v46  ;;  %v591_v46 = vld [vmem:[#allocation3 + $0x20] sm:$0xff] }
 0x2c9   : > { %680 = vxpose.xlu0.b32.start [1/8] (short) (narrow) %v579_v47, 64  ;;  %v595_v5 = vsel %vm498_vm0, %v579_v47, 0.0 }
 0x2ca   : > { %v1411_v48 = vpop.eup %1410 }
 0x2cb   : > { %v561_v51 = vpop.xlane.xlu0 %560  ;;  %v580_v52 = vmul.f32 %v1411_v48, %v1395_v17 }
 0x2cc   : > { %1416 = vrcp.f32 %v561_v51 }
 0x2cd   : > { %681 = vxpose.xlu0.b32.cont [2/8] (short) (narrow) %v580_v52, 64  ;;  %v596_v2 = vsel %vm498_vm0, %v580_v52, 0.0  ;;  %v592_v52 = vld [vmem:[#allocation3 + $0x28] sm:$0xff] }
 0x2ce   : > { %v1413_v53 = vpop.eup %1412  ;;  %v597_v8 = vadd.f32 %v596_v2, %v595_v5  ;;  %v594_v2 = vld [vmem:[#allocation3 + $0x38] sm:$0xff] }
 0x2cf   : > { %v564_v56 = vpop.xlane.xlu1 %563  ;;  %v581_v57 = vmul.f32 %v1413_v53, %v1397_v54  ;;  %v1467_v54 = vmov 0  }
 0x2d0   : > { %1418 = vrcp.f32 %v564_v56  ;;  %1374 = vset.pattern.permute.xlu1 %v1467_v54 }
 0x2d1   : > { %682 = vxpose.xlu0.b32.cont [3/8] (short) (narrow) %v581_v57, 64  ;;  %v598_v6 = vsel %vm498_vm0, %v581_v57, 0.0 }
 0x2d2   : > { %v1415_v60 = vpop.eup %1414  ;;  %v599_v28 = vadd.f32 %v598_v6, %v597_v8 }
 0x2d3   : > { %v567_v61 = vpop.xlane.xlu0 %566  ;;  %v582_v0 = vmul.f32 %v1415_v60, %v1399_v62  ;;  %v593_v60 = vld [vmem:[#allocation3 + $0x30] sm:$0xff] }
 0x2d4   : > { %1420 = vrcp.f32 %v567_v61 }
 0x2d5   : > { %683 = vxpose.xlu0.b32.cont [4/8] (short) (narrow) %v582_v0, 64  ;;  %v600_v9 = vsel %vm498_vm0, %v582_v0, 0.0 }
 0x2d6   : > { %v1417_v1 = vpop.eup %1416  ;;  %v601_v12 = vadd.f32 %v600_v9, %v599_v28 }
 0x2d7   : > { %v570_v3 = vpop.xlane.xlu1 %569  ;;  %v583_v4 = vmul.f32 %v1417_v1, %v1401_v24 }
 0x2d8   : > { %1422 = vrcp.f32 %v570_v3 }
 0x2d9   : > { %684 = vxpose.xlu0.b32.cont [5/8] (short) (narrow) %v583_v4, 64  ;;  %v602_v27 = vsel %vm498_vm0, %v583_v4, 0.0 }
 0x2da   : > { %v1419_v7 = vpop.eup %1418  ;;  %v603_v30 = vadd.f32 %v602_v27, %v601_v12  ;;  %v901_v27 = vld [vmem:[%s1977_s3 + $0x8] sm:$0xff] }
 0x2db   : > { %v584_v10 = vmul.f32 %v1419_v7, %v1403_v31  ;;  %v588_v31 = vld [vmem:[#allocation3 + $0x8] sm:$0xff] }
 0x2dd   : > { %685 = vxpose.xlu0.b32.cont [6/8] (short) (narrow) %v584_v10, 64  ;;  %v604_v13 = vsel %vm498_vm0, %v584_v10, 0.0  ;;  %v900_v10 = vld [vmem:[%s1977_s3] sm:$0xff] }
 0x2de   : > { %v1421_v11 = vpop.eup %1420  ;;  %v605_v29 = vadd.f32 %v604_v13, %v603_v30  ;;  %v902_v13 = vld [vmem:[%s1977_s3 + $0x10] sm:$0xff]  ;;  %v903_v30 = vld [vmem:[%s1977_s3 + $0x18] sm:$0xff] }
 0x2df   : > { %v585_v14 = vmul.f32 %v1421_v11, %v1405_v37 }
 0x2e1   : > { %686 = vxpose.xlu0.b32.cont [7/8] (short) (narrow) %v585_v14, 64  ;;  %v606_v33 = vsel %vm498_vm0, %v585_v14, 0.0 }
 0x2e2   : > { %v1423_v32 = vpop.eup %1422  ;;  %v607_v34 = vadd.f32 %v606_v33, %v605_v29 }
 0x2e3   : > { %v586_v35 = vmul.f32 %v1423_v32, %v1722_v39 }
 0x2e5   : > { %v608_v15 = vsel %vm498_vm0, %v586_v35, 0.0  ;;  %687 = vxpose.xlu0.b32.end [8/8] (short) (narrow) %v586_v35, 64 }
 0x2e6   : > { %v609_v16 = vadd.f32 %v608_v15, %v607_v34 }
 0x2e8   : > { %v610_v17 = vrot.slane %v609_v16, 4 }
 0x2ea   : > { %v611_v18 = vadd.f32 %v610_v17, %v609_v16  ;;  %v904_v17 = vld [vmem:[%s1977_s3 + $0x20] sm:$0xff] }
 0x2ec   : > { %v612_v50 = vrot.slane %v611_v18, 2 }
 0x2ee   : > { %v613_v19 = vadd.f32 %v612_v50, %v611_v18 }
 0x2f0   : > { %v614_v55 = vrot.slane %v613_v19, 1 }
 0x2f2   : > { %v615_v49 = vadd.f32 %v614_v55, %v613_v19  ;;  %v905_v19 = vld [vmem:[%s1977_s3 + $0x28] sm:$0xff] }
 0x2f4   : > { %617 = vbcast.lane.b32.xlu1 %v615_v49, 256 }
 0x2f8   : > { %621 = vbcast.lane.b32.xlu1 %v615_v49, 264 }
 0x2fc   : > { %625 = vbcast.lane.b32.xlu1 %v615_v49, 272 }
 0x300   : > { %629 = vbcast.lane.b32.xlu1 %v615_v49, 280 }
 0x304   : > { %633 = vbcast.lane.b32.xlu1 %v615_v49, 288 }
 0x308   : > { %637 = vbcast.lane.b32.xlu1 %v615_v49, 296 }
 0x30c   : > { %641 = vbcast.lane.b32.xlu1 %v615_v49, 304 }
 0x30e   : > { %1375 = vset.pattern.permute.xlu0 %v1467_v54 }
 0x310   : > { %645 = vbcast.lane.b32.xlu1 %v615_v49, 312 }
 0x349   : > { %v696_v59 = vpop.trf.xlu0 }
 0x34a   : > { %1227 = vmatmul.mubr.msk.f32.vlgmr.msra.gmra.mrb[0].mxu1 %vm498_vm0, %v696_v59 }
 0x34b   : > { %806 = vmatprep.mubr.f32.mxu1 %v1466_v41 }
 0x34d   : > { %v697_v63 = vpop.trf.xlu0 }
 0x34e   : > { %1228 = vmatmul.mubr.msk.f32.gmra.mrb[2].mxu1 %vm498_vm0, %v697_v63 }
 0x34f   : > { %812 = vmatprep.mubr.f32.mxu1 %v1466_v41 }
 0x351   : > { %v698_v58 = vpop.trf.xlu0 }
 0x352   : > { %1229 = vmatmul.mubr.msk.f32.gmra.mrb[4].mxu1 %vm498_vm0, %v698_v58 }
 0x353   : > { %818 = vmatprep.mubr.f32.mxu1 %v1466_v41 }
 0x355   : > { %v699_v62 = vpop.trf.xlu0 }
 0x356   : > { %1230 = vmatmul.mubr.msk.f32.gmra.mrb[6].mxu1 %vm498_vm0, %v699_v62 }
 0x357   : > { %824 = vmatprep.mubr.f32.mxu1 %v1466_v41 }
 0x359   : > { %v700_v20 = vpop.trf.xlu0 }
 0x35a   : > { %1231 = vmatmul.mubr.msk.f32.gmra.mrb[8].mxu1 %vm498_vm0, %v700_v20  ;;  %v906_v20 = vld [vmem:[%s1977_s3 + $0x30] sm:$0xff] }
 0x35b   : > { %830 = vmatprep.mubr.f32.mxu1 %v1466_v41 }
 0x35d   : > { %v701_v21 = vpop.trf.xlu0 }
 0x35e   : > { %1232 = vmatmul.mubr.msk.f32.gmra.mrb[10].mxu1 %vm498_vm0, %v701_v21 }
 0x35f   : > { %836 = vmatprep.mubr.f32.mxu1 %v1466_v41 }
 0x361   : > { %v702_v22 = vpop.trf.xlu0 }
 0x362   : > { %1233 = vmatmul.mubr.msk.f32.gmra.mrb[12].mxu1 %vm498_vm0, %v702_v22 }
 0x363   : > { %842 = vmatprep.mubr.f32.mxu1 %v1466_v41 }
 0x365   : > { %v703_v24 = vpop.trf.xlu0 }
 0x366   : > { %1234 = vmatmul.mubr.msk.f32.gmra.mrb[14].mxu1 %vm498_vm0, %v703_v24  ;;  %v618_v25 = vpop.permute.xlu1 %617  ;;  %v907_v24 = vld [vmem:[%s1977_s3 + $0x38] sm:$0xff] }
 0x367   : > { %v647_v26 = vadd.f32 %v618_v25, %v587_v23 }
 0x369   : > { %656 = vst.msk [vmem:[#allocation3] sm:$0xff] %vm249_vm1, %v647_v26 }
 0x36a   : > { %v622_v36 = vpop.permute.xlu1 %621 }
 0x36b   : > { %v648_v37 = vadd.f32 %v622_v36, %v588_v31 }
 0x36d   : > { %657 = vst.msk [vmem:[#allocation3 + $0x8] sm:$0xff] %vm249_vm1, %v648_v37 }
 0x36e   : > { %v626_v39 = vpop.permute.xlu1 %625 }
 0x36f   : > { %v649_v40 = vadd.f32 %v626_v39, %v589_v38 }
 0x370   : > { %v916_v42 = vld [vmem:[#allocation3] sm:$0xff] }
 0x371   : > { %658 = vst.msk [vmem:[#allocation3 + $0x10] sm:$0xff] %vm249_vm1, %v649_v40  ;;  %926 = vperm.xlu1 %1374, %v916_v42   ;;  %v908_v40 = vld [vmem:[%s1977_s3 + $0x40] sm:$0xff] }
 0x372   : > { %v630_v41 = vpop.permute.xlu1 %629 }
 0x373   : > { %v650_v44 = vadd.f32 %v630_v41, %v590_v43  ;;  %v909_v41 = vld [vmem:[%s1977_s3 + $0x48] sm:$0xff] }
 0x374   : > { %v917_v45 = vld [vmem:[#allocation3 + $0x8] sm:$0xff] }
 0x375   : > { %659 = vst.msk [vmem:[#allocation3 + $0x18] sm:$0xff] %vm249_vm1, %v650_v44  ;;  %931 = vperm.xlu1 %1374, %v917_v45  }
 0x376   : > { %v634_v47 = vpop.permute.xlu1 %633 }
 0x377   : > { %v651_v48 = vadd.f32 %v634_v47, %v591_v46 }
 0x378   : > { %v918_v51 = vld [vmem:[#allocation3 + $0x10] sm:$0xff] }
 0x379   : > { %660 = vst.msk [vmem:[#allocation3 + $0x20] sm:$0xff] %vm249_vm1, %v651_v48  ;;  %936 = vperm.xlu1 %1374, %v918_v51  }
 0x37a   : > { %v638_v53 = vpop.permute.xlu1 %637 }
 0x37b   : > { %v652_v56 = vadd.f32 %v638_v53, %v592_v52 }
 0x37c   : > { %v919_v57 = vld [vmem:[#allocation3 + $0x18] sm:$0xff] }
 0x37d   : > { %661 = vst.msk [vmem:[#allocation3 + $0x28] sm:$0xff] %vm249_vm1, %v652_v56  ;;  %941 = vperm.xlu1 %1374, %v919_v57   ;;  %v910_v56 = vld [vmem:[%s1977_s3 + $0x50] sm:$0xff] }
 0x37e   : > { %v642_v61 = vpop.permute.xlu1 %641 }
 0x37f   : > { %v653_v0 = vadd.f32 %v642_v61, %v593_v60  ;;  %v911_v61 = vld [vmem:[%s1977_s3 + $0x58] sm:$0xff] }
 0x380   : > { %v920_v1 = vld [vmem:[#allocation3 + $0x20] sm:$0xff] }
 0x381   : > { %662 = vst.msk [vmem:[#allocation3 + $0x30] sm:$0xff] %vm249_vm1, %v653_v0  ;;  %946 = vperm.xlu1 %1374, %v920_v1  }
 0x382   : > { %v646_v3 = vpop.permute.xlu1 %645 }
 0x383   : > { %v654_v4 = vadd.f32 %v646_v3, %v594_v2 }
 0x384   : > { %v921_v5 = vld [vmem:[#allocation3 + $0x28] sm:$0xff] }
 0x385   : > { %663 = vst.msk [vmem:[#allocation3 + $0x38] sm:$0xff] %vm249_vm1, %v654_v4  ;;  %951 = vperm.xlu1 %1374, %v921_v5  }
 0x388   : > { %v922_v6 = vld [vmem:[#allocation3 + $0x30] sm:$0xff] }
 0x389   : > { %956 = vperm.xlu1 %1374, %v922_v6  }
 0x38c   : > { %v923_v7 = vld [vmem:[#allocation3 + $0x38] sm:$0xff] }
 0x38d   : > { %961 = vperm.xlu0 %1375, %v923_v7   ;;  %v912_v7 = vld [vmem:[%s1977_s3 + $0x60] sm:$0xff] }
 0x3f0   : > { %v927_v8 = vpop.permute.xlu1 %926 }
 0x3f1   : > { %v964_v11 = vmul.f32 %v927_v8, %v900_v10  ;;  %v965_v12 = vmul.f32 %v927_v8, %v901_v27 }
 0x3f4   : > { %v932_v9 = vpop.permute.xlu1 %931 }
 0x3f5   : > { %v966_v34 = vmul.f32 %v932_v9, %v902_v13  ;;  %v967_v16 = vmul.f32 %v932_v9, %v903_v30 }
 0x3f8   : > { %v937_v28 = vpop.permute.xlu1 %936 }
 0x3f9   : > { %v968_v63 = vmul.f32 %v937_v28, %v904_v17  ;;  %v969_v62 = vmul.f32 %v937_v28, %v905_v19  ;;  %v913_v28 = vld [vmem:[%s1977_s3 + $0x68] sm:$0xff]  ;;  %v915_v17 = vld [vmem:[%s1977_s3 + $0x78] sm:$0xff] }
 0x3fc   : > { %v942_v29 = vpop.permute.xlu1 %941 }
 0x3fd   : > { %v970_v37 = vmul.f32 %v942_v29, %v906_v20  ;;  %v971_v39 = vmul.f32 %v942_v29, %v907_v24  ;;  %v914_v29 = vld [vmem:[%s1977_s3 + $0x70] sm:$0xff] }
 0x400   : > { %v947_v21 = vpop.permute.xlu1 %946 }
 0x401   : > { %v972_v51 = vmul.f32 %v947_v21, %v908_v40  ;;  %v973_v53 = vmul.f32 %v947_v21, %v909_v41 }
 0x404   : > { %v952_v46 = vpop.permute.xlu1 %951 }
 0x405   : > { %v974_v4 = vmul.f32 %v952_v46, %v910_v56  ;;  %v975_v6 = vmul.f32 %v952_v46, %v911_v61 }
 0x408   : > { %v957_v8 = vpop.permute.xlu1 %956 }
 0x41d   : > { %v802_v14 = vpop.f32.mrb[0].mxu1 }
 0x41e   : > { %v1787_v33 = vsub.f32 %v802_v14, %v964_v11  ;;  %v804_v32 = vpop.f32.mrb[1].mxu1  ;;  %v976_v14 = vmul.f32 %v957_v8, %v912_v7 }
 0x41f   : > { %v1789_v35 = vsub.f32 %v804_v32, %v965_v12  ;;  %v977_v32 = vmul.f32 %v957_v8, %v913_v28 }
 0x420   : > { %v996_v15 = vmul.f32 %v1787_v33, %v1787_v33 }
 0x421   : > { %v997_v18 = vmul.f32 %v1789_v35, %v1789_v35  ;;  %v808_v50 = vpop.f32.mrb[2].mxu1 }
 0x422   : > { %v1801_v55 = vsub.f32 %v808_v50, %v966_v34  ;;  %v810_v54 = vpop.f32.mrb[3].mxu1  ;;  %v962_v34 = vpop.permute.xlu0 %961 }
 0x423   : > { %v1803_v49 = vsub.f32 %v810_v54, %v967_v16  ;;  %v1012_v59 = vadd.f32 %v997_v18, %v996_v15 }
 0x424   : > { %v998_v58 = vmul.f32 %v1801_v55, %v1801_v55 }
 0x425   : > { %v999_v22 = vmul.f32 %v1803_v49, %v1803_v49  ;;  %v814_v23 = vpop.f32.mrb[4].mxu1  ;;  %1013 = vadd.xlane.f32.xlu1 %v1012_v59  ;;  %v978_v59 = vmul.f32 %v962_v34, %v914_v29 }
 0x426   : > { %v1815_v25 = vsub.f32 %v814_v23, %v968_v63  ;;  %v816_v26 = vpop.f32.mrb[5].mxu1 }
 0x427   : > { %v1817_v31 = vsub.f32 %v816_v26, %v969_v62  ;;  %v1015_v36 = vadd.f32 %v999_v22, %v998_v58  ;;  %v979_v58 = vmul.f32 %v962_v34, %v915_v17 }
 0x428   : > { %v1000_v38 = vmul.f32 %v1815_v25, %v1815_v25 }
 0x429   : > { %v1001_v42 = vmul.f32 %v1817_v31, %v1817_v31  ;;  %v820_v43 = vpop.f32.mrb[6].mxu1  ;;  %1016 = vadd.xlane.f32.xlu1 %v1015_v36 }
 0x42a   : > { %v1829_v44 = vsub.f32 %v820_v43, %v970_v37  ;;  %v822_v45 = vpop.f32.mrb[7].mxu1 }
 0x42b   : > { %v1831_v47 = vsub.f32 %v822_v45, %v971_v39  ;;  %v1018_v48 = vadd.f32 %v1001_v42, %v1000_v38 }
 0x42c   : > { %v1002_v52 = vmul.f32 %v1829_v44, %v1829_v44 }
 0x42d   : > { %v1003_v57 = vmul.f32 %v1831_v47, %v1831_v47  ;;  %v826_v60 = vpop.f32.mrb[8].mxu1  ;;  %1019 = vadd.xlane.f32.xlu1 %v1018_v48 }
 0x42e   : > { %v1843_v0 = vsub.f32 %v826_v60, %v972_v51  ;;  %v828_v1 = vpop.f32.mrb[9].mxu1 }
 0x42f   : > { %v1845_v2 = vsub.f32 %v828_v1, %v973_v53  ;;  %v1021_v3 = vadd.f32 %v1003_v57, %v1002_v52 }
 0x430   : > { %v1004_v5 = vmul.f32 %v1843_v0, %v1843_v0 }
 0x431   : > { %v1005_v9 = vmul.f32 %v1845_v2, %v1845_v2  ;;  %v832_v10 = vpop.f32.mrb[10].mxu1  ;;  %1022 = vadd.xlane.f32.xlu0 %v1021_v3 }
 0x432   : > { %v1857_v27 = vsub.f32 %v832_v10, %v974_v4  ;;  %v834_v11 = vpop.f32.mrb[11].mxu1 }
 0x433   : > { %v1859_v12 = vsub.f32 %v834_v11, %v975_v6  ;;  %v1024_v13 = vadd.f32 %v1005_v9, %v1004_v5 }
 0x434   : > { %v1006_v30 = vmul.f32 %v1857_v27, %v1857_v27 }
 0x435   : > { %v1007_v15 = vmul.f32 %v1859_v12, %v1859_v12  ;;  %v838_v16 = vpop.f32.mrb[12].mxu1  ;;  %1025 = vadd.xlane.f32.xlu1 %v1024_v13 }
 0x436   : > { %v1871_v18 = vsub.f32 %v838_v16, %v976_v14  ;;  %v840_v50 = vpop.f32.mrb[13].mxu1 }
 0x437   : > { %v1873_v19 = vsub.f32 %v840_v50, %v977_v32  ;;  %v1027_v54 = vadd.f32 %v1007_v15, %v1006_v30 }
 0x438   : > { %v1008_v63 = vmul.f32 %v1871_v18, %v1871_v18 }
 0x439   : > { %v1009_v62 = vmul.f32 %v1873_v19, %v1873_v19  ;;  %v844_v20 = vpop.f32.mrb[14].mxu1  ;;  %1028 = vadd.xlane.f32.xlu1 %v1027_v54 }
 0x43a   : > { %v1879_v21 = vsub.f32 %v844_v20, %v978_v59  ;;  %v846_v22 = vpop.f32.mrb[15].mxu1 }
 0x43b   : > { %v1881_v23 = vsub.f32 %v846_v22, %v979_v58  ;;  %v1030_v24 = vadd.f32 %v1009_v62, %v1008_v63 }
 0x43c   : > { %v1010_v26 = vmul.f32 %v1879_v21, %v1879_v21 }
 0x43d   : > { %v1011_v36 = vmul.f32 %v1881_v23, %v1881_v23  ;;  %1031 = vadd.xlane.f32.xlu1 %v1030_v24 }
 0x43f   : > { %v1033_v37 = vadd.f32 %v1011_v36, %v1010_v26 }
 0x441   : > { %1034 = vadd.xlane.f32.xlu1 %v1033_v37 }
 0x4b2   : > { %v1014_v38 = vpop.xlane.xlu1 %1013 }
 0x4b3   : > { %v1036_v39 = vmax.f32 %v1014_v38, 1e-24 }
 0x4b5   : > { %1424 = vrsqrt.f32 %v1036_v39 }
 0x4b6   : > { %v1017_v40 = vpop.xlane.xlu1 %1016 }
 0x4b7   : > { %v1037_v42 = vmax.f32 %v1017_v40, 1e-24 }
 0x4b9   : > { %1426 = vrsqrt.f32 %v1037_v42 }
 0x4ba   : > { %v1020_v43 = vpop.xlane.xlu1 %1019 }
 0x4bb   : > { %v1038_v41 = vmax.f32 %v1020_v43, 1e-24 }
 0x4bd   : > { %1428 = vrsqrt.f32 %v1038_v41 }
 0x4be   : > { %v1023_v45 = vpop.xlane.xlu0 %1022 }
 0x4bf   : > { %v1425_v46 = vpop.eup %1424  ;;  %v1039_v48 = vmax.f32 %v1023_v45, 1e-24 }
 0x4c0   : > { %v1888_v51 = vmul.f32 %v1425_v46, %v1787_v33  ;;  %v1891_v52 = vmul.f32 %v1425_v46, %v1789_v35 }
 0x4c1   : > { %1430 = vrsqrt.f32 %v1039_v48 }
 0x4c2   : > { %v1068_v53 = vmul.f32 %v1888_v51, %v1888_v51  ;;  %v1069_v56 = vmul.f32 %v1891_v52, %v1891_v52  ;;  %v1026_v57 = vpop.xlane.xlu1 %1025 }
 0x4c3   : > { %v1427_v60 = vpop.eup %1426  ;;  %v1040_v61 = vmax.f32 %v1026_v57, 1e-24 }
 0x4c4   : > { %v1898_v1 = vmul.f32 %v1427_v60, %v1801_v55  ;;  %v1901_v3 = vmul.f32 %v1427_v60, %v1803_v49  ;;  %v1084_v33 = vadd.f32 %v1069_v56, %v1068_v53 }
 0x4c5   : > { %1432 = vrsqrt.f32 %v1040_v61 }
 0x4c6   : > { %v1070_v35 = vmul.f32 %v1898_v1, %v1898_v1  ;;  %v1029_v4 = vpop.xlane.xlu1 %1028  ;;  %v1071_v7 = vmul.f32 %v1901_v3, %v1901_v3 }
 0x4c7   : > { %v1429_v5 = vpop.eup %1428  ;;  %v1041_v6 = vmax.f32 %v1029_v4, 1e-24 }
 0x4c8   : > { %v1085_v8 = vadd.f32 %v1084_v33, %v1070_v35  ;;  %v1908_v9 = vmul.f32 %v1429_v5, %v1815_v25  ;;  %v1911_v55 = vmul.f32 %v1429_v5, %v1817_v31 }
 0x4c9   : > { %1434 = vrsqrt.f32 %v1041_v6 }
 0x4ca   : > { %v1086_v49 = vadd.f32 %v1085_v8, %v1071_v7  ;;  %v1072_v10 = vmul.f32 %v1908_v9, %v1908_v9  ;;  %v1032_v28 = vpop.xlane.xlu1 %1031  ;;  %v1073_v14 = vmul.f32 %v1911_v55, %v1911_v55 }
 0x4cb   : > { %v1431_v11 = vpop.eup %1430  ;;  %v1042_v13 = vmax.f32 %v1032_v28, 1e-24 }
 0x4cc   : > { %v1087_v30 = vadd.f32 %v1086_v49, %v1072_v10  ;;  %v1918_v32 = vmul.f32 %v1431_v11, %v1829_v44  ;;  %v1921_v25 = vmul.f32 %v1431_v11, %v1831_v47 }
 0x4cd   : > { %1436 = vrsqrt.f32 %v1042_v13 }
 0x4ce   : > { %v1088_v31 = vadd.f32 %v1087_v30, %v1073_v14  ;;  %v1074_v29 = vmul.f32 %v1918_v32, %v1918_v32  ;;  %v1035_v34 = vpop.xlane.xlu1 %1034  ;;  %v1075_v17 = vmul.f32 %v1921_v25, %v1921_v25 }
 0x4cf   : > { %v1433_v15 = vpop.eup %1432  ;;  %v1043_v16 = vmax.f32 %v1035_v34, 1e-24 }
 0x4d0   : > { %v1089_v50 = vadd.f32 %v1088_v31, %v1074_v29  ;;  %v1060_v54 = vmul.f32 %v1433_v15, %v1843_v0  ;;  %v1061_v44 = vmul.f32 %v1433_v15, %v1845_v2 }
 0x4d1   : > { %1438 = vrsqrt.f32 %v1043_v16 }
 0x4d2   : > { %v1090_v59 = vadd.f32 %v1089_v50, %v1075_v17  ;;  %v1076_v47 = vmul.f32 %v1060_v54, %v1060_v54  ;;  %v1077_v58 = vmul.f32 %v1061_v44, %v1061_v44 }
 0x4d3   : > { %v1435_v63 = vpop.eup %1434 }
 0x4d4   : > { %v1062_v62 = vmul.f32 %v1435_v63, %v1857_v27  ;;  %v1063_v20 = vmul.f32 %v1435_v63, %v1859_v12  ;;  %v1091_v22 = vadd.f32 %v1090_v59, %v1076_v47 }
 0x4d6   : > { %v1078_v24 = vmul.f32 %v1062_v62, %v1062_v62  ;;  %v1092_v26 = vadd.f32 %v1091_v22, %v1077_v58  ;;  %v1079_v0 = vmul.f32 %v1063_v20, %v1063_v20 }
 0x4d7   : > { %v1437_v36 = vpop.eup %1436 }
 0x4d8   : > { %v1064_v37 = vmul.f32 %v1437_v36, %v1871_v18  ;;  %v1065_v38 = vmul.f32 %v1437_v36, %v1873_v19  ;;  %v1093_v39 = vadd.f32 %v1092_v26, %v1078_v24 }
 0x4da   : > { %v1080_v2 = vmul.f32 %v1064_v37, %v1064_v37  ;;  %v1094_v40 = vadd.f32 %v1093_v39, %v1079_v0  ;;  %v1081_v27 = vmul.f32 %v1065_v38, %v1065_v38 }
 0x4db   : > { %v1439_v42 = vpop.eup %1438 }
 0x4dc   : > { %v1066_v43 = vmul.f32 %v1439_v42, %v1879_v21  ;;  %v1067_v41 = vmul.f32 %v1439_v42, %v1881_v23  ;;  %v1095_v45 = vadd.f32 %v1094_v40, %v1080_v2 }
 0x4de   : > { %v1082_v12 = vmul.f32 %v1066_v43, %v1066_v43  ;;  %v1096_v46 = vadd.f32 %v1095_v45, %v1081_v27  ;;  %v1083_v48 = vmul.f32 %v1067_v41, %v1067_v41 }
 0x4e0   : > { %v1097_v53 = vadd.f32 %v1096_v46, %v1082_v12 }
 0x4e2   : > { %v1098_v56 = vadd.f32 %v1097_v53, %v1083_v48 }
 0x4e4   : > { %1099 = vadd.xlane.f32.xlu1 %v1098_v56 }
 0x571   : > { %v1100_v18 = vpop.xlane.xlu1 %1099 }
 0x572   : > { %v1101_v19 = vrot.slane %v1100_v18, 4 }
 0x574   : > { %v1102_v57 = vadd.f32 %v1101_v19, %v1100_v18 }
 0x576   : > { %v1103_v60 = vrot.slane %v1102_v57, 2 }
 0x578   : > { %v1104_v61 = vadd.f32 %v1103_v60, %v1102_v57 }
 0x57a   : > { %v1105_v33 = vrot.slane %v1104_v61, 1 }
 0x57c   : > { %v1106_v35 = vadd.f32 %v1105_v33, %v1104_v61 }
 0x57e   : > { %1343 = vpush %v1106_v35 }
 0x5af   : > { %s1344_s7 = spop %1343 }
 0x5b0   : > { %s1108_s9 = smax.f32 %s1468_s8, %s1344_s7 }
 0x5b1   : > { %v1109_v21 = vstv %s1108_s9 }
 0x5b2   : > { %1440 = vrsqrt.f32 %v1109_v21 }
 0x5bc   : > { %v1441_v23 = vpop.eup %1440 }
 0x5bd   : > { %1345 = vpush %v1441_v23 }
 0x5ee   : > { %s1346_s11 = spop %1345 }
 0x5ef   : > { %v1112_v4 = vstv %s1346_s11 }
 0x5f0   : > { %v1113_v5 = vmul.f32 %v1112_v4, %v1888_v51  ;;  %v1114_v6 = vmul.f32 %v1112_v4, %v1891_v52  ;;  %v1115_v7 = vmul.f32 %v1112_v4, %v1898_v1  ;;  %v1116_v8 = vmul.f32 %v1112_v4, %v1901_v3 }
 0x5f1   : > { %v1117_v49 = vmul.f32 %v1112_v4, %v1908_v9  ;;  %v1118_v10 = vmul.f32 %v1112_v4, %v1911_v55  ;;  %v1119_v28 = vmul.f32 %v1112_v4, %v1918_v32  ;;  %v1120_v11 = vmul.f32 %v1112_v4, %v1921_v25 }
 0x5f2   : > { %v1121_v13 = vmul.f32 %v1112_v4, %v1060_v54  ;;  %v1122_v51 = vmul.f32 %v1112_v4, %v1061_v44  ;;  %v1123_v52 = vmul.f32 %v1112_v4, %v1062_v62  ;;  %v1124_v1 = vmul.f32 %v1112_v4, %v1063_v20  ;;  %1129 = vst [vmem:[%s1939_s14] sm:$0xff] %v1113_v5 }
 0x5f3   : > { %1130 = vst [vmem:[%s1939_s14 + $0x8] sm:$0xff] %v1114_v6  ;;  %1131 = vst [vmem:[%s1939_s14 + $0x10] sm:$0xff] %v1115_v7  ;;  %v1125_v3 = vmul.f32 %v1112_v4, %v1064_v37  ;;  %v1126_v9 = vmul.f32 %v1112_v4, %v1065_v38  ;;  %v1127_v55 = vmul.f32 %v1112_v4, %v1066_v43 }
 0x5f4   : > { %1132 = vst [vmem:[%s1939_s14 + $0x18] sm:$0xff] %v1116_v8  ;;  %v1128_v14 = vmul.f32 %v1112_v4, %v1067_v41  ;;  %1133 = vst [vmem:[%s1939_s14 + $0x20] sm:$0xff] %v1117_v49 }
 0x5f5   : > { %1134 = vst [vmem:[%s1939_s14 + $0x28] sm:$0xff] %v1118_v10  ;;  %1135 = vst [vmem:[%s1939_s14 + $0x30] sm:$0xff] %v1119_v28 }
 0x5f6   : > { %1136 = vst [vmem:[%s1939_s14 + $0x38] sm:$0xff] %v1120_v11  ;;  %1137 = vst [vmem:[%s1939_s14 + $0x40] sm:$0xff] %v1121_v13 }
 0x5f7   : > { %1138 = vst [vmem:[%s1939_s14 + $0x48] sm:$0xff] %v1122_v51  ;;  %1139 = vst [vmem:[%s1939_s14 + $0x50] sm:$0xff] %v1123_v52 }
 0x5f8   : > { %1140 = vst [vmem:[%s1939_s14 + $0x58] sm:$0xff] %v1124_v1  ;;  %1141 = vst [vmem:[%s1939_s14 + $0x60] sm:$0xff] %v1125_v3 }
 0x5f9   : > { %1142 = vst [vmem:[%s1939_s14 + $0x68] sm:$0xff] %v1126_v9  ;;  %1143 = vst [vmem:[%s1939_s14 + $0x70] sm:$0xff] %v1127_v55 }
 0x5fa   : > { %1144 = vst [vmem:[%s1939_s14 + $0x78] sm:$0xff] %v1128_v14 }
 0x5fb PF: > { %s14_s17 = sadd.s32 1, %s1464_s17   ;;  %s1979_s15 = smov %s1460_s16 }
 0x5fc   : > { %p11_p5 = scmp.ge.s32.totalorder %s14_s17, 4   ;;  %s1980_s16 = smov %s1982_s18 }
 0x5fe   :  { %13 = sbr.rel (!%p11_p5) target bundleno = 2 (0x2), region = 74 }

</bundles_post_ra>
